<compile_context>
chip_gen: v7x
topology: tpu7x:2x2x1
jax: 0.10.0
libtpu: 0.0.40
codegen_flags: <defaults>
</compile_context>

<pallas_src>
import functools

import jax
import jax.numpy as jnp
from jax import lax
from jax.experimental import pallas as pl
from jax.experimental.pallas import tpu as pltpu

SIGMA = 10.0
SIGMA_COLOR = -1.0 / (2.0 * SIGMA * SIGMA)

# rgb2yCbCr 3x3 matrix / bias (torch applies them to consecutive flat triples of the
# contiguous NCHW tensor via .view(-1, 3), NOT per pixel -- reproduced exactly here).
_MAT = ((0.257, -0.148, 0.439),
        (0.564, -0.291, -0.368),
        (0.098, 0.439, -0.071))
_BIAS = (16.0 / 255.0, 128.0 / 255.0, 128.0 / 255.0)

# The 24 shifted-difference terms of SmoothLoss come in mirror pairs (a-b / b-a) with
# identical weights and |grad|; folding mirrors and canonicalising displacements to
# dh >= 0 leaves 12 unique displacements, grouped by dh so the sublane (H-axis) roll
# is shared within each group.  Each canonical displacement counts x2.
_CANONICAL_RELS = (
    (0, (1, 2)),
    (1, (0, 1, -1, 2, -2)),
    (2, (0, 1, -1, 2, -2)),
)


def _roll(a, shift, axis):
    """XLU rotate (jnp.roll semantics) with a static, non-negative shift."""
    size = a.shape[axis]
    shift = shift % size
    if shift == 0:
        return a
    return pltpu.roll(a, shift, axis=axis)


# ---------------------------------------------------------------------------
# Fused per-sample kernel.
# ---------------------------------------------------------------------------
def _make_loss_kernel(n_batch, h, w):
    inv_mse = 1.5 / float(n_batch * 3 * h * w)

    def loss_kernel(x_ref, o_ref, out_ref):
        # Per-sample flat-major views (rows = flat_index // W); cast to f32 in-kernel.
        xf = x_ref[0].astype(jnp.float32).reshape(3 * h, w)   # (3H, W) input image
        of = o_ref[0].astype(jnp.float32).reshape(3 * h, w)   # (3H, W) illumination

        rows = lax.broadcasted_iota(jnp.int32, (3 * h, w), 0)
        cols = lax.broadcasted_iota(jnp.int32, (3 * h, w), 1)
        phase = (rows * w + cols) % 3                          # flat index mod 3

        def flat_shift(a, s):
            # a.flat[i + s] in the (3H, W) layout; entries that would cross the
            # per-sample boundary get a zero phase-coefficient below, so the wrap
            # values are never used.
            shifted = _roll(a, -s, 1)
            if s > 0:
                fixed = _roll(shifted, -1, 0)
                wrap = cols >= (w - s)
            else:
                fixed = _roll(shifted, 1, 0)
                wrap = cols < (-s)
            return jnp.where(wrap, fixed, shifted)

        def sel3(c0, c1, c2):
            return jnp.where(phase == 0, c0, jnp.where(phase == 1, c1, c2))

        # Fused RGB->YCbCr: out[i] = sum_k x[3*(i//3)+k]*mat[k, i%3] + bias[i%3]
        #                          = sum_{s=-2..2} x[i+s]*coef_s(i%3) + bias[i%3]
        zero = 0.0
        yf = (xf * sel3(_MAT[0][0], _MAT[1][1], _MAT[2][2])
              + flat_shift(xf, -2) * jnp.where(phase == 2, _MAT[0][2], zero)
              + flat_shift(xf, -1) * sel3(zero, _MAT[0][1], _MAT[1][2])
              + flat_shift(xf, 1) * sel3(_MAT[1][0], _MAT[2][1], zero)
              + flat_shift(xf, 2) * jnp.where(phase == 0, _MAT[2][0], zero)
              + sel3(_BIAS[0], _BIAS[1], _BIAS[2]))

        # Split into per-channel (H, W) planes (static, sublane-aligned slices).
        xs = [xf[c * h:(c + 1) * h, :] for c in range(3)]
        os_ = [of[c * h:(c + 1) * h, :] for c in range(3)]
        ys = [yf[c * h:(c + 1) * h, :] for c in range(3)]

        row_hw = lax.broadcasted_iota(jnp.int32, (h, w), 0)
        col_hw = lax.broadcasted_iota(jnp.int32, (h, w), 1)

        # Fidelity (MSE) contribution, folded into the per-pixel accumulator plane.
        d0 = os_[0] - xs[0]
        d1 = os_[1] - xs[1]
        d2 = os_[2] - xs[2]
        acc = (d0 * d0 + d1 * d1 + d2 * d2) * inv_mse          # (H, W)

        # Smoothness: 12 canonical displacements (each x2 via mirror symmetry),
        # one rolled operand per tensor, shared sublane roll per dh group, borders
        # masked, scale folded in -> single reduction after the loop.
        for dh, dws in _CANONICAL_RELS:
            yh = ys if dh == 0 else [_roll(p, -dh, 0) for p in ys]
            oh = os_ if dh == 0 else [_roll(p, -dh, 0) for p in os_]
            row_ok = row_hw < (h - dh)
            for dw in dws:
                yd = yh if dw == 0 else [_roll(p, -dw, 1) for p in yh]
                od = oh if dw == 0 else [_roll(p, -dw, 1) for p in oh]
                e0 = yd[0] - ys[0]
                e1 = yd[1] - ys[1]
                e2 = yd[2] - ys[2]
                wgt = jnp.exp((e0 * e0 + e1 * e1 + e2 * e2) * SIGMA_COLOR)   # EUP
                grad = (jnp.abs(od[0] - os_[0]) + jnp.abs(od[1] - os_[1])
                        + jnp.abs(od[2] - os_[2]))                           # L1 over C
                col_ok = (col_hw < (w - dw)) if dw >= 0 else (col_hw >= -dw)
                valid = jnp.logical_and(row_ok, col_ok)
                # mirror twin -> x2 ; mean over the (h-dh)*(w-|dw|) valid window
                scale = 2.0 / float(n_batch * (h - dh) * (w - abs(dw)))
                acc = acc + jnp.where(valid, wgt * grad, 0.0) * scale

        total = jnp.sum(acc)                                   # single XLU reduction
        # Lane-dense per-sample scalar write-out (unmasked full-block store).
        out_ref[...] = total * jnp.ones((1, 8, 128), jnp.float32)

    return loss_kernel


# ---------------------------------------------------------------------------
# Wrapper.
# ---------------------------------------------------------------------------
@functools.lru_cache(maxsize=None)
def _vmem_capacity_bytes():
    try:
        return int(getattr(pltpu.get_tpu_info(), "vmem_capacity_bytes", 64 << 20))
    except Exception:
        return 64 << 20   # conservative fallback (v7x physical VMEM per TensorCore)


def _pick_vmem_limit(h, w):
    plane = 3 * h * w * 4                 # one f32 (3, H, W) image
    # 2 double-buffered inputs + ~8 live f32 temporaries + fixed headroom,
    # clamped to 3/4 of physical VMEM (~96 MiB on v5e/v6e, ~48 MiB on v7x).
    need = 4 * plane + 8 * plane + (2 << 20)
    return int(min(max(32 << 20, need), _vmem_capacity_bytes() * 3 // 4))


@jax.jit
def loss_function(inp, illu):
    """JAX/Pallas equivalent of LossFunction(isRandom=False).forward(input, illu)."""
    n, c, h, w = inp.shape
    assert c == 3, "SmoothLoss requires 3-channel input"
    assert h >= 3 and w >= 3, "need H, W >= 3 for the 2-pixel shifts"

    img_spec = pl.BlockSpec((1, 3, h, w), lambda i: (i, 0, 0, 0))
    out = pl.pallas_call(
        _make_loss_kernel(n, h, w),
        out_shape=jax.ShapeDtypeStruct((n, 8, 128), jnp.float32),
        grid_spec=pltpu.PrefetchScalarGridSpec(
            num_scalar_prefetch=0,
            grid=(n,),
            in_specs=[img_spec, img_spec],
            out_specs=pl.BlockSpec((1, 8, 128), lambda i: (i, 0, 0)),
        ),
        compiler_params=pltpu.CompilerParams(
            dimension_semantics=("parallel",),     # dual-TC batch sharding on v7x
            vmem_limit_bytes=_pick_vmem_limit(h, w),
        ),
        cost_estimate=pl.CostEstimate(
            flops=260 * n * h * w,
            transcendentals=12 * n * h * w,
            bytes_accessed=2 * n * 3 * h * w * 4 + n * 8 * 128 * 4,
        ),
    )(inp, illu)
    # TODO(synk): add an H-tile grid axis with a 2-row halo (overlapping windows via a
    # pl.Element index_map) for >~0.4 MPix images -- mandatory on v7x (64 MiB VMEM) and
    # doubles as the dual-TC load-balance fix for small batches; needs tile-edge vs
    # image-edge masking and tile-offset-aware flat phases.
    # TODO(synk): for W < 128, fold rows into the lane axis (reshape to (3, H/k, k*W))
    # or pad W to a multiple of 128 to avoid dead lanes in every vector op.
    return jnp.sum(out[:, 0, 0])


# ---------------------------------------------------------------------------
# Pure-JAX reference (mirrors the PyTorch forward, all 24 pairs) for validation.
# ---------------------------------------------------------------------------
F = slice(None)
P1, M1 = slice(1, None), slice(None, -1)
P2, M2 = slice(2, None), slice(None, -2)
SHIFT_PAIRS = [
    ((P1, F), (M1, F)), ((M1, F), (P1, F)),
    ((F, P1), (F, M1)), ((F, M1), (F, P1)),
    ((M1, M1), (P1, P1)), ((P1, P1), (M1, M1)),
    ((P1, M1), (M1, P1)), ((M1, P1), (P1, M1)),
    ((P2, F), (M2, F)), ((M2, F), (P2, F)),
    ((F, P2), (F, M2)), ((F, M2), (F, P2)),
    ((M2, M1), (P2, P1)), ((P2, P1), (M2, M1)),
    ((P2, M1), (M2, P1)), ((M2, P1), (P2, M1)),
    ((M1, M2), (P1, P2)), ((P1, P2), (M1, M2)),
    ((P1, M2), (M1, P2)), ((M1, P2), (P1, M2)),
    ((M2, M2), (P2, P2)), ((P2, P2), (M2, M2)),
    ((P2, M2), (M2, P2)), ((M2, P2), (P2, M2)),
]


def _rgb2ycbcr_ref(x):
    n, _, h, w = x.shape
    mat = jnp.array(_MAT, jnp.float32)
    bias = jnp.array(_BIAS, jnp.float32)
    flat = x.astype(jnp.float32).reshape(-1, 3)
    return (flat @ mat + bias).reshape(n, 3, h, w)


def reference_loss(x, illu):
    y = _rgb2ycbcr_ref(x)
    total = 1.5 * jnp.mean((illu - x) ** 2)
    for (ha, wa), (hb, wb) in SHIFT_PAIRS:
        wgt = jnp.exp(jnp.sum((y[:, :, ha, wa] - y[:, :, hb, wb]) ** 2, axis=1)
                      * SIGMA_COLOR)
        grad = jnp.sum(jnp.abs(illu[:, :, ha, wa] - illu[:, :, hb, wb]), axis=1)
        total = total + jnp.mean(wgt * grad)
    return total


if __name__ == "__main__":
    key = jax.random.PRNGKey(0)
    k1, k2 = jax.random.split(key)
    # Lane-dense demo shape (W = 128 fills the 128-lane axis; see TODO for W < 128).
    N, C, H, W = 2, 3, 16, 128
    x = jax.random.uniform(k1, (N, C, H, W), dtype=jnp.float32)
    illu = jax.random.uniform(k2, (N, C, H, W), dtype=jnp.float32)

    loss = jax.block_until_ready(loss_function(x, illu))
    ref = reference_loss(x, illu)

    assert jnp.isfinite(loss), float(loss)
    assert jnp.allclose(loss, ref, rtol=1e-3, atol=1e-4), (float(loss), float(ref))
    print("KERNEL_OK")
</pallas_src>

<mosaic_0001>
module attributes {stable_mosaic.version = 11 : i64} {
  func.func @loss_kernel(%arg0: i32, %arg1: memref<1x3x16x128xf32, #tpu.memory_space<vmem>>, %arg2: memref<1x3x16x128xf32, #tpu.memory_space<vmem>>, %arg3: memref<1x8x128xf32, #tpu.memory_space<vmem>>) attributes {dimension_semantics = [#tpu.dimension_semantics<parallel>], iteration_bounds = array<i64: 2>, scalar_prefetch = 0 : i64, scratch_operands = 0 : i64, tpu.core_type = #tpu.core_type<tc>, window_params = [{transform_indices = @transform_0, window_bounds = array<i64: 1, 3, 16, 128>}, {transform_indices = @transform_1, window_bounds = array<i64: 1, 3, 16, 128>}, {transform_indices = @transform_2, window_bounds = array<i64: 1, 8, 128>}]} {
    %c0 = arith.constant 0 : index
    %c0_0 = arith.constant 0 : index
    %c0_1 = arith.constant 0 : index
    %c0_2 = arith.constant 0 : index
    %0 = vector.load %arg1[%c0, %c0_0, %c0_1, %c0_2] : memref<1x3x16x128xf32, #tpu.memory_space<vmem>>, vector<1x3x16x128xf32>
    %1 = vector.shape_cast %0 : vector<1x3x16x128xf32> to vector<3x16x128xf32>
    %2 = vector.shape_cast %1 : vector<3x16x128xf32> to vector<48x128xf32>
    %c0_3 = arith.constant 0 : index
    %c0_4 = arith.constant 0 : index
    %c0_5 = arith.constant 0 : index
    %c0_6 = arith.constant 0 : index
    %3 = vector.load %arg2[%c0_3, %c0_4, %c0_5, %c0_6] : memref<1x3x16x128xf32, #tpu.memory_space<vmem>>, vector<1x3x16x128xf32>
    %4 = vector.shape_cast %3 : vector<1x3x16x128xf32> to vector<3x16x128xf32>
    %5 = vector.shape_cast %4 : vector<3x16x128xf32> to vector<48x128xf32>
    %6 = tpu.iota {dimensions = array<i32: 0>} : vector<48x128xi32>
    %7 = tpu.iota {dimensions = array<i32: 1>} : vector<48x128xi32>
    %c128_i32 = arith.constant 128 : i32
    %8 = vector.broadcast %c128_i32 : i32 to vector<48x128xi32>
    %9 = arith.muli %6, %8 : vector<48x128xi32>
    %10 = arith.addi %9, %7 : vector<48x128xi32>
    %c3_i32 = arith.constant 3 : i32
    %c0_i32 = arith.constant 0 : i32
    %11 = arith.cmpi eq, %c3_i32, %c0_i32 : i32
    %c1_i32 = arith.constant 1 : i32
    %12 = arith.select %11, %c1_i32, %c3_i32 : i32
    %13 = vector.broadcast %12 : i32 to vector<48x128xi32>
    %14 = arith.remsi %10, %13 : vector<48x128xi32>
    %c0_i32_7 = arith.constant 0 : i32
    %15 = vector.broadcast %c0_i32_7 : i32 to vector<48x128xi32>
    %16 = arith.cmpi ne, %14, %15 : vector<48x128xi32>
    %c0_i32_8 = arith.constant 0 : i32
    %17 = vector.broadcast %c0_i32_8 : i32 to vector<48x128xi32>
    %18 = arith.cmpi slt, %14, %17 : vector<48x128xi32>
    %c0_i32_9 = arith.constant 0 : i32
    %19 = arith.cmpi slt, %12, %c0_i32_9 : i32
    %20 = vector.broadcast %19 : i1 to vector<48x128xi1>
    %21 = vector.broadcast %20 : vector<48x128xi1> to vector<48x128xi1>
    %22 = arith.xori %18, %21 : vector<48x128xi1>
    %23 = arith.andi %22, %16 : vector<48x128xi1>
    %24 = vector.broadcast %12 : i32 to vector<48x128xi32>
    %25 = arith.addi %14, %24 : vector<48x128xi32>
    %26 = arith.select %23, %25, %14 : vector<48x128xi1>, vector<48x128xi32>
    %c0_i32_10 = arith.constant 0 : i32
    %27 = vector.broadcast %c0_i32_10 : i32 to vector<48x128xi32>
    %28 = arith.cmpi eq, %26, %27 : vector<48x128xi32>
    %c1_i32_11 = arith.constant 1 : i32
    %29 = vector.broadcast %c1_i32_11 : i32 to vector<48x128xi32>
    %30 = arith.cmpi eq, %26, %29 : vector<48x128xi32>
    %cst = arith.constant -2.910000e-01 : f32
    %cst_12 = arith.constant -7.100000e-02 : f32
    %31 = vector.broadcast %cst : f32 to vector<48x128xf32>
    %32 = vector.broadcast %cst_12 : f32 to vector<48x128xf32>
    %33 = arith.select %30, %31, %32 : vector<48x128xi1>, vector<48x128xf32>
    %cst_13 = arith.constant 2.570000e-01 : f32
    %34 = vector.broadcast %cst_13 : f32 to vector<48x128xf32>
    %35 = arith.select %28, %34, %33 : vector<48x128xi1>, vector<48x128xf32>
    %36 = arith.mulf %2, %35 : vector<48x128xf32>
    %c2_i32 = arith.constant 2 : i32
    %37 = tpu.dynamic_rotate %2 by %c2_i32 dim 1 : vector<48x128xf32>, i32 -> vector<48x128xf32>
    %c1_i32_14 = arith.constant 1 : i32
    %38 = tpu.dynamic_rotate %37 by %c1_i32_14 dim 0 : vector<48x128xf32>, i32 -> vector<48x128xf32>
    %c2_i32_15 = arith.constant 2 : i32
    %39 = vector.broadcast %c2_i32_15 : i32 to vector<48x128xi32>
    %40 = arith.cmpi slt, %7, %39 : vector<48x128xi32>
    %41 = arith.select %40, %38, %37 : vector<48x128xi1>, vector<48x128xf32>
    %c2_i32_16 = arith.constant 2 : i32
    %42 = vector.broadcast %c2_i32_16 : i32 to vector<48x128xi32>
    %43 = arith.cmpi eq, %26, %42 : vector<48x128xi32>
    %cst_17 = arith.constant 4.390000e-01 : f32
    %cst_18 = arith.constant 0.000000e+00 : f32
    %44 = vector.broadcast %cst_17 : f32 to vector<48x128xf32>
    %45 = vector.broadcast %cst_18 : f32 to vector<48x128xf32>
    %46 = arith.select %43, %44, %45 : vector<48x128xi1>, vector<48x128xf32>
    %47 = arith.mulf %41, %46 : vector<48x128xf32>
    %48 = arith.addf %36, %47 : vector<48x128xf32>
    %c1_i32_19 = arith.constant 1 : i32
    %49 = tpu.dynamic_rotate %2 by %c1_i32_19 dim 1 : vector<48x128xf32>, i32 -> vector<48x128xf32>
    %c1_i32_20 = arith.constant 1 : i32
    %50 = tpu.dynamic_rotate %49 by %c1_i32_20 dim 0 : vector<48x128xf32>, i32 -> vector<48x128xf32>
    %c1_i32_21 = arith.constant 1 : i32
    %51 = vector.broadcast %c1_i32_21 : i32 to vector<48x128xi32>
    %52 = arith.cmpi slt, %7, %51 : vector<48x128xi32>
    %53 = arith.select %52, %50, %49 : vector<48x128xi1>, vector<48x128xf32>
    %c0_i32_22 = arith.constant 0 : i32
    %54 = vector.broadcast %c0_i32_22 : i32 to vector<48x128xi32>
    %55 = arith.cmpi eq, %26, %54 : vector<48x128xi32>
    %c1_i32_23 = arith.constant 1 : i32
    %56 = vector.broadcast %c1_i32_23 : i32 to vector<48x128xi32>
    %57 = arith.cmpi eq, %26, %56 : vector<48x128xi32>
    %cst_24 = arith.constant -1.480000e-01 : f32
    %cst_25 = arith.constant -3.680000e-01 : f32
    %58 = vector.broadcast %cst_24 : f32 to vector<48x128xf32>
    %59 = vector.broadcast %cst_25 : f32 to vector<48x128xf32>
    %60 = arith.select %57, %58, %59 : vector<48x128xi1>, vector<48x128xf32>
    %cst_26 = arith.constant 0.000000e+00 : f32
    %61 = vector.broadcast %cst_26 : f32 to vector<48x128xf32>
    %62 = arith.select %55, %61, %60 : vector<48x128xi1>, vector<48x128xf32>
    %63 = arith.mulf %53, %62 : vector<48x128xf32>
    %64 = arith.addf %48, %63 : vector<48x128xf32>
    %c127_i32 = arith.constant 127 : i32
    %65 = tpu.dynamic_rotate %2 by %c127_i32 dim 1 : vector<48x128xf32>, i32 -> vector<48x128xf32>
    %c47_i32 = arith.constant 47 : i32
    %66 = tpu.dynamic_rotate %65 by %c47_i32 dim 0 : vector<48x128xf32>, i32 -> vector<48x128xf32>
    %c127_i32_27 = arith.constant 127 : i32
    %67 = vector.broadcast %c127_i32_27 : i32 to vector<48x128xi32>
    %68 = arith.cmpi sge, %7, %67 : vector<48x128xi32>
    %69 = arith.select %68, %66, %65 : vector<48x128xi1>, vector<48x128xf32>
    %c0_i32_28 = arith.constant 0 : i32
    %70 = vector.broadcast %c0_i32_28 : i32 to vector<48x128xi32>
    %71 = arith.cmpi eq, %26, %70 : vector<48x128xi32>
    %c1_i32_29 = arith.constant 1 : i32
    %72 = vector.broadcast %c1_i32_29 : i32 to vector<48x128xi32>
    %73 = arith.cmpi eq, %26, %72 : vector<48x128xi32>
    %cst_30 = arith.constant 4.390000e-01 : f32
    %cst_31 = arith.constant 0.000000e+00 : f32
    %74 = vector.broadcast %cst_30 : f32 to vector<48x128xf32>
    %75 = vector.broadcast %cst_31 : f32 to vector<48x128xf32>
    %76 = arith.select %73, %74, %75 : vector<48x128xi1>, vector<48x128xf32>
    %cst_32 = arith.constant 5.640000e-01 : f32
    %77 = vector.broadcast %cst_32 : f32 to vector<48x128xf32>
    %78 = arith.select %71, %77, %76 : vector<48x128xi1>, vector<48x128xf32>
    %79 = arith.mulf %69, %78 : vector<48x128xf32>
    %80 = arith.addf %64, %79 : vector<48x128xf32>
    %c126_i32 = arith.constant 126 : i32
    %81 = tpu.dynamic_rotate %2 by %c126_i32 dim 1 : vector<48x128xf32>, i32 -> vector<48x128xf32>
    %c47_i32_33 = arith.constant 47 : i32
    %82 = tpu.dynamic_rotate %81 by %c47_i32_33 dim 0 : vector<48x128xf32>, i32 -> vector<48x128xf32>
    %c126_i32_34 = arith.constant 126 : i32
    %83 = vector.broadcast %c126_i32_34 : i32 to vector<48x128xi32>
    %84 = arith.cmpi sge, %7, %83 : vector<48x128xi32>
    %85 = arith.select %84, %82, %81 : vector<48x128xi1>, vector<48x128xf32>
    %c0_i32_35 = arith.constant 0 : i32
    %86 = vector.broadcast %c0_i32_35 : i32 to vector<48x128xi32>
    %87 = arith.cmpi eq, %26, %86 : vector<48x128xi32>
    %cst_36 = arith.constant 0.0979999974 : f32
    %cst_37 = arith.constant 0.000000e+00 : f32
    %88 = vector.broadcast %cst_36 : f32 to vector<48x128xf32>
    %89 = vector.broadcast %cst_37 : f32 to vector<48x128xf32>
    %90 = arith.select %87, %88, %89 : vector<48x128xi1>, vector<48x128xf32>
    %91 = arith.mulf %85, %90 : vector<48x128xf32>
    %92 = arith.addf %80, %91 : vector<48x128xf32>
    %c0_i32_38 = arith.constant 0 : i32
    %93 = vector.broadcast %c0_i32_38 : i32 to vector<48x128xi32>
    %94 = arith.cmpi eq, %26, %93 : vector<48x128xi32>
    %c1_i32_39 = arith.constant 1 : i32
    %95 = vector.broadcast %c1_i32_39 : i32 to vector<48x128xi32>
    %96 = arith.cmpi eq, %26, %95 : vector<48x128xi32>
    %cst_40 = arith.constant 0.501960814 : f32
    %cst_41 = arith.constant 0.501960814 : f32
    %97 = vector.broadcast %cst_40 : f32 to vector<48x128xf32>
    %98 = vector.broadcast %cst_41 : f32 to vector<48x128xf32>
    %99 = arith.select %96, %97, %98 : vector<48x128xi1>, vector<48x128xf32>
    %cst_42 = arith.constant 6.274510e-02 : f32
    %100 = vector.broadcast %cst_42 : f32 to vector<48x128xf32>
    %101 = arith.select %94, %100, %99 : vector<48x128xi1>, vector<48x128xf32>
    %102 = arith.addf %92, %101 : vector<48x128xf32>
    %103 = vector.extract_strided_slice %2 {offsets = [0, 0], sizes = [16, 128], strides = [1, 1]} : vector<48x128xf32> to vector<16x128xf32>
    %104 = vector.extract_strided_slice %2 {offsets = [16, 0], sizes = [16, 128], strides = [1, 1]} : vector<48x128xf32> to vector<16x128xf32>
    %105 = vector.extract_strided_slice %2 {offsets = [32, 0], sizes = [16, 128], strides = [1, 1]} : vector<48x128xf32> to vector<16x128xf32>
    %106 = vector.extract_strided_slice %5 {offsets = [0, 0], sizes = [16, 128], strides = [1, 1]} : vector<48x128xf32> to vector<16x128xf32>
    %107 = vector.extract_strided_slice %5 {offsets = [16, 0], sizes = [16, 128], strides = [1, 1]} : vector<48x128xf32> to vector<16x128xf32>
    %108 = vector.extract_strided_slice %5 {offsets = [32, 0], sizes = [16, 128], strides = [1, 1]} : vector<48x128xf32> to vector<16x128xf32>
    %109 = vector.extract_strided_slice %102 {offsets = [0, 0], sizes = [16, 128], strides = [1, 1]} : vector<48x128xf32> to vector<16x128xf32>
    %110 = vector.extract_strided_slice %102 {offsets = [16, 0], sizes = [16, 128], strides = [1, 1]} : vector<48x128xf32> to vector<16x128xf32>
    %111 = vector.extract_strided_slice %102 {offsets = [32, 0], sizes = [16, 128], strides = [1, 1]} : vector<48x128xf32> to vector<16x128xf32>
    %112 = tpu.iota {dimensions = array<i32: 0>} : vector<16x128xi32>
    %113 = tpu.iota {dimensions = array<i32: 1>} : vector<16x128xi32>
    %114 = arith.subf %106, %103 : vector<16x128xf32>
    %115 = arith.subf %107, %104 : vector<16x128xf32>
    %116 = arith.subf %108, %105 : vector<16x128xf32>
    %117 = arith.mulf %114, %114 : vector<16x128xf32>
    %118 = arith.mulf %115, %115 : vector<16x128xf32>
    %119 = arith.addf %117, %118 : vector<16x128xf32>
    %120 = arith.mulf %116, %116 : vector<16x128xf32>
    %121 = arith.addf %119, %120 : vector<16x128xf32>
    %cst_43 = arith.constant 1.22070313E-4 : f32
    %122 = vector.broadcast %cst_43 : f32 to vector<16x128xf32>
    %123 = arith.mulf %121, %122 : vector<16x128xf32>
    %c16_i32 = arith.constant 16 : i32
    %124 = vector.broadcast %c16_i32 : i32 to vector<16x128xi32>
    %125 = arith.cmpi slt, %112, %124 : vector<16x128xi32>
    %c127_i32_44 = arith.constant 127 : i32
    %126 = tpu.dynamic_rotate %109 by %c127_i32_44 dim 1 : vector<16x128xf32>, i32 -> vector<16x128xf32>
    %c127_i32_45 = arith.constant 127 : i32
    %127 = tpu.dynamic_rotate %110 by %c127_i32_45 dim 1 : vector<16x128xf32>, i32 -> vector<16x128xf32>
    %c127_i32_46 = arith.constant 127 : i32
    %128 = tpu.dynamic_rotate %111 by %c127_i32_46 dim 1 : vector<16x128xf32>, i32 -> vector<16x128xf32>
    %c127_i32_47 = arith.constant 127 : i32
    %129 = tpu.dynamic_rotate %106 by %c127_i32_47 dim 1 : vector<16x128xf32>, i32 -> vector<16x128xf32>
    %c127_i32_48 = arith.constant 127 : i32
    %130 = tpu.dynamic_rotate %107 by %c127_i32_48 dim 1 : vector<16x128xf32>, i32 -> vector<16x128xf32>
    %c127_i32_49 = arith.constant 127 : i32
    %131 = tpu.dynamic_rotate %108 by %c127_i32_49 dim 1 : vector<16x128xf32>, i32 -> vector<16x128xf32>
    %132 = arith.subf %126, %109 : vector<16x128xf32>
    %133 = arith.subf %127, %110 : vector<16x128xf32>
    %134 = arith.subf %128, %111 : vector<16x128xf32>
    %135 = arith.mulf %132, %132 : vector<16x128xf32>
    %136 = arith.mulf %133, %133 : vector<16x128xf32>
    %137 = arith.addf %135, %136 : vector<16x128xf32>
    %138 = arith.mulf %134, %134 : vector<16x128xf32>
    %139 = arith.addf %137, %138 : vector<16x128xf32>
    %cst_50 = arith.constant -5.000000e-03 : f32
    %140 = vector.broadcast %cst_50 : f32 to vector<16x128xf32>
    %141 = arith.mulf %139, %140 : vector<16x128xf32>
    %142 = math.exp %141 : vector<16x128xf32>
    %143 = arith.subf %129, %106 : vector<16x128xf32>
    %144 = math.absf %143 : vector<16x128xf32>
    %145 = arith.subf %130, %107 : vector<16x128xf32>
    %146 = math.absf %145 : vector<16x128xf32>
    %147 = arith.addf %144, %146 : vector<16x128xf32>
    %148 = arith.subf %131, %108 : vector<16x128xf32>
    %149 = math.absf %148 : vector<16x128xf32>
    %150 = arith.addf %147, %149 : vector<16x128xf32>
    %c127_i32_51 = arith.constant 127 : i32
    %151 = vector.broadcast %c127_i32_51 : i32 to vector<16x128xi32>
    %152 = arith.cmpi slt, %113, %151 : vector<16x128xi32>
    %153 = arith.andi %125, %152 : vector<16x128xi1>
    %154 = arith.mulf %142, %150 : vector<16x128xf32>
    %cst_52 = arith.constant 0.000000e+00 : f32
    %155 = vector.broadcast %cst_52 : f32 to vector<16x128xf32>
    %156 = arith.select %153, %154, %155 : vector<16x128xi1>, vector<16x128xf32>
    %cst_53 = arith.constant 4.921260e-04 : f32
    %157 = vector.broadcast %cst_53 : f32 to vector<16x128xf32>
    %158 = arith.mulf %156, %157 : vector<16x128xf32>
    %159 = arith.addf %123, %158 : vector<16x128xf32>
    %c126_i32_54 = arith.constant 126 : i32
    %160 = tpu.dynamic_rotate %109 by %c126_i32_54 dim 1 : vector<16x128xf32>, i32 -> vector<16x128xf32>
    %c126_i32_55 = arith.constant 126 : i32
    %161 = tpu.dynamic_rotate %110 by %c126_i32_55 dim 1 : vector<16x128xf32>, i32 -> vector<16x128xf32>
    %c126_i32_56 = arith.constant 126 : i32
    %162 = tpu.dynamic_rotate %111 by %c126_i32_56 dim 1 : vector<16x128xf32>, i32 -> vector<16x128xf32>
    %c126_i32_57 = arith.constant 126 : i32
    %163 = tpu.dynamic_rotate %106 by %c126_i32_57 dim 1 : vector<16x128xf32>, i32 -> vector<16x128xf32>
    %c126_i32_58 = arith.constant 126 : i32
    %164 = tpu.dynamic_rotate %107 by %c126_i32_58 dim 1 : vector<16x128xf32>, i32 -> vector<16x128xf32>
    %c126_i32_59 = arith.constant 126 : i32
    %165 = tpu.dynamic_rotate %108 by %c126_i32_59 dim 1 : vector<16x128xf32>, i32 -> vector<16x128xf32>
    %166 = arith.subf %160, %109 : vector<16x128xf32>
    %167 = arith.subf %161, %110 : vector<16x128xf32>
    %168 = arith.subf %162, %111 : vector<16x128xf32>
    %169 = arith.mulf %166, %166 : vector<16x128xf32>
    %170 = arith.mulf %167, %167 : vector<16x128xf32>
    %171 = arith.addf %169, %170 : vector<16x128xf32>
    %172 = arith.mulf %168, %168 : vector<16x128xf32>
    %173 = arith.addf %171, %172 : vector<16x128xf32>
    %cst_60 = arith.constant -5.000000e-03 : f32
    %174 = vector.broadcast %cst_60 : f32 to vector<16x128xf32>
    %175 = arith.mulf %173, %174 : vector<16x128xf32>
    %176 = math.exp %175 : vector<16x128xf32>
    %177 = arith.subf %163, %106 : vector<16x128xf32>
    %178 = math.absf %177 : vector<16x128xf32>
    %179 = arith.subf %164, %107 : vector<16x128xf32>
    %180 = math.absf %179 : vector<16x128xf32>
    %181 = arith.addf %178, %180 : vector<16x128xf32>
    %182 = arith.subf %165, %108 : vector<16x128xf32>
    %183 = math.absf %182 : vector<16x128xf32>
    %184 = arith.addf %181, %183 : vector<16x128xf32>
    %c126_i32_61 = arith.constant 126 : i32
    %185 = vector.broadcast %c126_i32_61 : i32 to vector<16x128xi32>
    %186 = arith.cmpi slt, %113, %185 : vector<16x128xi32>
    %187 = arith.andi %125, %186 : vector<16x128xi1>
    %188 = arith.mulf %176, %184 : vector<16x128xf32>
    %cst_62 = arith.constant 0.000000e+00 : f32
    %189 = vector.broadcast %cst_62 : f32 to vector<16x128xf32>
    %190 = arith.select %187, %188, %189 : vector<16x128xi1>, vector<16x128xf32>
    %cst_63 = arith.constant 4.96031775E-4 : f32
    %191 = vector.broadcast %cst_63 : f32 to vector<16x128xf32>
    %192 = arith.mulf %190, %191 : vector<16x128xf32>
    %193 = arith.addf %159, %192 : vector<16x128xf32>
    %c15_i32 = arith.constant 15 : i32
    %194 = tpu.dynamic_rotate %109 by %c15_i32 dim 0 : vector<16x128xf32>, i32 -> vector<16x128xf32>
    %c15_i32_64 = arith.constant 15 : i32
    %195 = tpu.dynamic_rotate %110 by %c15_i32_64 dim 0 : vector<16x128xf32>, i32 -> vector<16x128xf32>
    %c15_i32_65 = arith.constant 15 : i32
    %196 = tpu.dynamic_rotate %111 by %c15_i32_65 dim 0 : vector<16x128xf32>, i32 -> vector<16x128xf32>
    %c15_i32_66 = arith.constant 15 : i32
    %197 = tpu.dynamic_rotate %106 by %c15_i32_66 dim 0 : vector<16x128xf32>, i32 -> vector<16x128xf32>
    %c15_i32_67 = arith.constant 15 : i32
    %198 = tpu.dynamic_rotate %107 by %c15_i32_67 dim 0 : vector<16x128xf32>, i32 -> vector<16x128xf32>
    %c15_i32_68 = arith.constant 15 : i32
    %199 = tpu.dynamic_rotate %108 by %c15_i32_68 dim 0 : vector<16x128xf32>, i32 -> vector<16x128xf32>
    %c15_i32_69 = arith.constant 15 : i32
    %200 = vector.broadcast %c15_i32_69 : i32 to vector<16x128xi32>
    %201 = arith.cmpi slt, %112, %200 : vector<16x128xi32>
    %202 = arith.subf %194, %109 : vector<16x128xf32>
    %203 = arith.subf %195, %110 : vector<16x128xf32>
    %204 = arith.subf %196, %111 : vector<16x128xf32>
    %205 = arith.mulf %202, %202 : vector<16x128xf32>
    %206 = arith.mulf %203, %203 : vector<16x128xf32>
    %207 = arith.addf %205, %206 : vector<16x128xf32>
    %208 = arith.mulf %204, %204 : vector<16x128xf32>
    %209 = arith.addf %207, %208 : vector<16x128xf32>
    %cst_70 = arith.constant -5.000000e-03 : f32
    %210 = vector.broadcast %cst_70 : f32 to vector<16x128xf32>
    %211 = arith.mulf %209, %210 : vector<16x128xf32>
    %212 = math.exp %211 : vector<16x128xf32>
    %213 = arith.subf %197, %106 : vector<16x128xf32>
    %214 = math.absf %213 : vector<16x128xf32>
    %215 = arith.subf %198, %107 : vector<16x128xf32>
    %216 = math.absf %215 : vector<16x128xf32>
    %217 = arith.addf %214, %216 : vector<16x128xf32>
    %218 = arith.subf %199, %108 : vector<16x128xf32>
    %219 = math.absf %218 : vector<16x128xf32>
    %220 = arith.addf %217, %219 : vector<16x128xf32>
    %c128_i32_71 = arith.constant 128 : i32
    %221 = vector.broadcast %c128_i32_71 : i32 to vector<16x128xi32>
    %222 = arith.cmpi slt, %113, %221 : vector<16x128xi32>
    %223 = arith.andi %201, %222 : vector<16x128xi1>
    %224 = arith.mulf %212, %220 : vector<16x128xf32>
    %cst_72 = arith.constant 0.000000e+00 : f32
    %225 = vector.broadcast %cst_72 : f32 to vector<16x128xf32>
    %226 = arith.select %223, %224, %225 : vector<16x128xi1>, vector<16x128xf32>
    %cst_73 = arith.constant 5.2083336E-4 : f32
    %227 = vector.broadcast %cst_73 : f32 to vector<16x128xf32>
    %228 = arith.mulf %226, %227 : vector<16x128xf32>
    %229 = arith.addf %193, %228 : vector<16x128xf32>
    %c127_i32_74 = arith.constant 127 : i32
    %230 = tpu.dynamic_rotate %194 by %c127_i32_74 dim 1 : vector<16x128xf32>, i32 -> vector<16x128xf32>
    %c127_i32_75 = arith.constant 127 : i32
    %231 = tpu.dynamic_rotate %195 by %c127_i32_75 dim 1 : vector<16x128xf32>, i32 -> vector<16x128xf32>
    %c127_i32_76 = arith.constant 127 : i32
    %232 = tpu.dynamic_rotate %196 by %c127_i32_76 dim 1 : vector<16x128xf32>, i32 -> vector<16x128xf32>
    %c127_i32_77 = arith.constant 127 : i32
    %233 = tpu.dynamic_rotate %197 by %c127_i32_77 dim 1 : vector<16x128xf32>, i32 -> vector<16x128xf32>
    %c127_i32_78 = arith.constant 127 : i32
    %234 = tpu.dynamic_rotate %198 by %c127_i32_78 dim 1 : vector<16x128xf32>, i32 -> vector<16x128xf32>
    %c127_i32_79 = arith.constant 127 : i32
    %235 = tpu.dynamic_rotate %199 by %c127_i32_79 dim 1 : vector<16x128xf32>, i32 -> vector<16x128xf32>
    %236 = arith.subf %230, %109 : vector<16x128xf32>
    %237 = arith.subf %231, %110 : vector<16x128xf32>
    %238 = arith.subf %232, %111 : vector<16x128xf32>
    %239 = arith.mulf %236, %236 : vector<16x128xf32>
    %240 = arith.mulf %237, %237 : vector<16x128xf32>
    %241 = arith.addf %239, %240 : vector<16x128xf32>
    %242 = arith.mulf %238, %238 : vector<16x128xf32>
    %243 = arith.addf %241, %242 : vector<16x128xf32>
    %cst_80 = arith.constant -5.000000e-03 : f32
    %244 = vector.broadcast %cst_80 : f32 to vector<16x128xf32>
    %245 = arith.mulf %243, %244 : vector<16x128xf32>
    %246 = math.exp %245 : vector<16x128xf32>
    %247 = arith.subf %233, %106 : vector<16x128xf32>
    %248 = math.absf %247 : vector<16x128xf32>
    %249 = arith.subf %234, %107 : vector<16x128xf32>
    %250 = math.absf %249 : vector<16x128xf32>
    %251 = arith.addf %248, %250 : vector<16x128xf32>
    %252 = arith.subf %235, %108 : vector<16x128xf32>
    %253 = math.absf %252 : vector<16x128xf32>
    %254 = arith.addf %251, %253 : vector<16x128xf32>
    %c127_i32_81 = arith.constant 127 : i32
    %255 = vector.broadcast %c127_i32_81 : i32 to vector<16x128xi32>
    %256 = arith.cmpi slt, %113, %255 : vector<16x128xi32>
    %257 = arith.andi %201, %256 : vector<16x128xi1>
    %258 = arith.mulf %246, %254 : vector<16x128xf32>
    %cst_82 = arith.constant 0.000000e+00 : f32
    %259 = vector.broadcast %cst_82 : f32 to vector<16x128xf32>
    %260 = arith.select %257, %258, %259 : vector<16x128xi1>, vector<16x128xf32>
    %cst_83 = arith.constant 5.24934381E-4 : f32
    %261 = vector.broadcast %cst_83 : f32 to vector<16x128xf32>
    %262 = arith.mulf %260, %261 : vector<16x128xf32>
    %263 = arith.addf %229, %262 : vector<16x128xf32>
    %c1_i32_84 = arith.constant 1 : i32
    %264 = tpu.dynamic_rotate %194 by %c1_i32_84 dim 1 : vector<16x128xf32>, i32 -> vector<16x128xf32>
    %c1_i32_85 = arith.constant 1 : i32
    %265 = tpu.dynamic_rotate %195 by %c1_i32_85 dim 1 : vector<16x128xf32>, i32 -> vector<16x128xf32>
    %c1_i32_86 = arith.constant 1 : i32
    %266 = tpu.dynamic_rotate %196 by %c1_i32_86 dim 1 : vector<16x128xf32>, i32 -> vector<16x128xf32>
    %c1_i32_87 = arith.constant 1 : i32
    %267 = tpu.dynamic_rotate %197 by %c1_i32_87 dim 1 : vector<16x128xf32>, i32 -> vector<16x128xf32>
    %c1_i32_88 = arith.constant 1 : i32
    %268 = tpu.dynamic_rotate %198 by %c1_i32_88 dim 1 : vector<16x128xf32>, i32 -> vector<16x128xf32>
    %c1_i32_89 = arith.constant 1 : i32
    %269 = tpu.dynamic_rotate %199 by %c1_i32_89 dim 1 : vector<16x128xf32>, i32 -> vector<16x128xf32>
    %270 = arith.subf %264, %109 : vector<16x128xf32>
    %271 = arith.subf %265, %110 : vector<16x128xf32>
    %272 = arith.subf %266, %111 : vector<16x128xf32>
    %273 = arith.mulf %270, %270 : vector<16x128xf32>
    %274 = arith.mulf %271, %271 : vector<16x128xf32>
    %275 = arith.addf %273, %274 : vector<16x128xf32>
    %276 = arith.mulf %272, %272 : vector<16x128xf32>
    %277 = arith.addf %275, %276 : vector<16x128xf32>
    %cst_90 = arith.constant -5.000000e-03 : f32
    %278 = vector.broadcast %cst_90 : f32 to vector<16x128xf32>
    %279 = arith.mulf %277, %278 : vector<16x128xf32>
    %280 = math.exp %279 : vector<16x128xf32>
    %281 = arith.subf %267, %106 : vector<16x128xf32>
    %282 = math.absf %281 : vector<16x128xf32>
    %283 = arith.subf %268, %107 : vector<16x128xf32>
    %284 = math.absf %283 : vector<16x128xf32>
    %285 = arith.addf %282, %284 : vector<16x128xf32>
    %286 = arith.subf %269, %108 : vector<16x128xf32>
    %287 = math.absf %286 : vector<16x128xf32>
    %288 = arith.addf %285, %287 : vector<16x128xf32>
    %c1_i32_91 = arith.constant 1 : i32
    %289 = vector.broadcast %c1_i32_91 : i32 to vector<16x128xi32>
    %290 = arith.cmpi sge, %113, %289 : vector<16x128xi32>
    %291 = arith.andi %201, %290 : vector<16x128xi1>
    %292 = arith.mulf %280, %288 : vector<16x128xf32>
    %cst_92 = arith.constant 0.000000e+00 : f32
    %293 = vector.broadcast %cst_92 : f32 to vector<16x128xf32>
    %294 = arith.select %291, %292, %293 : vector<16x128xi1>, vector<16x128xf32>
    %cst_93 = arith.constant 5.24934381E-4 : f32
    %295 = vector.broadcast %cst_93 : f32 to vector<16x128xf32>
    %296 = arith.mulf %294, %295 : vector<16x128xf32>
    %297 = arith.addf %263, %296 : vector<16x128xf32>
    %c126_i32_94 = arith.constant 126 : i32
    %298 = tpu.dynamic_rotate %194 by %c126_i32_94 dim 1 : vector<16x128xf32>, i32 -> vector<16x128xf32>
    %c126_i32_95 = arith.constant 126 : i32
    %299 = tpu.dynamic_rotate %195 by %c126_i32_95 dim 1 : vector<16x128xf32>, i32 -> vector<16x128xf32>
    %c126_i32_96 = arith.constant 126 : i32
    %300 = tpu.dynamic_rotate %196 by %c126_i32_96 dim 1 : vector<16x128xf32>, i32 -> vector<16x128xf32>
    %c126_i32_97 = arith.constant 126 : i32
    %301 = tpu.dynamic_rotate %197 by %c126_i32_97 dim 1 : vector<16x128xf32>, i32 -> vector<16x128xf32>
    %c126_i32_98 = arith.constant 126 : i32
    %302 = tpu.dynamic_rotate %198 by %c126_i32_98 dim 1 : vector<16x128xf32>, i32 -> vector<16x128xf32>
    %c126_i32_99 = arith.constant 126 : i32
    %303 = tpu.dynamic_rotate %199 by %c126_i32_99 dim 1 : vector<16x128xf32>, i32 -> vector<16x128xf32>
    %304 = arith.subf %298, %109 : vector<16x128xf32>
    %305 = arith.subf %299, %110 : vector<16x128xf32>
    %306 = arith.subf %300, %111 : vector<16x128xf32>
    %307 = arith.mulf %304, %304 : vector<16x128xf32>
    %308 = arith.mulf %305, %305 : vector<16x128xf32>
    %309 = arith.addf %307, %308 : vector<16x128xf32>
    %310 = arith.mulf %306, %306 : vector<16x128xf32>
    %311 = arith.addf %309, %310 : vector<16x128xf32>
    %cst_100 = arith.constant -5.000000e-03 : f32
    %312 = vector.broadcast %cst_100 : f32 to vector<16x128xf32>
    %313 = arith.mulf %311, %312 : vector<16x128xf32>
    %314 = math.exp %313 : vector<16x128xf32>
    %315 = arith.subf %301, %106 : vector<16x128xf32>
    %316 = math.absf %315 : vector<16x128xf32>
    %317 = arith.subf %302, %107 : vector<16x128xf32>
    %318 = math.absf %317 : vector<16x128xf32>
    %319 = arith.addf %316, %318 : vector<16x128xf32>
    %320 = arith.subf %303, %108 : vector<16x128xf32>
    %321 = math.absf %320 : vector<16x128xf32>
    %322 = arith.addf %319, %321 : vector<16x128xf32>
    %c126_i32_101 = arith.constant 126 : i32
    %323 = vector.broadcast %c126_i32_101 : i32 to vector<16x128xi32>
    %324 = arith.cmpi slt, %113, %323 : vector<16x128xi32>
    %325 = arith.andi %201, %324 : vector<16x128xi1>
    %326 = arith.mulf %314, %322 : vector<16x128xf32>
    %cst_102 = arith.constant 0.000000e+00 : f32
    %327 = vector.broadcast %cst_102 : f32 to vector<16x128xf32>
    %328 = arith.select %325, %326, %327 : vector<16x128xi1>, vector<16x128xf32>
    %cst_103 = arith.constant 5.29100536E-4 : f32
    %329 = vector.broadcast %cst_103 : f32 to vector<16x128xf32>
    %330 = arith.mulf %328, %329 : vector<16x128xf32>
    %331 = arith.addf %297, %330 : vector<16x128xf32>
    %c2_i32_104 = arith.constant 2 : i32
    %332 = tpu.dynamic_rotate %194 by %c2_i32_104 dim 1 : vector<16x128xf32>, i32 -> vector<16x128xf32>
    %c2_i32_105 = arith.constant 2 : i32
    %333 = tpu.dynamic_rotate %195 by %c2_i32_105 dim 1 : vector<16x128xf32>, i32 -> vector<16x128xf32>
    %c2_i32_106 = arith.constant 2 : i32
    %334 = tpu.dynamic_rotate %196 by %c2_i32_106 dim 1 : vector<16x128xf32>, i32 -> vector<16x128xf32>
    %c2_i32_107 = arith.constant 2 : i32
    %335 = tpu.dynamic_rotate %197 by %c2_i32_107 dim 1 : vector<16x128xf32>, i32 -> vector<16x128xf32>
    %c2_i32_108 = arith.constant 2 : i32
    %336 = tpu.dynamic_rotate %198 by %c2_i32_108 dim 1 : vector<16x128xf32>, i32 -> vector<16x128xf32>
    %c2_i32_109 = arith.constant 2 : i32
    %337 = tpu.dynamic_rotate %199 by %c2_i32_109 dim 1 : vector<16x128xf32>, i32 -> vector<16x128xf32>
    %338 = arith.subf %332, %109 : vector<16x128xf32>
    %339 = arith.subf %333, %110 : vector<16x128xf32>
    %340 = arith.subf %334, %111 : vector<16x128xf32>
    %341 = arith.mulf %338, %338 : vector<16x128xf32>
    %342 = arith.mulf %339, %339 : vector<16x128xf32>
    %343 = arith.addf %341, %342 : vector<16x128xf32>
    %344 = arith.mulf %340, %340 : vector<16x128xf32>
    %345 = arith.addf %343, %344 : vector<16x128xf32>
    %cst_110 = arith.constant -5.000000e-03 : f32
    %346 = vector.broadcast %cst_110 : f32 to vector<16x128xf32>
    %347 = arith.mulf %345, %346 : vector<16x128xf32>
    %348 = math.exp %347 : vector<16x128xf32>
    %349 = arith.subf %335, %106 : vector<16x128xf32>
    %350 = math.absf %349 : vector<16x128xf32>
    %351 = arith.subf %336, %107 : vector<16x128xf32>
    %352 = math.absf %351 : vector<16x128xf32>
    %353 = arith.addf %350, %352 : vector<16x128xf32>
    %354 = arith.subf %337, %108 : vector<16x128xf32>
    %355 = math.absf %354 : vector<16x128xf32>
    %356 = arith.addf %353, %355 : vector<16x128xf32>
    %c2_i32_111 = arith.constant 2 : i32
    %357 = vector.broadcast %c2_i32_111 : i32 to vector<16x128xi32>
    %358 = arith.cmpi sge, %113, %357 : vector<16x128xi32>
    %359 = arith.andi %201, %358 : vector<16x128xi1>
    %360 = arith.mulf %348, %356 : vector<16x128xf32>
    %cst_112 = arith.constant 0.000000e+00 : f32
    %361 = vector.broadcast %cst_112 : f32 to vector<16x128xf32>
    %362 = arith.select %359, %360, %361 : vector<16x128xi1>, vector<16x128xf32>
    %cst_113 = arith.constant 5.29100536E-4 : f32
    %363 = vector.broadcast %cst_113 : f32 to vector<16x128xf32>
    %364 = arith.mulf %362, %363 : vector<16x128xf32>
    %365 = arith.addf %331, %364 : vector<16x128xf32>
    %c14_i32 = arith.constant 14 : i32
    %366 = tpu.dynamic_rotate %109 by %c14_i32 dim 0 : vector<16x128xf32>, i32 -> vector<16x128xf32>
    %c14_i32_114 = arith.constant 14 : i32
    %367 = tpu.dynamic_rotate %110 by %c14_i32_114 dim 0 : vector<16x128xf32>, i32 -> vector<16x128xf32>
    %c14_i32_115 = arith.constant 14 : i32
    %368 = tpu.dynamic_rotate %111 by %c14_i32_115 dim 0 : vector<16x128xf32>, i32 -> vector<16x128xf32>
    %c14_i32_116 = arith.constant 14 : i32
    %369 = tpu.dynamic_rotate %106 by %c14_i32_116 dim 0 : vector<16x128xf32>, i32 -> vector<16x128xf32>
    %c14_i32_117 = arith.constant 14 : i32
    %370 = tpu.dynamic_rotate %107 by %c14_i32_117 dim 0 : vector<16x128xf32>, i32 -> vector<16x128xf32>
    %c14_i32_118 = arith.constant 14 : i32
    %371 = tpu.dynamic_rotate %108 by %c14_i32_118 dim 0 : vector<16x128xf32>, i32 -> vector<16x128xf32>
    %c14_i32_119 = arith.constant 14 : i32
    %372 = vector.broadcast %c14_i32_119 : i32 to vector<16x128xi32>
    %373 = arith.cmpi slt, %112, %372 : vector<16x128xi32>
    %374 = arith.subf %366, %109 : vector<16x128xf32>
    %375 = arith.subf %367, %110 : vector<16x128xf32>
    %376 = arith.subf %368, %111 : vector<16x128xf32>
    %377 = arith.mulf %374, %374 : vector<16x128xf32>
    %378 = arith.mulf %375, %375 : vector<16x128xf32>
    %379 = arith.addf %377, %378 : vector<16x128xf32>
    %380 = arith.mulf %376, %376 : vector<16x128xf32>
    %381 = arith.addf %379, %380 : vector<16x128xf32>
    %cst_120 = arith.constant -5.000000e-03 : f32
    %382 = vector.broadcast %cst_120 : f32 to vector<16x128xf32>
    %383 = arith.mulf %381, %382 : vector<16x128xf32>
    %384 = math.exp %383 : vector<16x128xf32>
    %385 = arith.subf %369, %106 : vector<16x128xf32>
    %386 = math.absf %385 : vector<16x128xf32>
    %387 = arith.subf %370, %107 : vector<16x128xf32>
    %388 = math.absf %387 : vector<16x128xf32>
    %389 = arith.addf %386, %388 : vector<16x128xf32>
    %390 = arith.subf %371, %108 : vector<16x128xf32>
    %391 = math.absf %390 : vector<16x128xf32>
    %392 = arith.addf %389, %391 : vector<16x128xf32>
    %c128_i32_121 = arith.constant 128 : i32
    %393 = vector.broadcast %c128_i32_121 : i32 to vector<16x128xi32>
    %394 = arith.cmpi slt, %113, %393 : vector<16x128xi32>
    %395 = arith.andi %373, %394 : vector<16x128xi1>
    %396 = arith.mulf %384, %392 : vector<16x128xf32>
    %cst_122 = arith.constant 0.000000e+00 : f32
    %397 = vector.broadcast %cst_122 : f32 to vector<16x128xf32>
    %398 = arith.select %395, %396, %397 : vector<16x128xi1>, vector<16x128xf32>
    %cst_123 = arith.constant 5.58035739E-4 : f32
    %399 = vector.broadcast %cst_123 : f32 to vector<16x128xf32>
    %400 = arith.mulf %398, %399 : vector<16x128xf32>
    %401 = arith.addf %365, %400 : vector<16x128xf32>
    %c127_i32_124 = arith.constant 127 : i32
    %402 = tpu.dynamic_rotate %366 by %c127_i32_124 dim 1 : vector<16x128xf32>, i32 -> vector<16x128xf32>
    %c127_i32_125 = arith.constant 127 : i32
    %403 = tpu.dynamic_rotate %367 by %c127_i32_125 dim 1 : vector<16x128xf32>, i32 -> vector<16x128xf32>
    %c127_i32_126 = arith.constant 127 : i32
    %404 = tpu.dynamic_rotate %368 by %c127_i32_126 dim 1 : vector<16x128xf32>, i32 -> vector<16x128xf32>
    %c127_i32_127 = arith.constant 127 : i32
    %405 = tpu.dynamic_rotate %369 by %c127_i32_127 dim 1 : vector<16x128xf32>, i32 -> vector<16x128xf32>
    %c127_i32_128 = arith.constant 127 : i32
    %406 = tpu.dynamic_rotate %370 by %c127_i32_128 dim 1 : vector<16x128xf32>, i32 -> vector<16x128xf32>
    %c127_i32_129 = arith.constant 127 : i32
    %407 = tpu.dynamic_rotate %371 by %c127_i32_129 dim 1 : vector<16x128xf32>, i32 -> vector<16x128xf32>
    %408 = arith.subf %402, %109 : vector<16x128xf32>
    %409 = arith.subf %403, %110 : vector<16x128xf32>
    %410 = arith.subf %404, %111 : vector<16x128xf32>
    %411 = arith.mulf %408, %408 : vector<16x128xf32>
    %412 = arith.mulf %409, %409 : vector<16x128xf32>
    %413 = arith.addf %411, %412 : vector<16x128xf32>
    %414 = arith.mulf %410, %410 : vector<16x128xf32>
    %415 = arith.addf %413, %414 : vector<16x128xf32>
    %cst_130 = arith.constant -5.000000e-03 : f32
    %416 = vector.broadcast %cst_130 : f32 to vector<16x128xf32>
    %417 = arith.mulf %415, %416 : vector<16x128xf32>
    %418 = math.exp %417 : vector<16x128xf32>
    %419 = arith.subf %405, %106 : vector<16x128xf32>
    %420 = math.absf %419 : vector<16x128xf32>
    %421 = arith.subf %406, %107 : vector<16x128xf32>
    %422 = math.absf %421 : vector<16x128xf32>
    %423 = arith.addf %420, %422 : vector<16x128xf32>
    %424 = arith.subf %407, %108 : vector<16x128xf32>
    %425 = math.absf %424 : vector<16x128xf32>
    %426 = arith.addf %423, %425 : vector<16x128xf32>
    %c127_i32_131 = arith.constant 127 : i32
    %427 = vector.broadcast %c127_i32_131 : i32 to vector<16x128xi32>
    %428 = arith.cmpi slt, %113, %427 : vector<16x128xi32>
    %429 = arith.andi %373, %428 : vector<16x128xi1>
    %430 = arith.mulf %418, %426 : vector<16x128xf32>
    %cst_132 = arith.constant 0.000000e+00 : f32
    %431 = vector.broadcast %cst_132 : f32 to vector<16x128xf32>
    %432 = arith.select %429, %430, %431 : vector<16x128xi1>, vector<16x128xf32>
    %cst_133 = arith.constant 5.62429719E-4 : f32
    %433 = vector.broadcast %cst_133 : f32 to vector<16x128xf32>
    %434 = arith.mulf %432, %433 : vector<16x128xf32>
    %435 = arith.addf %401, %434 : vector<16x128xf32>
    %c1_i32_134 = arith.constant 1 : i32
    %436 = tpu.dynamic_rotate %366 by %c1_i32_134 dim 1 : vector<16x128xf32>, i32 -> vector<16x128xf32>
    %c1_i32_135 = arith.constant 1 : i32
    %437 = tpu.dynamic_rotate %367 by %c1_i32_135 dim 1 : vector<16x128xf32>, i32 -> vector<16x128xf32>
    %c1_i32_136 = arith.constant 1 : i32
    %438 = tpu.dynamic_rotate %368 by %c1_i32_136 dim 1 : vector<16x128xf32>, i32 -> vector<16x128xf32>
    %c1_i32_137 = arith.constant 1 : i32
    %439 = tpu.dynamic_rotate %369 by %c1_i32_137 dim 1 : vector<16x128xf32>, i32 -> vector<16x128xf32>
    %c1_i32_138 = arith.constant 1 : i32
    %440 = tpu.dynamic_rotate %370 by %c1_i32_138 dim 1 : vector<16x128xf32>, i32 -> vector<16x128xf32>
    %c1_i32_139 = arith.constant 1 : i32
    %441 = tpu.dynamic_rotate %371 by %c1_i32_139 dim 1 : vector<16x128xf32>, i32 -> vector<16x128xf32>
    %442 = arith.subf %436, %109 : vector<16x128xf32>
    %443 = arith.subf %437, %110 : vector<16x128xf32>
    %444 = arith.subf %438, %111 : vector<16x128xf32>
    %445 = arith.mulf %442, %442 : vector<16x128xf32>
    %446 = arith.mulf %443, %443 : vector<16x128xf32>
    %447 = arith.addf %445, %446 : vector<16x128xf32>
    %448 = arith.mulf %444, %444 : vector<16x128xf32>
    %449 = arith.addf %447, %448 : vector<16x128xf32>
    %cst_140 = arith.constant -5.000000e-03 : f32
    %450 = vector.broadcast %cst_140 : f32 to vector<16x128xf32>
    %451 = arith.mulf %449, %450 : vector<16x128xf32>
    %452 = math.exp %451 : vector<16x128xf32>
    %453 = arith.subf %439, %106 : vector<16x128xf32>
    %454 = math.absf %453 : vector<16x128xf32>
    %455 = arith.subf %440, %107 : vector<16x128xf32>
    %456 = math.absf %455 : vector<16x128xf32>
    %457 = arith.addf %454, %456 : vector<16x128xf32>
    %458 = arith.subf %441, %108 : vector<16x128xf32>
    %459 = math.absf %458 : vector<16x128xf32>
    %460 = arith.addf %457, %459 : vector<16x128xf32>
    %c1_i32_141 = arith.constant 1 : i32
    %461 = vector.broadcast %c1_i32_141 : i32 to vector<16x128xi32>
    %462 = arith.cmpi sge, %113, %461 : vector<16x128xi32>
    %463 = arith.andi %373, %462 : vector<16x128xi1>
    %464 = arith.mulf %452, %460 : vector<16x128xf32>
    %cst_142 = arith.constant 0.000000e+00 : f32
    %465 = vector.broadcast %cst_142 : f32 to vector<16x128xf32>
    %466 = arith.select %463, %464, %465 : vector<16x128xi1>, vector<16x128xf32>
    %cst_143 = arith.constant 5.62429719E-4 : f32
    %467 = vector.broadcast %cst_143 : f32 to vector<16x128xf32>
    %468 = arith.mulf %466, %467 : vector<16x128xf32>
    %469 = arith.addf %435, %468 : vector<16x128xf32>
    %c126_i32_144 = arith.constant 126 : i32
    %470 = tpu.dynamic_rotate %366 by %c126_i32_144 dim 1 : vector<16x128xf32>, i32 -> vector<16x128xf32>
    %c126_i32_145 = arith.constant 126 : i32
    %471 = tpu.dynamic_rotate %367 by %c126_i32_145 dim 1 : vector<16x128xf32>, i32 -> vector<16x128xf32>
    %c126_i32_146 = arith.constant 126 : i32
    %472 = tpu.dynamic_rotate %368 by %c126_i32_146 dim 1 : vector<16x128xf32>, i32 -> vector<16x128xf32>
    %c126_i32_147 = arith.constant 126 : i32
    %473 = tpu.dynamic_rotate %369 by %c126_i32_147 dim 1 : vector<16x128xf32>, i32 -> vector<16x128xf32>
    %c126_i32_148 = arith.constant 126 : i32
    %474 = tpu.dynamic_rotate %370 by %c126_i32_148 dim 1 : vector<16x128xf32>, i32 -> vector<16x128xf32>
    %c126_i32_149 = arith.constant 126 : i32
    %475 = tpu.dynamic_rotate %371 by %c126_i32_149 dim 1 : vector<16x128xf32>, i32 -> vector<16x128xf32>
    %476 = arith.subf %470, %109 : vector<16x128xf32>
    %477 = arith.subf %471, %110 : vector<16x128xf32>
    %478 = arith.subf %472, %111 : vector<16x128xf32>
    %479 = arith.mulf %476, %476 : vector<16x128xf32>
    %480 = arith.mulf %477, %477 : vector<16x128xf32>
    %481 = arith.addf %479, %480 : vector<16x128xf32>
    %482 = arith.mulf %478, %478 : vector<16x128xf32>
    %483 = arith.addf %481, %482 : vector<16x128xf32>
    %cst_150 = arith.constant -5.000000e-03 : f32
    %484 = vector.broadcast %cst_150 : f32 to vector<16x128xf32>
    %485 = arith.mulf %483, %484 : vector<16x128xf32>
    %486 = math.exp %485 : vector<16x128xf32>
    %487 = arith.subf %473, %106 : vector<16x128xf32>
    %488 = math.absf %487 : vector<16x128xf32>
    %489 = arith.subf %474, %107 : vector<16x128xf32>
    %490 = math.absf %489 : vector<16x128xf32>
    %491 = arith.addf %488, %490 : vector<16x128xf32>
    %492 = arith.subf %475, %108 : vector<16x128xf32>
    %493 = math.absf %492 : vector<16x128xf32>
    %494 = arith.addf %491, %493 : vector<16x128xf32>
    %c126_i32_151 = arith.constant 126 : i32
    %495 = vector.broadcast %c126_i32_151 : i32 to vector<16x128xi32>
    %496 = arith.cmpi slt, %113, %495 : vector<16x128xi32>
    %497 = arith.andi %373, %496 : vector<16x128xi1>
    %498 = arith.mulf %486, %494 : vector<16x128xf32>
    %cst_152 = arith.constant 0.000000e+00 : f32
    %499 = vector.broadcast %cst_152 : f32 to vector<16x128xf32>
    %500 = arith.select %497, %498, %499 : vector<16x128xi1>, vector<16x128xf32>
    %cst_153 = arith.constant 5.66893432E-4 : f32
    %501 = vector.broadcast %cst_153 : f32 to vector<16x128xf32>
    %502 = arith.mulf %500, %501 : vector<16x128xf32>
    %503 = arith.addf %469, %502 : vector<16x128xf32>
    %c2_i32_154 = arith.constant 2 : i32
    %504 = tpu.dynamic_rotate %366 by %c2_i32_154 dim 1 : vector<16x128xf32>, i32 -> vector<16x128xf32>
    %c2_i32_155 = arith.constant 2 : i32
    %505 = tpu.dynamic_rotate %367 by %c2_i32_155 dim 1 : vector<16x128xf32>, i32 -> vector<16x128xf32>
    %c2_i32_156 = arith.constant 2 : i32
    %506 = tpu.dynamic_rotate %368 by %c2_i32_156 dim 1 : vector<16x128xf32>, i32 -> vector<16x128xf32>
    %c2_i32_157 = arith.constant 2 : i32
    %507 = tpu.dynamic_rotate %369 by %c2_i32_157 dim 1 : vector<16x128xf32>, i32 -> vector<16x128xf32>
    %c2_i32_158 = arith.constant 2 : i32
    %508 = tpu.dynamic_rotate %370 by %c2_i32_158 dim 1 : vector<16x128xf32>, i32 -> vector<16x128xf32>
    %c2_i32_159 = arith.constant 2 : i32
    %509 = tpu.dynamic_rotate %371 by %c2_i32_159 dim 1 : vector<16x128xf32>, i32 -> vector<16x128xf32>
    %510 = arith.subf %504, %109 : vector<16x128xf32>
    %511 = arith.subf %505, %110 : vector<16x128xf32>
    %512 = arith.subf %506, %111 : vector<16x128xf32>
    %513 = arith.mulf %510, %510 : vector<16x128xf32>
    %514 = arith.mulf %511, %511 : vector<16x128xf32>
    %515 = arith.addf %513, %514 : vector<16x128xf32>
    %516 = arith.mulf %512, %512 : vector<16x128xf32>
    %517 = arith.addf %515, %516 : vector<16x128xf32>
    %cst_160 = arith.constant -5.000000e-03 : f32
    %518 = vector.broadcast %cst_160 : f32 to vector<16x128xf32>
    %519 = arith.mulf %517, %518 : vector<16x128xf32>
    %520 = math.exp %519 : vector<16x128xf32>
    %521 = arith.subf %507, %106 : vector<16x128xf32>
    %522 = math.absf %521 : vector<16x128xf32>
    %523 = arith.subf %508, %107 : vector<16x128xf32>
    %524 = math.absf %523 : vector<16x128xf32>
    %525 = arith.addf %522, %524 : vector<16x128xf32>
    %526 = arith.subf %509, %108 : vector<16x128xf32>
    %527 = math.absf %526 : vector<16x128xf32>
    %528 = arith.addf %525, %527 : vector<16x128xf32>
    %c2_i32_161 = arith.constant 2 : i32
    %529 = vector.broadcast %c2_i32_161 : i32 to vector<16x128xi32>
    %530 = arith.cmpi sge, %113, %529 : vector<16x128xi32>
    %531 = arith.andi %373, %530 : vector<16x128xi1>
    %532 = arith.mulf %520, %528 : vector<16x128xf32>
    %cst_162 = arith.constant 0.000000e+00 : f32
    %533 = vector.broadcast %cst_162 : f32 to vector<16x128xf32>
    %534 = arith.select %531, %532, %533 : vector<16x128xi1>, vector<16x128xf32>
    %cst_163 = arith.constant 5.66893432E-4 : f32
    %535 = vector.broadcast %cst_163 : f32 to vector<16x128xf32>
    %536 = arith.mulf %534, %535 : vector<16x128xf32>
    %537 = arith.addf %503, %536 : vector<16x128xf32>
    %538 = vector.shape_cast %537 : vector<16x128xf32> to vector<1x16x128xf32>
    %cst_164 = arith.constant dense<0.000000e+00> : vector<1xf32>
    %539 = vector.multi_reduction <add>, %538, %cst_164 [1, 2] : vector<1x16x128xf32> to vector<1xf32>
    %540 = vector.shape_cast %539 : vector<1xf32> to vector<1x1x1xf32>
    %541 = vector.extract %540[0, 0, 0] : f32 from vector<1x1x1xf32>
    %cst_165 = arith.constant 1.000000e+00 : f32
    %542 = vector.broadcast %cst_165 : f32 to vector<1x8x128xf32>
    %543 = vector.broadcast %541 : f32 to vector<1x8x128xf32>
    %544 = arith.mulf %543, %542 : vector<1x8x128xf32>
    %c0_166 = arith.constant 0 : index
    %c0_167 = arith.constant 0 : index
    %c0_168 = arith.constant 0 : index
    %545 = vector.load %arg3[%c0_166, %c0_167, %c0_168] : memref<1x8x128xf32, #tpu.memory_space<vmem>>, vector<1x8x128xf32>
    tpu.vector_store %arg3[%c0_166, %c0_167, %c0_168], %544 {strides = array<i32>} : memref<1x8x128xf32, #tpu.memory_space<vmem>>, vector<1x8x128xf32>,
    return
  }
  func.func @transform_0(%arg0: i32) -> (i32, i32, i32, i32) {
    %c0_i32 = arith.constant 0 : i32
    %c0_i32_0 = arith.constant 0 : i32
    %c0_i32_1 = arith.constant 0 : i32
    %c0_i32_2 = arith.constant 0 : i32
    return %arg0, %c0_i32, %c0_i32_0, %c0_i32_1 : i32, i32, i32, i32
  }
  func.func @transform_1(%arg0: i32) -> (i32, i32, i32, i32) {
    %c0_i32 = arith.constant 0 : i32
    %c0_i32_0 = arith.constant 0 : i32
    %c0_i32_1 = arith.constant 0 : i32
    %c0_i32_2 = arith.constant 0 : i32
    return %arg0, %c0_i32, %c0_i32_0, %c0_i32_1 : i32, i32, i32, i32
  }
  func.func @transform_2(%arg0: i32) -> (i32, i32, i32) {
    %c0_i32 = arith.constant 0 : i32
    %c0_i32_0 = arith.constant 0 : i32
    %c0_i32_1 = arith.constant 0 : i32
    return %arg0, %c0_i32, %c0_i32_0 : i32, i32, i32
  }
}

</mosaic_0001>

<bundles_post_ra>
// kernel: loss_function.1
= control target key start
LH: loop header
LB: loop body
LE: loop exit
PB: predicated region body
PF: predicated region fallthrough
CT: control target
= control target key end

     0   :  { %7 = vsyncpa [#allocation3], 0  ;;  %s3373_s0 = inlined_call_operand.hbm [shape: f32[2,3,16,128], index: 0, kind: input, shape index: {}]   ;;  %s3374_s1 = inlined_call_operand.hbm [shape: f32[2,3,16,128], index: 1, kind: input, shape index: {}]   ;;  %s3375_s2 = inlined_call_operand.vmem [shape: f32[2,8,128], index: 2, kind: output, shape index: {}]  }
   0x1   :  { %9 = vsyncpa [#allocation3 + $0x1], 0 }
   0x2   :  { %10 = vsyncpa [#allocation5], 0 }
   0x3   :  { %12 = vsyncpa [#allocation5 + $0x1], 0  ;;  %s1860_s9 = smov 0   ;;  %s1862_s10 = smov 0  }
   0x4   :  { %s1864_s11 = smov 0   ;;  %s1866_s12 = smov 0  }
   0x5 LB: > { %s1879_s13 = sadd.s32 4294967295, %s1831_s12   ;;  %s1882_s14 = sadd.s32 1, %s1831_s12   ;;  %s1831_s12 = sphi %s1866_s12, %s3488_s12   ;;  %s1827_s11 = sphi %s1864_s11, %s3487_s11   ;;  %s1823_s10 = sphi %s1862_s10, %s3486_s10   ;;  %s1819_s9 = sphi %s1860_s9, %s3485_s9  }
   0x6   : > { %s22_s15 = ssub.s32 %s1831_s12, %s1882_s14  ;;  %s25_s16 = sadd.s32 1, %s1827_s11 }
   0x7   : > { %p23_p0 = scmp.eq.s32.totalorder %s22_s15, 0  ;;  %p32_p1 = scmp.ne.s32.totalorder %s1827_s11, %s1823_s10 }
   0x8   : > { %p33_p2 = scmp.eq.s32.totalorder %s1831_s12, 0  ;;  %p38_p3 = scmp.ne.s32.totalorder %s1823_s10, %s1819_s9 }
   0x9   : > { %s1892_s17 = scalar_select %p23_p0, %s1827_s11, %s25_s16  }
   0xa   : > { %p34_p4 = por %p33_p2, %p32_p1  ;;  %p39_p5 = scmp.eq.s32.totalorder %s1879_s13, 0 }
   0xb   : > { %p1628_p6 = scmp.lt.s32.totalorder %s1831_s12, 2  ;;  %s1901_s19 = sand.u32 1, %s1827_s11  }
   0xc   : > { %p1896_p7 = por %p39_p5, %p38_p3  ;;  %s1598_s20 = smul.u32 48, %s1901_s19 }
   0xd   : > { %s1599_s21 = smul.u32 768, %s1831_s12  ;;  %p1905_p8 = pnand %p1628_p6, %p34_p4 }
   0xe   : > { %s3407_s18 = scalar_select %p1896_p7, 1, 0 }
   0xf   : > { %s1914_s25 = scalar_lea.hbm %s3373_s0, %s1599_s21  ;;  %s118_s26 = scalar_lea.vmem [#allocation2], %s1598_s20 }
  0x10   : > { %s125_s27 = sshll.u32 %s118_s26, 4  ;;  %s115_s28 = scalar_lea.sflag [#allocation3], %s1901_s19  ;;  %s1918_s27 = int_to_ptr.vmem [resolvable:$true] %s125_s27 }
  0x11   : > { %s1733_s29 = scalar_lea.hbm %s1914_s25, 768  ;;  %p1735_p11 = pneg %p1905_p8 }
  0x12   : > { %p1734_p10 = scmp.ne.s32.totalorder %s1914_s25, %s1733_s29  ;;  %s1738_s4 = scalar_lea.hbm %s3373_s0, 1536 }
  0x13   : > { %p1739_p0 = scmp.lt.u32.totalorder %s1914_s25, %s3373_s0  ;;  %p1740_p1 = scmp.lt.u32.totalorder %s1738_s4, %s1733_s29 }
  0x14   : > { %p1736_p12 = pnand %p1735_p11, %p1734_p10  ;;  %p1742_p3 = scmp.lt.u32.totalorder %s1733_s29, %s1914_s25 }
  0x15   : > { %p1741_p2 = por %p1740_p1, %p1739_p0 }
  0x16   : > { %p1737_p13 = pneg %p1736_p12 }
  0x17   : > { %p1743_p4 = por %p1742_p3, %p1741_p2 }
  0x19   : > { %p1744_p5 = pnand %p1743_p4, %p1737_p13 }
  0x1b   : > { %1747 = shalt.err (!%p1744_p5)
}
  0x1c   : > { %s1748_s7 = scalar_lea.vmem %s1918_s27, 768  ;;  %s1833_s8 = smov [#allocation2]  }
  0x1d   : > { %p1749_p6 = scmp.ne.s32.totalorder %s1918_s27, %s1748_s7  ;;  %s1753_s9 = sshll.u32 %s1833_s8, 4  ;;  %s1754_s9 = int_to_ptr.vmem [resolvable:$false] %s1753_s9 }
  0x1e   : > { %s1755_s15 = scalar_lea.vmem %s1754_s9, 1536  ;;  %p1756_p9 = scmp.lt.s32.totalorder %s1918_s27, %s1754_s9 }
  0x1f   : > { %p1751_p10 = pnand %p1749_p6, %p1735_p11  ;;  %p1757_p0 = scmp.lt.s32.totalorder %s1755_s15, %s1748_s7 }
  0x21   : > { %p1752_p12 = pneg %p1751_p10  ;;  %p1758_p1 = por %p1757_p0, %p1756_p9 }
  0x23   : > { %p1759_p2 = pnand %p1758_p1, %p1752_p12 }
  0x25   : > { %1762 = shalt.err (!%p1759_p2)
}
  0x26   : > { %s1834_s16 = smov 128   ;;  %s1835_s23 = smov 8  }
  0x27   : > { %1624 = dma.hbm_to_vmem [thread:$0]  (!%p1905_p8), %s1914_s25, 768, %s1918_s27, %s115_s28, %s1834_s16, %s1834_s16, %s1835_s23  }
  0x28   : > { %p154_p9 = scmp.lt.s32.totalorder %s1831_s12, 3  ;;  %s1958_s29 = scalar_lea.hbm %s3374_s1, %s1599_s21 }
  0x29   : > { %p3409_p13 = scmp.ge.s32.totalorder %s1831_s12, 1  ;;  %s139_s3 = scalar_lea.vmem [#allocation4], %s1598_s20 }
  0x2a   : > { %s146_s4 = sshll.u32 %s139_s3, 4  ;;  %s136_s25 = scalar_lea.sflag [#allocation5], %s1901_s19  ;;  %s1968_s4 = int_to_ptr.vmem [resolvable:$true] %s146_s4 }
  0x2b   : > { %p1962_p3 = pnand %p3409_p13, %p154_p9  ;;  %s1763_s27 = scalar_lea.hbm %s1958_s29, 768 }
  0x2c   : > { %p1764_p4 = scmp.ne.s32.totalorder %s1958_s29, %s1763_s27  ;;  %s1768_s28 = scalar_lea.hbm %s3374_s1, 1536 }
  0x2d   : > { %p1769_p10 = scmp.lt.u32.totalorder %s1958_s29, %s3374_s1  ;;  %p1770_p12 = scmp.lt.u32.totalorder %s1768_s28, %s1763_s27 }
  0x2e   : > { %p1766_p5 = pnand %p1764_p4, %p1735_p11  ;;  %p1772_p1 = scmp.lt.u32.totalorder %s1763_s27, %s1958_s29 }
  0x2f   : > { %p1771_p0 = por %p1770_p12, %p1769_p10 }
  0x30   : > { %p1767_p6 = pneg %p1766_p5 }
  0x31   : > { %p1773_p2 = por %p1772_p1, %p1771_p0 }
  0x33   : > { %p1774_p9 = pnand %p1773_p2, %p1767_p6 }
  0x35   : > { %1777 = shalt.err (!%p1774_p9)
}
  0x36   : > { %s1778_s20 = scalar_lea.vmem %s1968_s4, 768  ;;  %s1836_s7 = smov [#allocation4]  }
  0x37   : > { %p1779_p13 = scmp.ne.s32.totalorder %s1968_s4, %s1778_s20  ;;  %s1783_s8 = sshll.u32 %s1836_s7, 4  ;;  %s1784_s8 = int_to_ptr.vmem [resolvable:$false] %s1783_s8 }
  0x38   : > { %s1785_s9 = scalar_lea.vmem %s1784_s8, 1536  ;;  %p1786_p7 = scmp.lt.s32.totalorder %s1968_s4, %s1784_s8 }
  0x39   : > { %p1781_p4 = pnand %p1779_p13, %p1735_p11  ;;  %p1787_p10 = scmp.lt.s32.totalorder %s1785_s9, %s1778_s20 }
  0x3b   : > { %p1782_p5 = pneg %p1781_p4  ;;  %p1788_p12 = por %p1787_p10, %p1786_p7 }
  0x3d   : > { %p1789_p0 = pnand %p1788_p12, %p1782_p5 }
  0x3f   : > { %1792 = shalt.err (!%p1789_p0)
}
  0x40   : > { %1627 = dma.hbm_to_vmem [thread:$0]  (!%p1905_p8), %s1958_s29, 768, %s1968_s4, %s136_s25, %s1834_s16, %s1834_s16, %s1835_s23  }
  0x41   : > { %158 = sbr.rel (%p1962_p3) target bundleno = 802 (0x322), region = 28 }
  0x48   : > { %s160_s15 = sand.u32 1, %s1823_s10   ;;  %p3411_p7 = scmp.ne.s32.totalorder %s3407_s18, 0 }
  0x49   : > { %s1602_s24 = smul.u32 48, %s160_s15  ;;  %s161_s26 = scalar_lea.sflag [#allocation3], %s160_s15 }
  0x4b   : > { %s2002_s3 = scalar_lea.vmem [#allocation2], %s1602_s24 }
  0x4c   : > { %1810 = dma.done.wait (%p3411_p7), %s161_s26, 768  }
  0x4d   : > { %1812 = vsyncadd (%p3411_p7), %s161_s26, 4294966528  ;;  %s170_s19 = scalar_lea.sflag [#allocation5], %s160_s15  ;;  %s2008_s22 = scalar_lea.vmem [#allocation4], %s1602_s24 }
  0x4e   : > { %1814 = dma.done.wait (%p3411_p7), %s170_s19, 768  }
  0x4f   : > { %1816 = vsyncadd (%p3411_p7), %s170_s19, 4294966528  ;;  %v2015_v0 = vld [vmem:[%s2002_s3 + $0x10] sm:$0xff]  ;;  %v2018_v1 = vld [vmem:[%s2002_s3] sm:$0xff]  ;;  %s1837_s16 = smov 2   ;;  %s1838_s18 = smov 1   ;;  %v214_v6 = vlaneseq }
  0x50   : > { %3412 = vst [vmem:[#allocation8_spill] sm:$0xff] %v2015_v0  ;;  %3413 = vst [vmem:[#allocation9_spill] sm:$0xff] %v2018_v1  ;;  %365 = vrot.lane.b32.xlu1 %v2015_v0, %s1837_s16  ;;  %361 = vrot.lane.b32.xlu0 %v2018_v1, %s1837_s16  ;;  %v2025_v2 = vld [vmem:[%s2002_s3 + $0x18] sm:$0xff]  ;;  %v2028_v3 = vld [vmem:[%s2002_s3 + $0x8] sm:$0xff]  ;;  %s1839_s23 = smov 127   ;;  %s1840_s29 = smov 126  }
  0x51   : > { %3414 = vst [vmem:[#allocation10_spill] sm:$0xff] %v2025_v2  ;;  %3415 = vst [vmem:[#allocation11_spill] sm:$0xff] %v2028_v3  ;;  %v2035_v4 = vld [vmem:[%s2002_s3 + $0x20] sm:$0xff]  ;;  %v2038_v5 = vld [vmem:[%s2002_s3 + $0x28] sm:$0xff]  ;;  %v2086_v9 = vshrl.u32 %v214_v6, 7  ;;  %v2109_v15 = vand.u32 127, %v214_v6 }
  0x52   : > { %v2081_v7 = vld [vmem:[%s2008_s22] sm:$0xff]  ;;  %v2084_v8 = vld [vmem:[%s2008_s22 + $0x8] sm:$0xff]  ;;  %v2093_v10 = vld [vmem:[%s2008_s22 + $0x10] sm:$0xff]  ;;  %p198_p8 = scmp.lt.s32.totalorder %s1879_s13, 1 }
  0x53   : > { %3416 = vst [vmem:[#allocation12_spill] sm:$0xff] %v2081_v7  ;;  %3417 = vst [vmem:[#allocation13_spill] sm:$0xff] %v2084_v8  ;;  %v2096_v11 = vld [vmem:[%s2008_s22 + $0x18] sm:$0xff]  ;;  %v218_v12 = vadd.s32 24, %v2086_v9  ;;  %v2104_v13 = vld [vmem:[%s2008_s22 + $0x28] sm:$0xff]  ;;  %v2116_v17 = vadd.s32 8, %v2086_v9 }
  0x54   : > { %367 = vrot.lane.b32.xlu1 %v2025_v2, %s1837_s16  ;;  %363 = vrot.lane.b32.xlu0 %v2028_v3, %s1837_s16  ;;  %3418 = vst [vmem:[#allocation14_spill] sm:$0xff] %v2093_v10  ;;  %3419 = vst [vmem:[#allocation15_spill] sm:$0xff] %v2096_v11  ;;  %v2107_v14 = vld [vmem:[%s2008_s22 + $0x20] sm:$0xff]  ;;  %v219_v18 = vadd.s32 32, %v2086_v9  ;;  %v220_v21 = vadd.s32 40, %v2086_v9  ;;  %v217_v27 = vadd.s32 16, %v2086_v9 }
  0x55   : > { %3420 = vst [vmem:[#allocation16_spill] sm:$0xff] %v2104_v13  ;;  %3421 = vst [vmem:[#allocation17_spill] sm:$0xff] %v2107_v14  ;;  %v226_v16 = vmul.u32 128, %v218_v12  ;;  %v224_v20 = vmul.u32 128, %v2116_v17  ;;  %s3490_s13 = smov (!%p198_p8, %s1879_s13), 1 }
  0x56   : > { %3422 = vst [vmem:[#allocation18_spill] sm:$0xff] %v2116_v17  ;;  %v227_v22 = vmul.u32 128, %v219_v18  ;;  %v228_v25 = vmul.u32 128, %v220_v21  ;;  %s1589_s30 = sshll.u32 %s3490_s13, 3 }
  0x57   : > { %v232_v19 = vadd.s32 %v226_v16, %v2109_v15  ;;  %v230_v24 = vadd.s32 %v224_v20, %v2109_v15  ;;  %v225_v32 = vmul.u32 128, %v217_v27  ;;  %v223_v37 = vmul.u32 128, %v2086_v9  ;;  %s201_s27 = scalar_lea.vmem %s3375_s2, %s1589_s30 }
  0x58   : > { %369 = vrot.lane.b32.xlu1 %v2035_v4, %s1837_s16  ;;  %371 = vrot.lane.b32.xlu0 %v2038_v5, %s1837_s16  ;;  %v233_v26 = vadd.s32 %v227_v22, %v2109_v15  ;;  %v2130_v30 = vadd.s32 %v228_v25, %v2109_v15 }
  0x59   : > { %v269_v23 = vsub.s32 0, %v232_v19  ;;  %v247_v29 = vsub.s32 0, %v230_v24  ;;  %v2138_v39 = vadd.s32 %v225_v32, %v2109_v15  ;;  %v2145_v43 = vadd.s32 %v223_v37, %v2109_v15 }
  0x5a   : > { %v280_v31 = vsub.s32 0, %v233_v26  ;;  %v291_v36 = vsub.s32 0, %v2130_v30  ;;  %vm268_vm0 = vcmp.lt.s32.totalorder %v232_v19, 0  ;;  %vm246_vm1 = vcmp.lt.s32.totalorder %v230_v24, 0 }
  0x5b   : > { %v1593_v28 = vmin.u32 %v269_v23, %v232_v19  ;;  %v1591_v35 = vmin.u32 %v247_v29, %v230_v24  ;;  %v258_v46 = vsub.s32 0, %v2138_v39  ;;  %v236_v50 = vsub.s32 0, %v2145_v43 }
  0x5c   : > { %419 = vrot.lane.b32.xlu1 %v2028_v3, %s1838_s18  ;;  %417 = vrot.lane.b32.xlu0 %v2018_v1, %s1838_s18  ;;  %v1594_v38 = vmin.u32 %v280_v31, %v233_v26  ;;  %v1595_v42 = vmin.u32 %v291_v36, %v2130_v30  ;;  %vm279_vm4 = vcmp.lt.s32.totalorder %v233_v26, 0  ;;  %vm290_vm8 = vcmp.lt.s32.totalorder %v2130_v30, 0 }
  0x5d   : > { %v2132_v33 = vmul.u32.u64.low 2863311531, %v1593_v28  ;;  %v2133_v34 = vmul.u32.u64.high 2863311531, %v1593_v28, %v2132_v33  ;;  %v2140_v40 = vmul.u32.u64.low 2863311531, %v1591_v35  ;;  %v2141_v41 = vmul.u32.u64.high 2863311531, %v1591_v35, %v2140_v40 }
  0x5e   : > { %v2147_v44 = vmul.u32.u64.low 2863311531, %v1594_v38  ;;  %v2148_v45 = vmul.u32.u64.high 2863311531, %v1594_v38, %v2147_v44  ;;  %v2152_v48 = vmul.u32.u64.low 2863311531, %v1595_v42  ;;  %v2153_v49 = vmul.u32.u64.high 2863311531, %v1595_v42, %v2152_v48 }
  0x5f   : > { %v274_v47 = vshrl.u32 %v2133_v34, 1  ;;  %v1592_v51 = vmin.u32 %v258_v46, %v2138_v39  ;;  %v252_v53 = vshrl.u32 %v2141_v41, 1  ;;  %v1590_v54 = vmin.u32 %v236_v50, %v2145_v43 }
  0x60   : > { %423 = vrot.lane.b32.xlu1 %v2025_v2, %s1838_s18  ;;  %421 = vrot.lane.b32.xlu0 %v2015_v0, %s1838_s18  ;;  %v285_v55 = vshrl.u32 %v2148_v45, 1  ;;  %v296_v60 = vshrl.u32 %v2153_v49, 1  ;;  %vm257_vm13 = vcmp.lt.s32.totalorder %v2138_v39, 0  ;;  %v1841_v30 = vmov -0.071  }
  0x61   : > { %v275_v52 = vmul.u32 3, %v274_v47  ;;  %v2160_v56 = vmul.u32.u64.low 2863311531, %v1592_v51  ;;  %v2161_v57 = vmul.u32.u64.high 2863311531, %v1592_v51, %v2160_v56 }
  0x62   : > { %v253_v59 = vmul.u32 3, %v252_v53  ;;  %v2164_v61 = vmul.u32.u64.low 2863311531, %v1590_v54  ;;  %v2165_v62 = vmul.u32.u64.high 2863311531, %v1590_v54, %v2164_v61  ;;  %v3394_v53 = vmov 0.0  }
  0x63   : > { %v276_v58 = vsub.s32 %v1593_v28, %v275_v52  ;;  %v286_v63 = vmul.u32 3, %v285_v55  ;;  %v297_v16 = vmul.u32 3, %v296_v60  ;;  %v263_v20 = vshrl.u32 %v2161_v57, 1 }
  0x64   : > { %425 = vrot.lane.b32.xlu1 %v2035_v4, %s1838_s18  ;;  %427 = vrot.lane.b32.xlu0 %v2038_v5, %s1838_s18  ;;  %v254_v12 = vsub.s32 %v1591_v35, %v253_v59  ;;  %v241_v25 = vshrl.u32 %v2165_v62, 1  ;;  %v3377_v60 = vmov 0.5019608   ;;  %v1844_v62 = vmov -0.368  }
  0x65   : > { %v277_v6 = vsub.s32 0, %v276_v58  ;;  %v287_v18 = vsub.s32 %v1594_v38, %v286_v63  ;;  %v298_v23 = vsub.s32 %v1595_v42, %v297_v16  ;;  %v264_v28 = vmul.u32 3, %v263_v20 }
  0x66   : > { %v255_v22 = vsub.s32 0, %v254_v12  ;;  %v242_v34 = vmul.u32 3, %v241_v25 }
  0x67   : > { %v278_v21 = vsel %vm268_vm0, %v277_v6, %v276_v58  ;;  %v288_v27 = vsub.s32 0, %v287_v18  ;;  %v299_v32 = vsub.s32 0, %v298_v23  ;;  %v265_v33 = vsub.s32 %v1592_v51, %v264_v28 }
  0x68   : > { %474 = vrot.lane.b32.xlu1 %v2028_v3, %s1839_s23  ;;  %472 = vrot.lane.b32.xlu0 %v2018_v1, %s1839_s23  ;;  %vm304_vm2 = vcmp.ne.s32.totalorder %v278_v21, 0  ;;  %vm310_vm3 = vcmp.lt.s32.totalorder %v278_v21, 0  ;;  %v322_v29 = vadd.s32 3, %v278_v21  ;;  %v256_v31 = vsel %vm246_vm1, %v255_v22, %v254_v12 }
  0x69   : > { %vm316_vm5 = vmand %vm310_vm3, %vm304_vm2  ;;  %v289_v19 = vsel %vm279_vm4, %v288_v27, %v287_v18  ;;  %vm302_vm6 = vcmp.ne.s32.totalorder %v256_v31, 0  ;;  %vm308_vm7 = vcmp.lt.s32.totalorder %v256_v31, 0  ;;  %v320_v35 = vadd.s32 3, %v256_v31 }
  0x6a   : > { %v2170_v24 = vsel %vm316_vm5, %v322_v29, %v278_v21  ;;  %vm305_vm9 = vcmp.ne.s32.totalorder %v289_v19, 0  ;;  %vm311_vm10 = vcmp.lt.s32.totalorder %v289_v19, 0  ;;  %vm314_vm11 = vmand %vm308_vm7, %vm302_vm6  ;;  %v300_v36 = vsel %vm290_vm8, %v299_v32, %v298_v23 }
  0x6b   : > { %3423 = vst [vmem:[#allocation19_spill] sm:$0xff] %v2170_v24  ;;  %v266_v37 = vsub.s32 0, %v265_v33  ;;  %v243_v26 = vsub.s32 %v1590_v54, %v242_v34  ;;  %vm340_vm12 = vcmp.eq.s32.totalorder %v2170_v24, 1  ;;  %v323_v38 = vadd.s32 3, %v289_v19  ;;  %vm317_vm14 = vmand %vm311_vm10, %vm305_vm9 }
  0x6c   : > { %478 = vrot.lane.b32.xlu1 %v2025_v2, %s1839_s23  ;;  %476 = vrot.lane.b32.xlu0 %v2015_v0, %s1839_s23  ;;  %v2174_v40 = vsel %vm314_vm11, %v320_v35, %v256_v31  ;;  %vm306_vm15 = vcmp.ne.s32.totalorder %v300_v36, 0  ;;  %vm312_vm0 = vcmp.lt.s32.totalorder %v300_v36, 0  ;;  %vm334_vm1 = vcmp.eq.s32.totalorder %v2170_v24, 0 }
  0x6d   : > { %v346_v41 = vsel %vm340_vm12, -0.291, %v1841_v30  ;;  %v267_v42 = vsel %vm257_vm13, %v266_v37, %v265_v33  ;;  %v244_v44 = vsub.s32 0, %v243_v26  ;;  %v2180_v45 = vsel %vm317_vm14, %v323_v38, %v289_v19  ;;  %vm318_vm5 = vmand %vm312_vm0, %vm306_vm15 }
  0x6e   : > { %v324_v46 = vadd.s32 3, %v300_v36  ;;  %vm235_vm2 = vcmp.lt.s32.totalorder %v2145_v43, 0  ;;  %vm396_vm3 = vcmp.eq.s32.totalorder %v2170_v24, 2  ;;  %vm338_vm4 = vcmp.eq.s32.totalorder %v2174_v40, 1 }
  0x6f   : > { %v352_v48 = vsel %vm334_vm1, 0.257, %v346_v41  ;;  %vm394_vm6 = vcmp.eq.s32.totalorder %v2174_v40, 2  ;;  %vm303_vm7 = vcmp.ne.s32.totalorder %v267_v42, 0  ;;  %vm309_vm8 = vcmp.lt.s32.totalorder %v267_v42, 0 }
  0x70   : > { %482 = vrot.lane.b32.xlu1 %v2038_v5, %s1839_s23  ;;  %480 = vrot.lane.b32.xlu0 %v2035_v4, %s1839_s23  ;;  %vm341_vm9 = vcmp.eq.s32.totalorder %v2180_v45, 1  ;;  %v245_v49 = vsel %vm235_vm2, %v244_v44, %v243_v26  ;;  %vm332_vm10 = vcmp.eq.s32.totalorder %v2174_v40, 0  ;;  %v344_v43 = vsel %vm338_vm4, -0.291, %v1841_v30  ;;  %vm315_vm11 = vmand %vm309_vm8, %vm303_vm7 }
  0x71   : > { %v2197_v50 = vsel %vm318_vm5, %v324_v46, %v300_v36  ;;  %v321_v51 = vadd.s32 3, %v267_v42  ;;  %v2200_v52 = vmul.f32 %v352_v48, %v2025_v2  ;;  %v2205_v54 = vsel %vm396_vm3, 0.439, %v3394_v53 }
  0x72   : > { %v2208_v55 = vsel %vm394_vm6, 0.439, %v3394_v53  ;;  %vm335_vm13 = vcmp.eq.s32.totalorder %v2180_v45, 0  ;;  %v347_v58 = vsel %vm341_vm9, -0.291, %v1841_v30  ;;  %vm301_vm14 = vcmp.ne.s32.totalorder %v245_v49, 0 }
  0x73   : > { %vm307_vm15 = vcmp.lt.s32.totalorder %v245_v49, 0  ;;  %v350_v59 = vsel %vm332_vm10, 0.257, %v344_v43  ;;  %v2223_v61 = vsel %vm332_vm10, 0.0627451, %v3377_v60  ;;  %vm397_vm0 = vcmp.eq.s32.totalorder %v2180_v45, 2 }
  0x74   : > { %530 = vrot.lane.b32.xlu1 %v2028_v3, %s1840_s29  ;;  %528 = vrot.lane.b32.xlu0 %v2018_v1, %s1840_s29  ;;  %vm342_vm2 = vcmp.eq.s32.totalorder %v2197_v50, 1  ;;  %v449_v63 = vsel %vm338_vm4, -0.148, %v1844_v62  ;;  %v2229_v6 = vsel %vm315_vm11, %v321_v51, %v267_v42  ;;  %v451_v12 = vsel %vm340_vm12, -0.148, %v1844_v62  ;;  %vm313_vm7 = vmand %vm307_vm15, %vm301_vm14 }
  0x75   : > { %v319_v16 = vadd.s32 3, %v245_v49  ;;  %vm379_vm3 = vcmp.lt.s32.totalorder %v2086_v9, 1  ;;  %v353_v18 = vsel %vm335_vm13, 0.257, %v347_v58  ;;  %vm336_vm5 = vcmp.eq.s32.totalorder %v2197_v50, 0 }
  0x76   : > { %vm398_vm6 = vcmp.eq.s32.totalorder %v2197_v50, 2  ;;  %v452_v20 = vsel %vm341_vm9, -0.148, %v1844_v62  ;;  %v2243_v21 = vmul.f32 %v350_v59, %v2028_v3  ;;  %v348_v23 = vsel %vm342_vm2, -0.291, %v1841_v30 }
  0x77   : > { %v505_v27 = vsel %vm338_vm4, 0.439, %v3394_v53  ;;  %v509_v28 = vsel %vm342_vm2, 0.439, %v3394_v53  ;;  %v2261_v29 = vsel %vm397_vm0, 0.439, %v3394_v53  ;;  %v325_v35 = vsel %vm313_vm7, %v319_v16, %v245_v49 }
  0x78   : > { %534 = vrot.lane.b32.xlu1 %v2025_v2, %s1840_s29  ;;  %532 = vrot.lane.b32.xlu0 %v2015_v0, %s1840_s29  ;;  %v2265_v31 = vsel %vm332_vm10, 0.0, %v449_v63  ;;  %vm339_vm8 = vcmp.eq.s32.totalorder %v2229_v6, 1  ;;  %v2270_v19 = vsel %vm334_vm1, 0.0, %v451_v12  ;;  %vm386_vm4 = vcmp.lt.s32.totalorder %v2109_v15, 2 }
  0x79   : > { %v2274_v32 = vsel %vm398_vm6, 0.439, %v3394_v53  ;;  %v2278_v33 = vsel %vm335_vm13, 0.0, %v452_v20  ;;  %v453_v34 = vsel %vm342_vm2, -0.148, %v1844_v62  ;;  %v2283_v36 = vmul.f32 %v353_v18, %v2035_v4 }
  0x7a   : > { %v354_v37 = vsel %vm336_vm5, 0.257, %v348_v23  ;;  %v2289_v26 = vsel %vm332_vm10, 0.564, %v505_v27  ;;  %v2293_v38 = vsel %vm336_vm5, 0.564, %v509_v28 }
  0x7b   : > { %vm333_vm11 = vcmp.eq.s32.totalorder %v2229_v6, 0  ;;  %vm395_vm14 = vcmp.eq.s32.totalorder %v2229_v6, 2  ;;  %v507_v44 = vsel %vm340_vm12, 0.439, %v3394_v53  ;;  %v2309_v46 = vsel %vm336_vm5, 0.0, %v453_v34 }
  0x7c   : > { %538 = vrot.lane.b32.xlu1 %v2038_v5, %s1840_s29  ;;  %536 = vrot.lane.b32.xlu0 %v2035_v4, %s1840_s29  ;;  %v345_v4 = vsel %vm339_vm8, -0.291, %v1841_v30  ;;  %vm337_vm15 = vcmp.eq.s32.totalorder %v325_v35, 1  ;;  %v506_v48 = vsel %vm339_vm8, 0.439, %v3394_v53  ;;  %v2323_v63 = vmul.f32 %v354_v37, %v2038_v5 }
  0x7d   : > { %v508_v49 = vsel %vm341_vm9, 0.439, %v3394_v53  ;;  %v450_v59 = vsel %vm339_vm8, -0.148, %v1844_v62  ;;  %v351_v12 = vsel %vm333_vm11, 0.257, %v345_v4 }
  0x7e   : > { %v401_v16 = vsel %vm395_vm14, 0.439, %v3394_v53  ;;  %v2330_v18 = vsel %vm334_vm1, 0.564, %v507_v44  ;;  %vm331_vm12 = vcmp.eq.s32.totalorder %v325_v35, 0  ;;  %v2345_v34 = vsel %vm333_vm11, 0.0, %v450_v59 }
  0x7f   : > { %v343_v5 = vsel %vm337_vm15, -0.291, %v1841_v30  ;;  %v2341_v28 = vsel %vm333_vm11, 0.564, %v506_v48  ;;  %vm393_vm9 = vcmp.eq.s32.totalorder %v325_v35, 2  ;;  %vm441_vm0 = vcmp.lt.s32.totalorder %v2109_v15, 1 }
  0x80   : > { %623 = vrot.lane.b32.xlu1 %v2084_v8, %s1839_s23  ;;  %621 = vrot.lane.b32.xlu0 %v2081_v7, %s1839_s23  ;;  %v2349_v37 = vsel %vm335_vm13, 0.564, %v508_v49  ;;  %v2354_v4 = vsel %vm332_vm10, 0.098, %v3394_v53  ;;  %v448_v48 = vsel %vm337_vm15, -0.148, %v1844_v62  ;;  %v357_v40 = vmul.f32 %v351_v12, %v2015_v0 }
  0x81   : > { %v2364_v59 = vsel %vm333_vm11, 0.098, %v3394_v53  ;;  %v349_v60 = vsel %vm331_vm12, 0.257, %v343_v5  ;;  %v504_v17 = vsel %vm337_vm15, 0.439, %v3394_v53 }
  0x82   : > { %vm490_vm10 = vcmp.lt.s32.totalorder %v2086_v9, 7  ;;  %v3424_v2 = vmov 0.5019608   ;;  %v2390_v5 = vsel %vm336_vm5, 0.098, %v3394_v53  ;;  %v2400_v3 = vsel %vm331_vm12, 0.0, %v448_v48 }
  0x83   : > { %v2385_v12 = vsel %vm333_vm11, 0.0627451, %v3424_v2  ;;  %3425 = vst [vmem:[#allocation20_spill] sm:$0xff] %v2390_v5  ;;  %v2403_v6 = vsel %vm331_vm12, 0.564, %v504_v17  ;;  %vm497_vm2 = vcmp.ge.s32.totalorder %v2109_v15, 127 }
  0x84   : > { %627 = vrot.lane.b32.xlu1 %v2096_v11, %s1839_s23  ;;  %625 = vrot.lane.b32.xlu0 %v2093_v10, %s1839_s23  ;;  %v2379_v11 = vsel %vm393_vm9, 0.439, %v3394_v53  ;;  %v2406_v10 = vmul.f32 %v349_v60, %v2018_v1  ;;  %v2410_v0 = vsel %vm331_vm12, 0.098, %v3394_v53  ;;  %vm964_vm8 = vcmp.ge.s32.totalorder %v2109_v15, 1 }
  0x85   : > { %vm1109_vm14 = vcmp.ge.s32.totalorder %v2109_v15, 2 }
  0x88   : > { %631 = vrot.lane.b32.xlu1 %v2104_v13, %s1839_s23  ;;  %629 = vrot.lane.b32.xlu0 %v2107_v14, %s1839_s23 }
  0x8c   : > { %694 = vrot.lane.b32.xlu0 %v2081_v7, %s1840_s29  ;;  %696 = vrot.lane.b32.xlu1 %v2084_v8, %s1840_s29 }
  0xc2   : > { %v2185_v39 = vpop.permute.xlu1 %365  ;;  %v2187_v47 = vpop.permute.xlu0 %361 }
  0xc3   : > { %v375_v43 = vrot.slane %v2185_v39, 7  ;;  %v373_v20 = vrot.slane %v2187_v47, 7 }
  0xc6   : > { %v2210_v56 = vpop.permute.xlu1 %367  ;;  %v2212_v57 = vpop.permute.xlu0 %363 }
  0xc7   : > { %v376_v51 = vrot.slane %v2210_v56, 7  ;;  %v374_v58 = vrot.slane %v2212_v57, 7 }
  0xc9   : > { %v382_v30 = vsel %vm379_vm3, %v375_v43, %v376_v51  ;;  %v384_v44 = vsel %vm379_vm3, %v373_v20, %v374_v58  ;;  %v383_v13 = vsel %vm379_vm3, %v374_v58, %v375_v43 }
  0xca   : > { %v2245_v22 = vpop.permute.xlu1 %369  ;;  %v2250_v25 = vpop.permute.xlu0 %371  ;;  %v390_v43 = vsel %vm386_vm4, %v382_v30, %v2210_v56  ;;  %v388_v58 = vsel %vm386_vm4, %v384_v44, %v2212_v57  ;;  %v2414_v56 = vsel %vm331_vm12, 0.0627451, %v3424_v2  ;;  %v389_v57 = vsel %vm386_vm4, %v383_v13, %v2185_v39 }
  0xcb   : > { %v377_v49 = vrot.slane %v2245_v22, 7  ;;  %v378_v8 = vrot.slane %v2250_v25, 7  ;;  %v408_v44 = vmul.f32 %v2205_v54, %v390_v43  ;;  %v406_v48 = vmul.f32 %v2208_v55, %v388_v58 }
  0xcc   : > { %v2432_v13 = vsel %vm336_vm5, 0.0627451, %v3424_v2  ;;  %v3427_v54 = vmov 0.0   ;;  %v407_v58 = vmul.f32 %v401_v16, %v389_v57  ;;  %vm552_vm5 = vcmp.ge.s32.totalorder %v2109_v15, 126 }
  0xcd   : > { %v381_v30 = vsel %vm379_vm3, %v376_v51, %v377_v49  ;;  %3426 = vst [vmem:[#allocation21_spill] sm:$0xff] %v2432_v13  ;;  %v380_v39 = vsel %vm379_vm3, %v377_v49, %v378_v8  ;;  %v2441_v55 = vsel %vm334_vm1, 0.098, %v3427_v54  ;;  %v2450_v49 = vsel %vm335_vm13, 0.098, %v3427_v54 }
  0xce   : > { %v2295_v41 = vpop.permute.xlu1 %419  ;;  %v2297_v42 = vpop.permute.xlu0 %417  ;;  %3428 = vst [vmem:[#allocation22_spill] sm:$0xff] %v2441_v55  ;;  %v391_v43 = vsel %vm386_vm4, %v381_v30, %v2245_v22  ;;  %v385_v13 = vsel %vm379_vm3, %v378_v8, %v373_v20  ;;  %v414_v5 = vadd.f32 %v408_v44, %v2200_v52  ;;  %v412_v22 = vadd.f32 %v406_v48, %v2243_v21 }
  0xcf   : > { %v430_v17 = vrot.slane %v2295_v41, 7  ;;  %v429_v60 = vrot.slane %v2297_v42, 7  ;;  %v392_v16 = vsel %vm386_vm4, %v380_v39, %v2250_v25  ;;  %v409_v21 = vmul.f32 %v2261_v29, %v391_v43 }
  0xd0   : > { %v387_v25 = vsel %vm386_vm4, %v385_v13, %v2187_v47  ;;  %v413_v39 = vadd.f32 %v407_v58, %v357_v40 }
  0xd1   : > { %v439_v24 = vsel %vm379_vm3, %v429_v60, %v430_v17  ;;  %v405_v43 = vmul.f32 %v2379_v11, %v387_v25 }
  0xd2   : > { %v2333_v23 = vpop.permute.xlu1 %423  ;;  %v2335_v27 = vpop.permute.xlu0 %421 }
  0xd3   : > { %v431_v35 = vrot.slane %v2335_v27, 7  ;;  %v432_v51 = vrot.slane %v2333_v23, 7 }
  0xd5   : > { %v438_v57 = vsel %vm379_vm3, %v430_v17, %v431_v35  ;;  %v437_v20 = vsel %vm379_vm3, %v431_v35, %v432_v51  ;;  %v443_v17 = vsel %vm441_vm0, %v439_v24, %v2295_v41  ;;  %v410_v35 = vmul.f32 %v2274_v32, %v392_v16 }
  0xd6   : > { %v2374_v62 = vpop.permute.xlu1 %425  ;;  %v2376_v14 = vpop.permute.xlu0 %427  ;;  %v444_v29 = vsel %vm441_vm0, %v438_v57, %v2335_v27  ;;  %v445_v47 = vsel %vm441_vm0, %v437_v20, %v2333_v23  ;;  %v461_v27 = vmul.f32 %v2265_v31, %v443_v17 }
  0xd7   : > { %v433_v1 = vrot.slane %v2374_v62, 7  ;;  %v434_v50 = vrot.slane %v2376_v14, 7  ;;  %v462_v58 = vmul.f32 %v2345_v34, %v444_v29  ;;  %v463_v31 = vmul.f32 %v2270_v19, %v445_v47 }
  0xd8   : > { %v416_v11 = vadd.f32 %v410_v35, %v2323_v63  ;;  %v467_v19 = vadd.f32 %v461_v27, %v412_v22 }
  0xd9   : > { %v436_v54 = vsel %vm379_vm3, %v432_v51, %v433_v1  ;;  %v440_v48 = vsel %vm379_vm3, %v434_v50, %v429_v60  ;;  %v435_v13 = vsel %vm379_vm3, %v433_v1, %v434_v50  ;;  %v469_v25 = vadd.f32 %v463_v31, %v414_v5 }
  0xda   : > { %v475_v53 = vpop.permute.xlu1 %474  ;;  %v2427_v7 = vpop.permute.xlu0 %472  ;;  %v446_v24 = vsel %vm441_vm0, %v436_v54, %v2374_v62  ;;  %v442_v23 = vsel %vm441_vm0, %v440_v48, %v2297_v42  ;;  %v415_v62 = vadd.f32 %v409_v21, %v2283_v36  ;;  %v447_v36 = vsel %vm441_vm0, %v435_v13, %v2376_v14 }
  0xdb   : > { %v485_v2 = vrot.slane %v475_v53, 1  ;;  %v484_v55 = vrot.slane %v2427_v7, 1  ;;  %v464_v57 = vmul.f32 %v2278_v33, %v446_v24  ;;  %v460_v34 = vmul.f32 %v2400_v3, %v442_v23 }
  0xdc   : > { %v411_v33 = vadd.f32 %v405_v43, %v2406_v10  ;;  %v468_v14 = vadd.f32 %v462_v58, %v413_v39  ;;  %v465_v17 = vmul.f32 %v2309_v46, %v447_v36  ;;  %vm744_vm3 = vcmp.lt.s32.totalorder %v2109_v15, 126 }
  0xdd   : > { %v495_v51 = vsel %vm490_vm10, %v484_v55, %v485_v2  ;;  %v470_v3 = vadd.f32 %v464_v57, %v415_v62 }
  0xde   : > { %v2464_v30 = vpop.permute.xlu1 %478  ;;  %v477_v8 = vpop.permute.xlu0 %476  ;;  %v466_v48 = vadd.f32 %v460_v34, %v411_v33  ;;  %v3429_v34 = vld [vmem:[#allocation20_spill] sm:$0xff]  ;;  %v3430_v33 = vld [vmem:[#allocation22_spill] sm:$0xff] }
  0xdf   : > { %v487_v52 = vrot.slane %v2464_v30, 1  ;;  %v486_v44 = vrot.slane %v477_v8, 1 }
  0xe1   : > { %v493_v41 = vsel %vm490_vm10, %v486_v44, %v487_v52  ;;  %v494_v32 = vsel %vm490_vm10, %v485_v2, %v486_v44  ;;  %v498_v2 = vsel %vm497_vm2, %v495_v51, %v2427_v7 }
  0xe2   : > { %v483_v40 = vpop.permute.xlu1 %482  ;;  %v481_v60 = vpop.permute.xlu0 %480  ;;  %v499_v1 = vsel %vm497_vm2, %v494_v32, %v475_v53  ;;  %v500_v42 = vsel %vm497_vm2, %v493_v41, %v477_v8  ;;  %v516_v54 = vmul.f32 %v2403_v6, %v498_v2  ;;  %v471_v2 = vadd.f32 %v465_v17, %v416_v11 }
  0xe3   : > { %v489_v16 = vrot.slane %v483_v40, 1  ;;  %v488_v7 = vrot.slane %v481_v60, 1  ;;  %v517_v44 = vmul.f32 %v2289_v26, %v499_v1  ;;  %v518_v8 = vmul.f32 %v2341_v28, %v500_v42 }
  0xe4   : > { %v522_v39 = vadd.f32 %v516_v54, %v466_v48 }
  0xe5   : > { %v496_v63 = vsel %vm490_vm10, %v489_v16, %v484_v55  ;;  %v491_v10 = vsel %vm490_vm10, %v488_v7, %v489_v16  ;;  %v492_v6 = vsel %vm490_vm10, %v487_v52, %v488_v7  ;;  %v523_v29 = vadd.f32 %v517_v44, %v467_v19 }
  0xe6   : > { %v531_v50 = vpop.permute.xlu1 %530  ;;  %v529_v20 = vpop.permute.xlu0 %528  ;;  %v503_v55 = vsel %vm497_vm2, %v496_v63, %v483_v40  ;;  %v524_v51 = vadd.f32 %v518_v8, %v468_v14  ;;  %v501_v52 = vsel %vm497_vm2, %v492_v6, %v2464_v30  ;;  %v502_v24 = vsel %vm497_vm2, %v491_v10, %v481_v60 }
  0xe7   : > { %v541_v53 = vrot.slane %v531_v50, 1  ;;  %v540_v21 = vrot.slane %v529_v20, 1  ;;  %v521_v40 = vmul.f32 %v2293_v38, %v503_v55  ;;  %v519_v16 = vmul.f32 %v2330_v18, %v501_v52 }
  0xe8   : > { %v520_v38 = vmul.f32 %v2349_v37, %v502_v24  ;;  %v3431_v44 = vmov 0.5019608  }
  0xe9   : > { %v550_v26 = vsel %vm490_vm10, %v540_v21, %v541_v53  ;;  %v527_v36 = vadd.f32 %v521_v40, %v471_v2  ;;  %v580_v63 = vsel %vm334_vm1, 0.0627451, %v3431_v44  ;;  %v3435_v2 = vld [vmem:[#allocation12_spill] sm:$0xff]  ;;  %vm1122_vm1 = vcmp.lt.s32.totalorder %v2086_v9, 6 }
  0xea   : > { %v535_v28 = vpop.permute.xlu1 %534  ;;  %v533_v22 = vpop.permute.xlu0 %532  ;;  %v553_v5 = vsel %vm552_vm5, %v550_v26, %v529_v20  ;;  %v525_v20 = vadd.f32 %v519_v16, %v469_v25  ;;  %v526_v19 = vadd.f32 %v520_v38, %v470_v3  ;;  %v3433_v3 = vld [vmem:[#allocation21_spill] sm:$0xff]  ;;  %v3436_v38 = vld [vmem:[#allocation8_spill] sm:$0xff] }
  0xeb   : > { %v543_v35 = vrot.slane %v535_v28, 1  ;;  %v542_v46 = vrot.slane %v533_v22, 1  ;;  %v565_v47 = vmul.f32 %v2410_v0, %v553_v5 }
  0xed   : > { %v548_v41 = vsel %vm490_vm10, %v542_v46, %v543_v35  ;;  %v549_v32 = vsel %vm490_vm10, %v541_v53, %v542_v46  ;;  %v571_v27 = vadd.f32 %v565_v47, %v522_v39 }
  0xee   : > { %v554_v13 = vsel %vm552_vm5, %v549_v32, %v531_v50  ;;  %v555_v0 = vsel %vm552_vm5, %v548_v41, %v533_v22  ;;  %v539_v23 = vpop.permute.xlu1 %538  ;;  %v537_v30 = vpop.permute.xlu0 %536 }
  0xef   : > { %v566_v43 = vmul.f32 %v2354_v4, %v554_v13  ;;  %v567_v60 = vmul.f32 %v2364_v59, %v555_v0  ;;  %v545_v62 = vrot.slane %v539_v23, 1  ;;  %v544_v58 = vrot.slane %v537_v30, 1 }
  0xf0   : > { %v2557_v31 = vadd.f32 %v2414_v56, %v571_v27 }
  0xf1   : > { %v572_v57 = vadd.f32 %v566_v43, %v523_v29  ;;  %v573_v1 = vadd.f32 %v567_v60, %v524_v51  ;;  %v551_v42 = vsel %vm490_vm10, %v545_v62, %v540_v21  ;;  %v546_v4 = vsel %vm490_vm10, %v544_v58, %v545_v62 }
  0xf2   : > { %v558_v59 = vsel %vm552_vm5, %v551_v42, %v539_v23  ;;  %v547_v18 = vsel %vm490_vm10, %v543_v35, %v544_v58  ;;  %v557_v37 = vsel %vm552_vm5, %v546_v4, %v537_v30  ;;  %609 = vrot.lane.b32.xlu0 %v2557_v31, %s1839_s23  ;;  %v3434_v58 = vld [vmem:[#allocation9_spill] sm:$0xff]  ;;  %v3438_v42 = vld [vmem:[#allocation11_spill] sm:$0xff] }
  0xf3   : > { %v2572_v56 = vadd.f32 %v2223_v61, %v572_v57  ;;  %v2575_v11 = vadd.f32 %v2385_v12, %v573_v1  ;;  %v570_v7 = vmul.f32 %v3429_v34, %v558_v59  ;;  %v556_v50 = vsel %vm552_vm5, %v547_v18, %v535_v28  ;;  %v3437_v57 = vld [vmem:[#allocation14_spill] sm:$0xff]  ;;  %v3439_v4 = vld [vmem:[#allocation13_spill] sm:$0xff]  ;;  %v3441_v18 = vld [vmem:[#allocation15_spill] sm:$0xff] }
  0xf4   : > { %v568_v54 = vmul.f32 %v3430_v33, %v556_v50  ;;  %v569_v53 = vmul.f32 %v2450_v49, %v557_v37  ;;  %v581_v12 = vsel %vm335_vm13, 0.0627451, %v3431_v44  ;;  %v755_v49 = vrot.slane %v2557_v31, 1  ;;  %v3440_v59 = vld [vmem:[#allocation10_spill] sm:$0xff] }
  0xf5   : > { %v576_v61 = vadd.f32 %v570_v7, %v527_v36  ;;  %611 = vrot.lane.b32.xlu1 %v2572_v56, %s1839_s23  ;;  %v756_v21 = vrot.slane %v2572_v56, 1  ;;  %v759_v28 = vrot.slane %v2575_v11, 1  ;;  %v589_v16 = vsub.f32 %v3435_v2, %v3434_v58 }
  0xf6   : > { %v574_v14 = vadd.f32 %v568_v54, %v525_v20  ;;  %v575_v25 = vadd.f32 %v569_v53, %v526_v19  ;;  %613 = vrot.lane.b32.xlu0 %v2575_v11, %s1839_s23  ;;  %v591_v1 = vsub.f32 %v3437_v57, %v3436_v38  ;;  %v590_v36 = vsub.f32 %v3439_v4, %v3438_v42 }
  0xf7   : > { %v2595_v17 = vadd.f32 %v3433_v3, %v576_v61  ;;  %v757_v45 = vsel %vm490_vm10, %v755_v49, %v756_v21  ;;  %v758_v6 = vsel %vm490_vm10, %v756_v21, %v755_v49  ;;  %v592_v37 = vsub.f32 %v3441_v18, %v3440_v59 }
  0xf8   : > { %v2597_v48 = vadd.f32 %v580_v63, %v574_v14  ;;  %v2599_v10 = vadd.f32 %v581_v12, %v575_v25  ;;  %v781_v5 = vsub.f32 %v757_v45, %v2557_v31  ;;  %v782_v35 = vsub.f32 %v758_v6, %v2572_v56 }
  0xf9   : > { %v764_v26 = vrot.slane %v2595_v17, 1  ;;  %v595_v34 = vmul.f32 %v589_v16, %v589_v16  ;;  %v597_v7 = vmul.f32 %v591_v1, %v591_v1  ;;  %v596_v50 = vmul.f32 %v590_v36, %v590_v36 }
  0xfa   : > { %615 = vrot.lane.b32.xlu1 %v2597_v48, %s1839_s23  ;;  %617 = vrot.lane.b32.xlu0 %v2599_v10, %s1839_s23  ;;  %v760_v22 = vrot.slane %v2597_v48, 1  ;;  %v763_v55 = vrot.slane %v2599_v10, 1  ;;  %v787_v32 = vmul.f32 %v781_v5, %v781_v5  ;;  %v788_v40 = vmul.f32 %v782_v35, %v782_v35 }
  0xfb   : > { %v2656_v20 = vadd.f32 %v597_v7, %v595_v34  ;;  %v598_v19 = vmul.f32 %v592_v37, %v592_v37  ;;  %v1121_v54 = vrot.slane %v2572_v56, 2  ;;  %v1120_v53 = vrot.slane %v2557_v31, 2 }
  0xfc   : > { %v761_v46 = vsel %vm490_vm10, %v759_v28, %v760_v22  ;;  %v762_v39 = vsel %vm490_vm10, %v760_v22, %v759_v28  ;;  %v765_v29 = vsel %vm490_vm10, %v763_v55, %v764_v26  ;;  %v766_v51 = vsel %vm490_vm10, %v764_v26, %v763_v55  ;;  %v3450_v26 = vld [vmem:[#allocation17_spill] sm:$0xff]  ;;  %v3451_v22 = vld [vmem:[#allocation16_spill] sm:$0xff] }
  0xfd   : > { %v783_v47 = vsub.f32 %v761_v46, %v2575_v11  ;;  %v784_v52 = vsub.f32 %v762_v39, %v2597_v48  ;;  %v785_v24 = vsub.f32 %v765_v29, %v2599_v10  ;;  %v786_v41 = vsub.f32 %v766_v51, %v2595_v17  ;;  %3442 = vst [vmem:[#allocation20_spill] sm:$0xff] %v2656_v20 }
  0xfe   : > { %619 = vrot.lane.b32.xlu1 %v2595_v17, %s1839_s23  ;;  %682 = vrot.lane.b32.xlu0 %v2557_v31, %s1840_s29  ;;  %v2658_v33 = vadd.f32 %v598_v19, %v596_v50  ;;  %v2685_v44 = vsel %vm1122_vm1, %v1120_v53, %v1121_v54  ;;  %v1126_v8 = vrot.slane %v2597_v48, 2  ;;  %v1125_v63 = vrot.slane %v2575_v11, 2 }
  0xff   : > { %v789_v27 = vmul.f32 %v783_v47, %v783_v47  ;;  %v790_v13 = vmul.f32 %v784_v52, %v784_v52  ;;  %v793_v30 = vmul.f32 %v785_v24, %v785_v24  ;;  %v794_v43 = vmul.f32 %v786_v41, %v786_v41  ;;  %3444 = vst [vmem:[#allocation19_spill] sm:$0xff] %v2685_v44 }
 0x100   : > { %3443 = vst [vmem:[#allocation22_spill] sm:$0xff] %v2658_v33  ;;  %v2694_v61 = vsel %vm1122_vm1, %v1121_v54, %v1120_v53  ;;  %v2698_v12 = vsel %vm1122_vm1, %v1125_v63, %v1126_v8  ;;  %v2706_v21 = vsel %vm1122_vm1, %v1126_v8, %v1125_v63  ;;  %v1129_v14 = vrot.slane %v2599_v10, 2 }
 0x101   : > { %v791_v0 = vadd.f32 %v789_v27, %v787_v32  ;;  %v792_v23 = vadd.f32 %v790_v13, %v788_v40  ;;  %3445 = vst [vmem:[#allocation21_spill] sm:$0xff] %v2694_v61  ;;  %3446 = vst [vmem:[#allocation9_spill] sm:$0xff] %v2698_v12  ;;  %v1130_v25 = vrot.slane %v2595_v17, 2  ;;  %v771_v52 = vrot.slane %v3437_v57, 1 }
 0x102   : > { %684 = vrot.lane.b32.xlu1 %v2572_v56, %s1840_s29  ;;  %686 = vrot.lane.b32.xlu0 %v2575_v11, %s1840_s29  ;;  %3447 = vst [vmem:[#allocation12_spill] sm:$0xff] %v2706_v21  ;;  %v772_v24 = vrot.slane %v3441_v18, 1  ;;  %v776_v16 = vrot.slane %v3451_v22, 1  ;;  %vm671_vm13 = vcmp.lt.s32.totalorder %v2109_v15, 127 }
 0x103   : > { %v2635_v60 = vadd.f32 %v793_v30, %v791_v0  ;;  %v2637_v62 = vadd.f32 %v794_v43, %v792_v23  ;;  %v2716_v49 = vsel %vm1122_vm1, %v1129_v14, %v1130_v25  ;;  %v2724_v3 = vsel %vm1122_vm1, %v1130_v25, %v1129_v14 }
 0x104   : > { %3448 = vst [vmem:[#allocation8_spill] sm:$0xff] %v2716_v49  ;;  %3449 = vst [vmem:[#allocation14_spill] sm:$0xff] %v2724_v3  ;;  %v2786_v40 = vsel %vm490_vm10, %v771_v52, %v772_v24  ;;  %v2798_v0 = vsel %vm490_vm10, %v772_v24, %v771_v52 }
 0x106   : > { %688 = vrot.lane.b32.xlu1 %v2597_v48, %s1840_s29  ;;  %690 = vrot.lane.b32.xlu0 %v2599_v10, %s1840_s29 }
 0x10a   : > { %692 = vrot.lane.b32.xlu1 %v2595_v17, %s1840_s29  ;;  %830 = vrot.lane.b32.xlu0 %v757_v45, %s1839_s23 }
 0x10e   : > { %832 = vrot.lane.b32.xlu1 %v758_v6, %s1839_s23  ;;  %834 = vrot.lane.b32.xlu0 %v761_v46, %s1839_s23 }
 0x112   : > { %836 = vrot.lane.b32.xlu1 %v762_v39, %s1839_s23  ;;  %838 = vrot.lane.b32.xlu0 %v765_v29, %s1839_s23 }
 0x116   : > { %840 = vrot.lane.b32.xlu1 %v766_v51, %s1839_s23  ;;  %902 = vrot.lane.b32.xlu0 %v757_v45, %s1838_s18 }
 0x11a   : > { %904 = vrot.lane.b32.xlu1 %v758_v6, %s1838_s18  ;;  %906 = vrot.lane.b32.xlu0 %v761_v46, %s1838_s18 }
 0x11e   : > { %908 = vrot.lane.b32.xlu1 %v762_v39, %s1838_s18  ;;  %910 = vrot.lane.b32.xlu0 %v765_v29, %s1838_s18 }
 0x122   : > { %912 = vrot.lane.b32.xlu1 %v766_v51, %s1838_s18  ;;  %975 = vrot.lane.b32.xlu0 %v757_v45, %s1840_s29 }
 0x126   : > { %977 = vrot.lane.b32.xlu1 %v758_v6, %s1840_s29  ;;  %979 = vrot.lane.b32.xlu0 %v761_v46, %s1840_s29 }
 0x12a   : > { %981 = vrot.lane.b32.xlu1 %v762_v39, %s1840_s29  ;;  %983 = vrot.lane.b32.xlu0 %v765_v29, %s1840_s29 }
 0x12e   : > { %985 = vrot.lane.b32.xlu1 %v766_v51, %s1840_s29  ;;  %1047 = vrot.lane.b32.xlu0 %v757_v45, %s1837_s16  ;;  %v2734_v45 = vpop.permute.xlu0 %621 }
 0x132   : > { %1049 = vrot.lane.b32.xlu1 %v758_v6, %s1837_s16  ;;  %1051 = vrot.lane.b32.xlu0 %v761_v46, %s1837_s16  ;;  %v2736_v6 = vpop.permute.xlu1 %623  ;;  %v2742_v28 = vpop.permute.xlu0 %625  ;;  %v767_v46 = vrot.slane %v3435_v2, 1  ;;  %v775_v2 = vrot.slane %v3450_v26, 1 }
 0x134   : > { %v2828_v1 = vsel %vm490_vm10, %v775_v2, %v776_v16  ;;  %v2840_v36 = vsel %vm490_vm10, %v776_v16, %v775_v2 }
 0x136   : > { %1053 = vrot.lane.b32.xlu1 %v762_v39, %s1837_s16  ;;  %1055 = vrot.lane.b32.xlu0 %v765_v29, %s1837_s16  ;;  %v2748_v55 = vpop.permute.xlu1 %627  ;;  %v2750_v5 = vpop.permute.xlu0 %629  ;;  %v768_v39 = vrot.slane %v3439_v4, 1 }
 0x138   : > { %v2782_v32 = vsel %vm490_vm10, %v768_v39, %v767_v46 }
 0x13a   : > { %1057 = vrot.lane.b32.xlu1 %v766_v51, %s1837_s16  ;;  %1195 = vrot.lane.b32.xlu0 %v2685_v44, %s1839_s23  ;;  %v2756_v35 = vpop.permute.xlu1 %631  ;;  %v2764_v29 = vpop.permute.xlu0 %694  ;;  %v2768_v51 = vsel %vm490_vm10, %v767_v46, %v768_v39 }
 0x13e   : > { %1197 = vrot.lane.b32.xlu1 %v2694_v61, %s1839_s23  ;;  %1199 = vrot.lane.b32.xlu0 %v2698_v12, %s1839_s23  ;;  %v2770_v47 = vpop.permute.xlu1 %696 }
 0x142   : > { %1201 = vrot.lane.b32.xlu1 %v2706_v21, %s1839_s23  ;;  %698 = vrot.lane.b32.xlu0 %v3437_v57, %s1840_s29 }
 0x146   : > { %700 = vrot.lane.b32.xlu1 %v3441_v18, %s1840_s29  ;;  %1203 = vrot.lane.b32.xlu0 %v2716_v49, %s1839_s23 }
 0x14a   : > { %1205 = vrot.lane.b32.xlu1 %v2724_v3, %s1839_s23  ;;  %1267 = vrot.lane.b32.xlu0 %v2685_v44, %s1838_s18 }
 0x14e   : > { %1269 = vrot.lane.b32.xlu1 %v2694_v61, %s1838_s18  ;;  %1271 = vrot.lane.b32.xlu0 %v2698_v12, %s1838_s18 }
 0x152   : > { %1273 = vrot.lane.b32.xlu1 %v2706_v21, %s1838_s18  ;;  %702 = vrot.lane.b32.xlu0 %v3450_v26, %s1840_s29 }
 0x156   : > { %704 = vrot.lane.b32.xlu1 %v3451_v22, %s1840_s29  ;;  %1275 = vrot.lane.b32.xlu0 %v2716_v49, %s1838_s18 }
 0x15a   : > { %1277 = vrot.lane.b32.xlu1 %v2724_v3, %s1838_s18  ;;  %1339 = vrot.lane.b32.xlu0 %v2685_v44, %s1840_s29 }
 0x15e   : > { %1341 = vrot.lane.b32.xlu1 %v2694_v61, %s1840_s29  ;;  %1343 = vrot.lane.b32.xlu0 %v2698_v12, %s1840_s29 }
 0x162   : > { %1345 = vrot.lane.b32.xlu1 %v2706_v21, %s1840_s29  ;;  %842 = vrot.lane.b32.xlu0 %v2768_v51, %s1839_s23 }
 0x164   : > { %v2778_v41 = vpop.permute.xlu0 %609 }
 0x166   : > { %844 = vrot.lane.b32.xlu1 %v2782_v32, %s1839_s23  ;;  %846 = vrot.lane.b32.xlu0 %v2786_v40, %s1839_s23 }
 0x167   : > { %v2792_v27 = vpop.permute.xlu1 %611 }
 0x168   : > { %v2794_v13 = vpop.permute.xlu0 %613 }
 0x16a   : > { %848 = vrot.lane.b32.xlu1 %v2798_v0, %s1839_s23  ;;  %1347 = vrot.lane.b32.xlu0 %v2716_v49, %s1840_s29 }
 0x16c   : > { %v2804_v23 = vpop.permute.xlu1 %615  ;;  %v2806_v30 = vpop.permute.xlu0 %617 }
 0x16e   : > { %1349 = vrot.lane.b32.xlu1 %v2724_v3, %s1840_s29  ;;  %1411 = vrot.lane.b32.xlu0 %v2685_v44, %s1837_s16  ;;  %v2929_v44 = vld [vmem:[%s2008_s22 + $0x18] sm:$0xff] }
 0x170   : > { %v2812_v43 = vpop.permute.xlu1 %619  ;;  %v2814_v58 = vpop.permute.xlu0 %682 }
 0x172   : > { %1413 = vrot.lane.b32.xlu1 %v2694_v61, %s1837_s16  ;;  %1415 = vrot.lane.b32.xlu0 %v2698_v12, %s1837_s16  ;;  %v2925_v61 = vld [vmem:[%s2008_s22 + $0x10] sm:$0xff] }
 0x174   : > { %v2822_v38 = vpop.permute.xlu1 %684  ;;  %v2824_v57 = vpop.permute.xlu0 %686 }
 0x176   : > { %1417 = vrot.lane.b32.xlu1 %v2706_v21, %s1837_s16  ;;  %850 = vrot.lane.b32.xlu0 %v2828_v1, %s1839_s23  ;;  %v1138_v21 = vrot.slane %v2929_v44, 2 }
 0x178   : > { %v2834_v42 = vpop.permute.xlu1 %688  ;;  %v2836_v4 = vpop.permute.xlu0 %690 }
 0x17a   : > { %852 = vrot.lane.b32.xlu1 %v2840_v36, %s1839_s23  ;;  %914 = vrot.lane.b32.xlu0 %v2768_v51, %s1838_s18 }
 0x17c   : > { %v2846_v59 = vpop.permute.xlu1 %692  ;;  %v2848_v18 = vpop.permute.xlu0 %830 }
 0x17d   : > { %3452 = vst [vmem:[#allocation11_spill] sm:$0xff] %v2848_v18 }
 0x17e   : > { %916 = vrot.lane.b32.xlu1 %v2782_v32, %s1838_s18  ;;  %918 = vrot.lane.b32.xlu0 %v2786_v40, %s1838_s18 }
 0x180   : > { %v833_v37 = vpop.permute.xlu1 %832  ;;  %v2854_v34 = vpop.permute.xlu0 %834 }
 0x181   : > { %3453 = vst [vmem:[#allocation13_spill] sm:$0xff] %v2854_v34  ;;  %v855_v19 = vsub.f32 %v833_v37, %v2572_v56 }
 0x182   : > { %920 = vrot.lane.b32.xlu1 %v2798_v0, %s1838_s18  ;;  %1419 = vrot.lane.b32.xlu0 %v2716_v49, %s1837_s16 }
 0x183   : > { %v861_v14 = vmul.f32 %v855_v19, %v855_v19 }
 0x184   : > { %v837_v7 = vpop.permute.xlu1 %836  ;;  %v2860_v50 = vpop.permute.xlu0 %838 }
 0x185   : > { %3454 = vst [vmem:[#allocation10_spill] sm:$0xff] %v2860_v50  ;;  %v857_v54 = vsub.f32 %v837_v7, %v2597_v48  ;;  %v2957_v50 = vld [vmem:[%s2008_s22 + $0x28] sm:$0xff] }
 0x186   : > { %1421 = vrot.lane.b32.xlu1 %v2724_v3, %s1837_s16  ;;  %922 = vrot.lane.b32.xlu0 %v2828_v1, %s1838_s18 }
 0x187   : > { %v863_v53 = vmul.f32 %v857_v54, %v857_v54 }
 0x188   : > { %v841_v8 = vpop.permute.xlu1 %840  ;;  %v903_v63 = vpop.permute.xlu0 %902 }
 0x189   : > { %v859_v25 = vsub.f32 %v841_v8, %v2595_v17  ;;  %v865_v26 = vadd.f32 %v863_v53, %v861_v14  ;;  %v926_v46 = vsub.f32 %v903_v63, %v2557_v31 }
 0x18a   : > { %924 = vrot.lane.b32.xlu1 %v2840_v36, %s1838_s18  ;;  %987 = vrot.lane.b32.xlu0 %v2768_v51, %s1840_s29 }
 0x18b   : > { %v867_v22 = vmul.f32 %v859_v25, %v859_v25  ;;  %v932_v16 = vmul.f32 %v926_v46, %v926_v46 }
 0x18c   : > { %v905_v39 = vpop.permute.xlu1 %904  ;;  %v907_v52 = vpop.permute.xlu0 %906 }
 0x18d   : > { %v2874_v24 = vadd.f32 %v867_v22, %v865_v26  ;;  %v928_v2 = vsub.f32 %v907_v52, %v2575_v11  ;;  %v927_v37 = vsub.f32 %v905_v39, %v2572_v56 }
 0x18e   : > { %989 = vrot.lane.b32.xlu1 %v2782_v32, %s1840_s29  ;;  %991 = vrot.lane.b32.xlu0 %v2786_v40, %s1840_s29 }
 0x18f   : > { %3455 = vst [vmem:[#allocation15_spill] sm:$0xff] %v2874_v24  ;;  %v934_v7 = vmul.f32 %v928_v2, %v928_v2  ;;  %v933_v14 = vmul.f32 %v927_v37, %v927_v37 }
 0x190   : > { %v909_v19 = vpop.permute.xlu1 %908  ;;  %v911_v54 = vpop.permute.xlu0 %910 }
 0x191   : > { %v936_v53 = vadd.f32 %v934_v7, %v932_v16  ;;  %v929_v8 = vsub.f32 %v909_v19, %v2597_v48  ;;  %v930_v63 = vsub.f32 %v911_v54, %v2599_v10 }
 0x192   : > { %993 = vrot.lane.b32.xlu1 %v2798_v0, %s1840_s29  ;;  %995 = vrot.lane.b32.xlu0 %v2828_v1, %s1840_s29 }
 0x193   : > { %v935_v25 = vmul.f32 %v929_v8, %v929_v8  ;;  %v938_v26 = vmul.f32 %v930_v63, %v930_v63 }
 0x194   : > { %v913_v22 = vpop.permute.xlu1 %912  ;;  %v976_v46 = vpop.permute.xlu0 %975 }
 0x195   : > { %v937_v39 = vadd.f32 %v935_v25, %v933_v14  ;;  %v2888_v52 = vadd.f32 %v938_v26, %v936_v53  ;;  %v931_v2 = vsub.f32 %v913_v22, %v2595_v17  ;;  %v999_v7 = vsub.f32 %v976_v46, %v2557_v31  ;;  %v2905_v22 = vld [vmem:[%s2008_s22] sm:$0xff] }
 0x196   : > { %997 = vrot.lane.b32.xlu1 %v2840_v36, %s1840_s29  ;;  %1059 = vrot.lane.b32.xlu0 %v2768_v51, %s1837_s16  ;;  %v1133_v46 = vrot.slane %v2905_v22, 2 }
 0x197   : > { %3456 = vst [vmem:[#allocation17_spill] sm:$0xff] %v2888_v52  ;;  %v939_v16 = vmul.f32 %v931_v2, %v931_v2  ;;  %v1005_v8 = vmul.f32 %v999_v7, %v999_v7 }
 0x198   : > { %v978_v37 = vpop.permute.xlu1 %977  ;;  %v980_v19 = vpop.permute.xlu0 %979 }
 0x199   : > { %v2896_v54 = vadd.f32 %v939_v16, %v937_v39  ;;  %v1001_v53 = vsub.f32 %v980_v19, %v2575_v11  ;;  %v1000_v63 = vsub.f32 %v978_v37, %v2572_v56  ;;  %v2911_v19 = vld [vmem:[%s2008_s22 + $0x8] sm:$0xff]  ;;  %v635_v37 = vsub.f32 %v2794_v13, %v2575_v11 }
 0x19a   : > { %1061 = vrot.lane.b32.xlu1 %v2782_v32, %s1837_s16  ;;  %1063 = vrot.lane.b32.xlu0 %v2786_v40, %s1837_s16  ;;  %v1134_v7 = vrot.slane %v2911_v19, 2  ;;  %v1137_v13 = vrot.slane %v2925_v61, 2  ;;  %v656_v9 = vsub.f32 %v2736_v6, %v2911_v19 }
 0x19b   : > { %3457 = vst [vmem:[#allocation16_spill] sm:$0xff] %v2896_v54  ;;  %v1007_v14 = vmul.f32 %v1001_v53, %v1001_v53  ;;  %v1006_v53 = vmul.f32 %v1000_v63, %v1000_v63 }
 0x19c   : > { %v982_v25 = vpop.permute.xlu1 %981  ;;  %v984_v26 = vpop.permute.xlu0 %983  ;;  %v2945_v12 = vsel %vm1122_vm1, %v1134_v7, %v1133_v46 }
 0x19d   : > { %v1009_v39 = vadd.f32 %v1007_v14, %v1005_v8  ;;  %v1002_v2 = vsub.f32 %v982_v25, %v2597_v48  ;;  %v1003_v16 = vsub.f32 %v984_v26, %v2599_v10  ;;  %v633_v25 = vsub.f32 %v2778_v41, %v2557_v31 }
 0x19e   : > { %1065 = vrot.lane.b32.xlu1 %v2798_v0, %s1837_s16  ;;  %1067 = vrot.lane.b32.xlu0 %v2828_v1, %s1837_s16  ;;  %v637_v26 = vsub.f32 %v2806_v30, %v2599_v10  ;;  %v2937_v41 = vsel %vm1122_vm1, %v1133_v46, %v1134_v7  ;;  %v641_v30 = vmul.f32 %v635_v37, %v635_v37  ;;  %v1142_v46 = vrot.slane %v2957_v50, 2 }
 0x19f   : > { %v1008_v8 = vmul.f32 %v1002_v2, %v1002_v2  ;;  %v1011_v14 = vmul.f32 %v1003_v16, %v1003_v16 }
 0x1a0   : > { %v986_v3 = vpop.permute.xlu1 %985  ;;  %v1048_v49 = vpop.permute.xlu0 %1047  ;;  %v645_v54 = vmul.f32 %v637_v26, %v637_v26  ;;  %v804_v26 = vsub.f32 %v2782_v32, %v2911_v19 }
 0x1a1   : > { %v1010_v63 = vadd.f32 %v1008_v8, %v1006_v53  ;;  %v2932_v2 = vadd.f32 %v1011_v14, %v1009_v39  ;;  %v1004_v16 = vsub.f32 %v986_v3, %v2595_v17  ;;  %v636_v39 = vsub.f32 %v2804_v23, %v2597_v48  ;;  %v2951_v8 = vld [vmem:[%s2008_s22 + $0x20] sm:$0xff] }
 0x1a2   : > { %1069 = vrot.lane.b32.xlu1 %v2840_v36, %s1837_s16  ;;  %1207 = vrot.lane.b32.xlu0 %v2937_v41, %s1839_s23  ;;  %v1071_v53 = vsub.f32 %v1048_v49, %v2557_v31  ;;  %v1141_v37 = vrot.slane %v2951_v8, 2  ;;  %v639_v14 = vmul.f32 %v633_v25, %v633_v25  ;;  %v638_v23 = vsub.f32 %v2812_v43, %v2595_v17 }
 0x1a3   : > { %3458 = vst [vmem:[#allocation23_spill] sm:$0xff] %v2932_v2  ;;  %v1012_v3 = vmul.f32 %v1004_v16, %v1004_v16  ;;  %v634_v2 = vsub.f32 %v2792_v27, %v2572_v56  ;;  %v2967_v25 = vsel %vm1122_vm1, %v1137_v13, %v1138_v21  ;;  %v803_v27 = vsub.f32 %v2768_v51, %v2905_v22 }
 0x1a4   : > { %v1050_v52 = vpop.permute.xlu1 %1049  ;;  %v1052_v24 = vpop.permute.xlu0 %1051  ;;  %v643_v16 = vadd.f32 %v641_v30, %v639_v14  ;;  %v642_v43 = vmul.f32 %v636_v39, %v636_v39  ;;  %v2980_v51 = vsel %vm1122_vm1, %v1138_v21, %v1137_v13  ;;  %v2984_v32 = vsel %vm1122_vm1, %v1141_v37, %v1142_v46 }
 0x1a5   : > { %v2962_v7 = vadd.f32 %v1012_v3, %v1010_v63  ;;  %v1073_v49 = vsub.f32 %v1052_v24, %v2575_v11  ;;  %v1077_v63 = vmul.f32 %v1071_v53, %v1071_v53  ;;  %v1072_v24 = vsub.f32 %v1050_v52, %v2572_v56 }
 0x1a6   : > { %1209 = vrot.lane.b32.xlu1 %v2945_v12, %s1839_s23  ;;  %1211 = vrot.lane.b32.xlu0 %v2967_v25, %s1839_s23  ;;  %v647_v18 = vadd.f32 %v645_v54, %v643_v16  ;;  %v646_v30 = vmul.f32 %v638_v23, %v638_v23  ;;  %v807_v52 = vsub.f32 %v2786_v40, %v2925_v61 }
 0x1a7   : > { %3459 = vst [vmem:[#allocation24_spill] sm:$0xff] %v2962_v7  ;;  %v1079_v3 = vmul.f32 %v1073_v49, %v1073_v49  ;;  %v640_v7 = vmul.f32 %v634_v2, %v634_v2  ;;  %v808_v54 = vsub.f32 %v2798_v0, %v2929_v44  ;;  %v708_v21 = vsub.f32 %v2824_v57, %v2575_v11 }
 0x1a8   : > { %v1054_v34 = vpop.permute.xlu1 %1053  ;;  %v1056_v33 = vpop.permute.xlu0 %1055  ;;  %v1078_v2 = vmul.f32 %v1072_v24, %v1072_v24  ;;  %v706_v40 = vsub.f32 %v2814_v58, %v2557_v31  ;;  %v710_v0 = vsub.f32 %v2836_v4, %v2599_v10  ;;  %v3004_v57 = vsel %vm1122_vm1, %v1142_v46, %v1141_v37 }
 0x1a9   : > { %v1081_v14 = vadd.f32 %v1079_v3, %v1077_v63  ;;  %v1074_v39 = vsub.f32 %v1054_v34, %v2597_v48  ;;  %v1075_v53 = vsub.f32 %v1056_v33, %v2599_v10  ;;  %v644_v13 = vadd.f32 %v642_v43, %v640_v7 }
 0x1aa   : > { %1213 = vrot.lane.b32.xlu1 %v2980_v51, %s1839_s23  ;;  %1215 = vrot.lane.b32.xlu0 %v2984_v32, %s1839_s23  ;;  %v649_v33 = vmul.f32 -0.005, %v647_v18  ;;  %v805_v43 = vand.u32 2147483647, %v803_v27  ;;  %v3009_v18 = vand.u32 2147483647, %v804_v26  ;;  %v714_v24 = vmul.f32 %v708_v21, %v708_v21 }
 0x1ab   : > { %v1080_v34 = vmul.f32 %v1074_v39, %v1074_v39  ;;  %v1083_v23 = vmul.f32 %v1075_v53, %v1075_v53  ;;  %v648_v63 = vadd.f32 %v646_v30, %v644_v13  ;;  %v709_v58 = vsub.f32 %v2834_v42, %v2597_v48 }
 0x1ac   : > { %v1058_v49 = vpop.permute.xlu1 %1057  ;;  %v1196_v16 = vpop.permute.xlu0 %1195  ;;  %v809_v4 = vand.u32 2147483647, %v807_v52  ;;  %v712_v27 = vmul.f32 %v706_v40, %v706_v40  ;;  %v707_v26 = vsub.f32 %v2822_v38, %v2572_v56  ;;  %v718_v30 = vmul.f32 %v710_v0, %v710_v0 }
 0x1ad   : > { %v1082_v3 = vadd.f32 %v1080_v34, %v1078_v2  ;;  %v3006_v20 = vadd.f32 %v1083_v23, %v1081_v14  ;;  %v1076_v7 = vsub.f32 %v1058_v49, %v2595_v17  ;;  %v1219_v46 = vsub.f32 %v1196_v16, %v2557_v31 }
 0x1ae   : > { %1217 = vrot.lane.b32.xlu1 %v3004_v57, %s1839_s23  ;;  %1279 = vrot.lane.b32.xlu0 %v2937_v41, %s1838_s18  ;;  %v711_v42 = vsub.f32 %v2846_v59, %v2595_v17  ;;  %v651_v53 = vmul.f32 1.442695, %v649_v33  ;;  %v650_v21 = vmul.f32 -0.005, %v648_v63  ;;  %v655_v52 = vsub.f32 %v2734_v45, %v2905_v22 }
 0x1af   : > { %v1084_v37 = vmul.f32 %v1076_v7, %v1076_v7  ;;  %v810_v2 = vand.u32 2147483647, %v808_v54  ;;  %v716_v34 = vadd.f32 %v714_v24, %v712_v27  ;;  %v715_v23 = vmul.f32 %v709_v58, %v709_v58 }
 0x1b0   : > { %v1198_v14 = vpop.permute.xlu1 %1197  ;;  %v1200_v39 = vpop.permute.xlu0 %1199  ;;  %v659_v38 = vsub.f32 %v2742_v28, %v2925_v61  ;;  %v1225_v59 = vmul.f32 %v1219_v46, %v1219_v46  ;;  %v797_v0 = vmul.f32 -0.005, %v2635_v60  ;;  %v713_v49 = vmul.f32 %v707_v26, %v707_v26 }
 0x1b1   : > { %v3024_v13 = vadd.f32 %v1084_v37, %v1082_v3  ;;  %v1221_v6 = vsub.f32 %v1200_v39, %v2575_v11  ;;  %v1220_v33 = vsub.f32 %v1198_v14, %v2572_v56  ;;  %v720_v45 = vadd.f32 %v718_v30, %v716_v34 }
 0x1b2   : > { %1281 = vrot.lane.b32.xlu1 %v2945_v12, %s1838_s18  ;;  %1283 = vrot.lane.b32.xlu0 %v2967_v25, %s1838_s18  ;;  %v719_v54 = vmul.f32 %v711_v42, %v711_v42  ;;  %1671 = vpow2.f32 %v651_v53  ;;  %v653_v3 = vmul.f32 1.442695, %v650_v21  ;;  %v798_v58 = vmul.f32 -0.005, %v2637_v62 }
 0x1b3   : > { %v1227_v40 = vmul.f32 %v1221_v6, %v1221_v6  ;;  %v657_v28 = vand.u32 2147483647, %v655_v52  ;;  %v660_v37 = vsub.f32 %v2748_v55, %v2929_v44  ;;  %v717_v46 = vadd.f32 %v715_v23, %v713_v49  ;;  %v1725_v49 = vld [vmem:[%s2002_s3 + $0x20] sm:$0xff] }
 0x1b4   : > { %v1202_v16 = vpop.permute.xlu1 %1201  ;;  %v3037_v63 = vpop.permute.xlu0 %698  ;;  %v661_v60 = vand.u32 2147483647, %v659_v38  ;;  %v665_v27 = vsub.f32 %v2750_v5, %v2951_v8  ;;  %v1226_v26 = vmul.f32 %v1220_v33, %v1220_v33  ;;  %v3049_v42 = vadd.f32 %v809_v4, %v805_v43 }
 0x1b5   : > { %v1229_v7 = vadd.f32 %v1227_v40, %v1225_v59  ;;  %v1222_v24 = vsub.f32 %v1202_v16, %v2597_v48  ;;  %v813_v62 = vsub.f32 %v2828_v1, %v2951_v8  ;;  %v722_v14 = vmul.f32 -0.005, %v720_v45 }
 0x1b6   : > { %1285 = vrot.lane.b32.xlu1 %v2980_v51, %s1838_s18  ;;  %1287 = vrot.lane.b32.xlu0 %v2984_v32, %s1838_s18  ;;  %v721_v55 = vadd.f32 %v719_v54, %v717_v46  ;;  %v799_v21 = vmul.f32 1.442695, %v797_v0  ;;  %1673 = vpow2.f32 %v653_v3  ;;  %v658_v34 = vand.u32 2147483647, %v656_v9 }
 0x1b7   : > { %v1228_v30 = vmul.f32 %v1222_v24, %v1222_v24  ;;  %v662_v5 = vand.u32 2147483647, %v660_v37  ;;  %v666_v43 = vsub.f32 %v2756_v35, %v2957_v50  ;;  %v814_v4 = vsub.f32 %v2840_v36, %v2957_v50 }
 0x1b8   : > { %v3053_v39 = vpop.permute.xlu1 %700  ;;  %v1204_v53 = vpop.permute.xlu0 %1203  ;;  %v801_v1 = vmul.f32 1.442695, %v798_v58  ;;  %v663_v23 = vadd.f32 %v661_v60, %v657_v28  ;;  %v667_v38 = vand.u32 2147483647, %v665_v27  ;;  %v3065_v33 = vadd.f32 %v810_v2, %v3009_v18 }
 0x1b9   : > { %v1230_v6 = vadd.f32 %v1228_v30, %v1226_v26  ;;  %v1223_v52 = vsub.f32 %v1204_v53, %v2599_v10  ;;  %v724_v9 = vmul.f32 1.442695, %v722_v14  ;;  %v723_v40 = vmul.f32 -0.005, %v721_v55  ;;  %v1726_v26 = vld [vmem:[%s2002_s3 + $0x28] sm:$0xff] }
 0x1ba   : > { %1289 = vrot.lane.b32.xlu1 %v3004_v57, %s1838_s18  ;;  %1351 = vrot.lane.b32.xlu0 %v2937_v41, %s1840_s29  ;;  %v593_v36 = vsub.f32 %v2951_v8, %v1725_v49  ;;  %1675 = vpow2.f32 %v799_v21  ;;  %v728_v45 = vsub.f32 %v2764_v29, %v2905_v22  ;;  %v664_v3 = vadd.f32 %v662_v5, %v658_v34 }
 0x1bb   : > { %v1231_v59 = vmul.f32 %v1223_v52, %v1223_v52  ;;  %v668_v24 = vand.u32 2147483647, %v666_v43  ;;  %v815_v18 = vand.u32 2147483647, %v813_v62  ;;  %v732_v2 = vsub.f32 %v3037_v63, %v2925_v61 }
 0x1bc   : > { %v1206_v0 = vpop.permute.xlu1 %1205  ;;  %v1268_v35 = vpop.permute.xlu0 %1267  ;;  %1677 = vpow2.f32 %v801_v1  ;;  %v669_v29 = vadd.f32 %v667_v38, %v663_v23  ;;  %v726_v37 = vmul.f32 1.442695, %v723_v40  ;;  %v601_v27 = vmul.f32 %v593_v36, %v593_v36  ;;  %v3460_v38 = vld [vmem:[#allocation20_spill] sm:$0xff] }
 0x1bd   : > { %v3071_v54 = vadd.f32 %v1231_v59, %v1229_v7  ;;  %v1224_v16 = vsub.f32 %v1206_v0, %v2595_v17  ;;  %v1672_v58 = vpop.eup %1671  ;;  %v1291_v28 = vsub.f32 %v1268_v35, %v2557_v31  ;;  %1679 = vpow2.f32 %v724_v9 }
 0x1be   : > { %1353 = vrot.lane.b32.xlu1 %v2945_v12, %s1840_s29  ;;  %1355 = vrot.lane.b32.xlu0 %v2967_v25, %s1840_s29  ;;  %v594_v63 = vsub.f32 %v2957_v50, %v1726_v26  ;;  %v730_v30 = vand.u32 2147483647, %v728_v45  ;;  %v816_v62 = vand.u32 2147483647, %v814_v4  ;;  %v670_v53 = vadd.f32 %v668_v24, %v664_v3 }
 0x1bf   : > { %v1232_v7 = vmul.f32 %v1224_v16, %v1224_v16  ;;  %v734_v21 = vand.u32 2147483647, %v732_v2  ;;  %v674_v52 = vmul.f32 %v1672_v58, %v669_v29  ;;  %v733_v5 = vsub.f32 %v3053_v39, %v2929_v44 }
 0x1c0   : > { %v1270_v46 = vpop.permute.xlu1 %1269  ;;  %v1272_v60 = vpop.permute.xlu0 %1271  ;;  %v1297_v43 = vmul.f32 %v1291_v28, %v1291_v28  ;;  %v729_v1 = vsub.f32 %v2770_v47, %v2911_v19  ;;  %1681 = vpow2.f32 %v726_v37  ;;  %v603_v59 = vadd.f32 %v601_v27, %v3460_v38 }
 0x1c1   : > { %v3083_v14 = vadd.f32 %v1232_v7, %v1230_v6  ;;  %v1293_v55 = vsub.f32 %v1272_v60, %v2575_v11  ;;  %v1674_v34 = vpop.eup %1673  ;;  %v1292_v6 = vsub.f32 %v1270_v46, %v2572_v56  ;;  %v602_v40 = vmul.f32 %v594_v63, %v594_v63 }
 0x1c2   : > { %1357 = vrot.lane.b32.xlu1 %v2980_v51, %s1840_s29  ;;  %1359 = vrot.lane.b32.xlu0 %v2984_v32, %s1840_s29  ;;  %v817_v39 = vadd.f32 %v815_v18, %v3049_v42  ;;  %v736_v36 = vadd.f32 %v734_v21, %v730_v30  ;;  %v676_v45 = vsel %vm671_vm13, %v674_v52, 0.0  ;;  %v675_v47 = vmul.f32 %v1674_v34, %v670_v53  ;;  %v3461_v18 = vld [vmem:[#allocation22_spill] sm:$0xff] }
 0x1c3   : > { %v1299_v4 = vmul.f32 %v1293_v55, %v1293_v55  ;;  %v735_v3 = vand.u32 2147483647, %v733_v5  ;;  %v1298_v24 = vmul.f32 %v1292_v6, %v1292_v6  ;;  %v731_v29 = vand.u32 2147483647, %v729_v1 }
 0x1c4   : > { %v1274_v23 = vpop.permute.xlu1 %1273  ;;  %v703_v9 = vpop.permute.xlu0 %702  ;;  %v818_v7 = vadd.f32 %v816_v62, %v3065_v33  ;;  %v605_v42 = vmul.f32 0.00012207031, %v603_v59  ;;  %v604_v28 = vadd.f32 %v602_v40, %v3461_v18  ;;  %v678_v53 = vmul.f32 0.000492126, %v676_v45 }
 0x1c5   : > { %v1301_v0 = vadd.f32 %v1299_v4, %v1297_v43  ;;  %v1294_v35 = vsub.f32 %v1274_v23, %v2597_v48  ;;  %v738_v49 = vsub.f32 %v703_v9, %v2951_v8  ;;  %v1676_v16 = vpop.eup %1675  ;;  %v677_v21 = vsel %vm671_vm13, %v675_v47, 0.0  ;;  %v3462_v43 = vld [vmem:[#allocation13_spill] sm:$0xff]  ;;  %v3463_v23 = vld [vmem:[#allocation18_spill] sm:$0xff] }
 0x1c6   : > { %1361 = vrot.lane.b32.xlu1 %v3004_v57, %s1840_s29  ;;  %1423 = vrot.lane.b32.xlu0 %v2937_v41, %s1837_s16  ;;  %v1678_v60 = vpop.eup %1677  ;;  %v822_v33 = vmul.f32 %v1676_v16, %v817_v39  ;;  %v737_v62 = vadd.f32 %v735_v3, %v731_v29  ;;  %v856_v6 = vsub.f32 %v3462_v43, %v2575_v11  ;;  %vm780_vm6 = vcmp.lt.s32.totalorder %v3463_v23, 15  ;;  %v3464_v16 = vld [vmem:[#allocation11_spill] sm:$0xff] }
 0x1c7   : > { %v1300_v2 = vmul.f32 %v1294_v35, %v1294_v35  ;;  %v740_v58 = vand.u32 2147483647, %v738_v49  ;;  %v1680_v55 = vpop.eup %1679  ;;  %v823_v38 = vmul.f32 %v1678_v60, %v818_v7  ;;  %v680_v39 = vadd.f32 %v678_v53, %v605_v42  ;;  %vm893_vm7 = vmand %vm780_vm6, %vm671_vm13 }
 0x1c8   : > { %v705_v37 = vpop.permute.xlu1 %704  ;;  %v1276_v46 = vpop.permute.xlu0 %1275  ;;  %v606_v45 = vmul.f32 0.00012207031, %v604_v28  ;;  %v679_v47 = vmul.f32 0.000492126, %v677_v21  ;;  %v854_v3 = vsub.f32 %v3464_v16, %v2557_v31  ;;  %vm3212_vm4 = vmand %vm780_vm6, %vm964_vm8  ;;  %vm1146_vm12 = vcmp.lt.s32.totalorder %v3463_v23, 14 }
 0x1c9   : > { %v1302_v27 = vadd.f32 %v1300_v2, %v1298_v24  ;;  %v742_v26 = vadd.f32 %v740_v58, %v736_v36  ;;  %v739_v63 = vsub.f32 %v705_v37, %v2957_v50  ;;  %v1295_v30 = vsub.f32 %v1276_v46, %v2599_v10  ;;  %v3465_v58 = vld [vmem:[#allocation10_spill] sm:$0xff]  ;;  %vm3241_vm11 = vmand %vm780_vm6, %vm744_vm3 }
 0x1ca   : > { %1425 = vrot.lane.b32.xlu1 %v2945_v12, %s1837_s16  ;;  %1427 = vrot.lane.b32.xlu0 %v2967_v25, %s1837_s16  ;;  %v1682_v49 = vpop.eup %1681  ;;  %v858_v29 = vsub.f32 %v3465_v58, %v2599_v10  ;;  %v825_v37 = vsel %vm780_vm6, %v823_v38, 0.0  ;;  %v862_v46 = vmul.f32 %v856_v6, %v856_v6  ;;  %v860_v21 = vmul.f32 %v854_v3, %v854_v3  ;;  %vm3266_vm15 = vmand %vm780_vm6, %vm1109_vm14 }
 0x1cb   : > { %v747_v52 = vmul.f32 %v1680_v55, %v742_v26  ;;  %v741_v34 = vand.u32 2147483647, %v739_v63  ;;  %v1303_v5 = vmul.f32 %v1295_v30, %v1295_v30  ;;  %v681_v63 = vadd.f32 %v679_v47, %v606_v45  ;;  %vm3298_vm9 = vmand %vm1146_vm12, %vm671_vm13 }
 0x1cc   : > { %v1278_v4 = vpop.permute.xlu1 %1277  ;;  %v1340_v1 = vpop.permute.xlu0 %1339  ;;  %v864_v38 = vadd.f32 %v862_v46, %v860_v21  ;;  %vm1330_vm0 = vmand %vm1146_vm12, %vm964_vm8 }
 0x1cd   : > { %v749_v59 = vsel %vm744_vm3, %v747_v52, 0.0  ;;  %v743_v9 = vadd.f32 %v741_v34, %v737_v62  ;;  %v3122_v40 = vadd.f32 %v1303_v5, %v1301_v0  ;;  %v1296_v35 = vsub.f32 %v1278_v4, %v2595_v17  ;;  %vm1402_vm10 = vmand %vm1146_vm12, %vm744_vm3 }
 0x1ce   : > { %v751_v36 = vmul.f32 0.0004960318, %v749_v59  ;;  %1429 = vrot.lane.b32.xlu1 %v2980_v51, %s1837_s16  ;;  %1431 = vrot.lane.b32.xlu0 %v2984_v32, %s1837_s16  ;;  %v826_v0 = vmul.f32 0.00052083336, %v822_v33  ;;  %v1363_v42 = vsub.f32 %v1340_v1, %v2557_v31  ;;  %v827_v62 = vmul.f32 0.00052083336, %v825_v37  ;;  %vm1474_vm2 = vmand %vm1146_vm12, %vm1109_vm14 }
 0x1cf   : > { %v748_v24 = vmul.f32 %v1682_v49, %v743_v9  ;;  %v1304_v2 = vmul.f32 %v1296_v35, %v1296_v35  ;;  %v866_v52 = vmul.f32 %v858_v29, %v858_v29 }
 0x1d0   : > { %v753_v7 = vadd.f32 %v751_v36, %v680_v39  ;;  %v1342_v18 = vpop.permute.xlu1 %1341  ;;  %v1344_v28 = vpop.permute.xlu0 %1343  ;;  %v1369_v5 = vmul.f32 %v1363_v42, %v1363_v42 }
 0x1d1   : > { %v750_v60 = vsel %vm744_vm3, %v748_v24, 0.0  ;;  %v3138_v26 = vadd.f32 %v1304_v2, %v1302_v27  ;;  %v1365_v55 = vsub.f32 %v1344_v28, %v2575_v11  ;;  %v1364_v33 = vsub.f32 %v1342_v18, %v2572_v56 }
 0x1d2   : > { %v752_v30 = vmul.f32 0.0004960318, %v750_v60  ;;  %1433 = vrot.lane.b32.xlu1 %v3004_v57, %s1837_s16  ;;  %v3143_v53 = vadd.f32 %v826_v0, %v753_v7  ;;  %v868_v39 = vadd.f32 %v866_v52, %v864_v38 }
 0x1d3   : > { %v1371_v43 = vmul.f32 %v1365_v55, %v1365_v55  ;;  %v1370_v35 = vmul.f32 %v1364_v33, %v1364_v33 }
 0x1d4   : > { %v754_v34 = vadd.f32 %v752_v30, %v681_v63  ;;  %v1346_v6 = vpop.permute.xlu1 %1345  ;;  %v843_v27 = vpop.permute.xlu0 %842  ;;  %v870_v0 = vmul.f32 -0.005, %v868_v39  ;;  %v3466_v63 = vld [vmem:[#allocation15_spill] sm:$0xff] }
 0x1d5   : > { %v1366_v4 = vsub.f32 %v1346_v6, %v2597_v48  ;;  %v876_v1 = vsub.f32 %v843_v27, %v2905_v22  ;;  %v1373_v59 = vadd.f32 %v1371_v43, %v1369_v5  ;;  %v871_v30 = vmul.f32 -0.005, %v3466_v63 }
 0x1d6   : > { %v3148_v9 = vadd.f32 %v827_v62, %v754_v34  ;;  %v872_v60 = vmul.f32 1.442695, %v870_v0 }
 0x1d7   : > { %v1372_v49 = vmul.f32 %v1366_v4, %v1366_v4  ;;  %v878_v16 = vand.u32 2147483647, %v876_v1  ;;  %v874_v43 = vmul.f32 1.442695, %v871_v30 }
 0x1d8   : > { %v845_v36 = vpop.permute.xlu1 %844  ;;  %v847_v45 = vpop.permute.xlu0 %846  ;;  %1683 = vpow2.f32 %v872_v60 }
 0x1d9   : > { %v1374_v47 = vadd.f32 %v1372_v49, %v1370_v35  ;;  %v880_v3 = vsub.f32 %v847_v45, %v2925_v61  ;;  %v877_v24 = vsub.f32 %v845_v36, %v2911_v19  ;;  %1685 = vpow2.f32 %v874_v43 }
 0x1db   : > { %v882_v2 = vand.u32 2147483647, %v880_v3  ;;  %v879_v28 = vand.u32 2147483647, %v877_v24 }
 0x1dc   : > { %v849_v58 = vpop.permute.xlu1 %848  ;;  %v1348_v29 = vpop.permute.xlu0 %1347 }
 0x1dd   : > { %v884_v7 = vadd.f32 %v882_v2, %v878_v16  ;;  %v881_v42 = vsub.f32 %v849_v58, %v2929_v44  ;;  %v1367_v18 = vsub.f32 %v1348_v29, %v2599_v10 }
 0x1df   : > { %v883_v37 = vand.u32 2147483647, %v881_v42  ;;  %v1375_v46 = vmul.f32 %v1367_v18, %v1367_v18 }
 0x1e0   : > { %v1350_v55 = vpop.permute.xlu1 %1349  ;;  %v1412_v21 = vpop.permute.xlu0 %1411 }
 0x1e1   : > { %v885_v33 = vadd.f32 %v883_v37, %v879_v28  ;;  %v3155_v62 = vadd.f32 %v1375_v46, %v1373_v59  ;;  %v1368_v52 = vsub.f32 %v1350_v55, %v2595_v17  ;;  %v1435_v5 = vsub.f32 %v1412_v21, %v2557_v31  ;;  %v3468_v55 = vld [vmem:[#allocation16_spill] sm:$0xff] }
 0x1e2   : > { %v1684_v46 = vpop.eup %1683  ;;  %v943_v21 = vmul.f32 -0.005, %v3468_v55 }
 0x1e3   : > { %v1376_v34 = vmul.f32 %v1368_v52, %v1368_v52  ;;  %v1441_v38 = vmul.f32 %v1435_v5, %v1435_v5 }
 0x1e4   : > { %v1414_v6 = vpop.permute.xlu1 %1413  ;;  %v1416_v27 = vpop.permute.xlu0 %1415 }
 0x1e5   : > { %v3159_v4 = vadd.f32 %v1376_v34, %v1374_v47  ;;  %v1437_v1 = vsub.f32 %v1416_v27, %v2575_v11  ;;  %v1436_v35 = vsub.f32 %v1414_v6, %v2572_v56  ;;  %v3467_v47 = vld [vmem:[#allocation17_spill] sm:$0xff] }
 0x1e6   : > { %v942_v0 = vmul.f32 -0.005, %v3467_v47 }
 0x1e7   : > { %v1443_v49 = vmul.f32 %v1437_v1, %v1437_v1  ;;  %v1442_v3 = vmul.f32 %v1436_v35, %v1436_v35 }
 0x1e8   : > { %v1418_v59 = vpop.permute.xlu1 %1417  ;;  %v851_v39 = vpop.permute.xlu0 %850  ;;  %v944_v30 = vmul.f32 1.442695, %v942_v0 }
 0x1e9   : > { %v3163_v36 = vadd.f32 %v1443_v49, %v1441_v38  ;;  %v1438_v45 = vsub.f32 %v1418_v59, %v2597_v48  ;;  %v886_v16 = vsub.f32 %v851_v39, %v2951_v8  ;;  %v946_v59 = vmul.f32 1.442695, %v943_v21 }
 0x1ea   : > { %1687 = vpow2.f32 %v944_v30  ;;  %v3471_v30 = vld [vmem:[#allocation12_spill] sm:$0xff] }
 0x1eb   : > { %v1444_v24 = vmul.f32 %v1438_v45, %v1438_v45  ;;  %v888_v2 = vand.u32 2147483647, %v886_v16  ;;  %1689 = vpow2.f32 %v946_v59  ;;  %v1150_v55 = vsub.f32 %v3471_v30, %v2597_v48  ;;  %v3475_v59 = vld [vmem:[#allocation8_spill] sm:$0xff] }
 0x1ec   : > { %v853_v58 = vpop.permute.xlu1 %852  ;;  %v915_v29 = vpop.permute.xlu0 %914  ;;  %v1151_v48 = vsub.f32 %v3475_v59, %v2599_v10 }
 0x1ed   : > { %v3168_v42 = vadd.f32 %v1444_v24, %v1442_v3  ;;  %v890_v18 = vadd.f32 %v888_v2, %v884_v7  ;;  %v887_v28 = vsub.f32 %v853_v58, %v2957_v50  ;;  %v948_v37 = vsub.f32 %v915_v29, %v2905_v22  ;;  %v1686_v7 = vpop.eup %1685  ;;  %v3469_v58 = vld [vmem:[#allocation23_spill] sm:$0xff] }
 0x1ee   : > { %v1015_v29 = vmul.f32 -0.005, %v3469_v58 }
 0x1ef   : > { %v894_v60 = vmul.f32 %v1684_v46, %v890_v18  ;;  %v889_v63 = vand.u32 2147483647, %v887_v28  ;;  %v950_v6 = vand.u32 2147483647, %v948_v37 }
 0x1f0   : > { %v917_v52 = vpop.permute.xlu1 %916  ;;  %v919_v34 = vpop.permute.xlu0 %918 }
 0x1f1   : > { %v896_v5 = vsel %vm671_vm13, %v894_v60, 0.0  ;;  %v891_v43 = vadd.f32 %v889_v63, %v885_v33  ;;  %v952_v27 = vsub.f32 %v919_v34, %v2925_v61  ;;  %v949_v35 = vsub.f32 %v917_v52, %v2911_v19  ;;  %v3470_v60 = vld [vmem:[#allocation9_spill] sm:$0xff]  ;;  %v3472_v52 = vld [vmem:[#allocation19_spill] sm:$0xff] }
 0x1f2   : > { %v898_v1 = vmul.f32 0.0005249344, %v896_v5  ;;  %v1149_v63 = vsub.f32 %v3470_v60, %v2575_v11  ;;  %v1147_v34 = vsub.f32 %v3472_v52, %v2557_v31  ;;  %v1017_v5 = vmul.f32 1.442695, %v1015_v29  ;;  %v3476_v60 = vld [vmem:[#allocation14_spill] sm:$0xff] }
 0x1f3   : > { %v895_v38 = vmul.f32 %v1686_v7, %v891_v43  ;;  %v954_v49 = vand.u32 2147483647, %v952_v27  ;;  %v951_v47 = vand.u32 2147483647, %v949_v35  ;;  %v3473_v43 = vld [vmem:[#allocation24_spill] sm:$0xff]  ;;  %v3474_v7 = vld [vmem:[#allocation21_spill] sm:$0xff] }
 0x1f4   : > { %v900_v39 = vadd.f32 %v898_v1, %v3143_v53  ;;  %v921_v45 = vpop.permute.xlu1 %920  ;;  %v3182_v33 = vpop.permute.xlu0 %1419  ;;  %v1148_v1 = vsub.f32 %v3474_v7, %v2572_v56  ;;  %v1155_v11 = vmul.f32 %v1149_v63, %v1149_v63  ;;  %1691 = vpow2.f32 %v1017_v5 }
 0x1f5   : > { %v897_v16 = vsel %vm893_vm7, %v895_v38, 0.0  ;;  %v956_v3 = vadd.f32 %v954_v49, %v950_v6  ;;  %v953_v24 = vsub.f32 %v921_v45, %v2929_v44  ;;  %v1016_v6 = vmul.f32 -0.005, %v3473_v43  ;;  %v1688_v49 = vpop.eup %1687 }
 0x1f6   : > { %v899_v2 = vmul.f32 0.0005249344, %v897_v16  ;;  %v1156_v45 = vmul.f32 %v1150_v55, %v1150_v55  ;;  %v1152_v63 = vsub.f32 %v3476_v60, %v2595_v17  ;;  %v1087_v43 = vmul.f32 -0.005, %v3006_v20 }
 0x1f7   : > { %v955_v0 = vand.u32 2147483647, %v953_v24  ;;  %v1170_v60 = vsub.f32 %v2945_v12, %v2911_v19 }
 0x1f8   : > { %v901_v18 = vadd.f32 %v899_v2, %v3148_v9  ;;  %v3187_v28 = vpop.permute.xlu1 %1421  ;;  %v923_v37 = vpop.permute.xlu0 %922  ;;  %v1153_v2 = vmul.f32 %v1147_v34, %v1147_v34  ;;  %v1159_v34 = vmul.f32 %v1151_v48, %v1151_v48  ;;  %v1160_v59 = vmul.f32 %v1152_v63, %v1152_v63 }
 0x1f9   : > { %v957_v46 = vadd.f32 %v955_v0, %v951_v47  ;;  %v958_v53 = vsub.f32 %v923_v37, %v2951_v8  ;;  %v1019_v47 = vmul.f32 1.442695, %v1016_v6  ;;  %v1690_v37 = vpop.eup %1689  ;;  %v1173_v63 = vsub.f32 %v2967_v25, %v2925_v61 }
 0x1fb   : > { %v960_v21 = vand.u32 2147483647, %v958_v53  ;;  %v1157_v53 = vadd.f32 %v1155_v11, %v1153_v2  ;;  %1693 = vpow2.f32 %v1019_v47  ;;  %v1175_v25 = vand.u32 2147483647, %v1173_v63 }
 0x1fc   : > { %v925_v9 = vpop.permute.xlu1 %924  ;;  %v988_v27 = vpop.permute.xlu0 %987 }
 0x1fd   : > { %v962_v38 = vadd.f32 %v960_v21, %v956_v3  ;;  %v959_v35 = vsub.f32 %v925_v9, %v2957_v50  ;;  %v1021_v24 = vsub.f32 %v988_v27, %v2905_v22  ;;  %v1154_v3 = vmul.f32 %v1148_v1, %v1148_v1 }
 0x1fe   : > { %v1161_v11 = vadd.f32 %v1159_v34, %v1157_v53 }
 0x1ff   : > { %v967_v31 = vmul.f32 %v1688_v49, %v962_v38  ;;  %v961_v16 = vand.u32 2147483647, %v959_v35  ;;  %v1158_v52 = vadd.f32 %v1156_v45, %v1154_v3 }
 0x200   : > { %v990_v0 = vpop.permute.xlu1 %989  ;;  %v992_v56 = vpop.permute.xlu0 %991  ;;  %v1163_v53 = vmul.f32 -0.005, %v1161_v11 }
 0x201   : > { %v969_v58 = vsel %vm964_vm8, %v967_v31, 0.0  ;;  %v963_v29 = vadd.f32 %v961_v16, %v957_v46  ;;  %v1025_v21 = vsub.f32 %v992_v56, %v2925_v61  ;;  %v1023_v46 = vand.u32 2147483647, %v1021_v24 }
 0x202   : > { %v971_v30 = vmul.f32 0.0005249344, %v969_v58  ;;  %v1022_v38 = vsub.f32 %v990_v0, %v2911_v19  ;;  %v1162_v20 = vadd.f32 %v1160_v59, %v1158_v52  ;;  %v1088_v24 = vmul.f32 -0.005, %v3024_v13 }
 0x203   : > { %v968_v5 = vmul.f32 %v1690_v37, %v963_v29  ;;  %v1027_v9 = vand.u32 2147483647, %v1025_v21  ;;  %v1169_v0 = vsub.f32 %v2937_v41, %v2905_v22  ;;  %v1692_v37 = vpop.eup %1691 }
 0x204   : > { %v973_v6 = vadd.f32 %v971_v30, %v900_v39  ;;  %v994_v27 = vpop.permute.xlu1 %993  ;;  %v996_v7 = vpop.permute.xlu0 %995  ;;  %v1089_v39 = vmul.f32 1.442695, %v1087_v43  ;;  %v1024_v3 = vand.u32 2147483647, %v1022_v38  ;;  %v1164_v21 = vmul.f32 -0.005, %v1162_v20 }
 0x205   : > { %v970_v1 = vsel %vm3212_vm4, %v968_v5, 0.0  ;;  %v1026_v35 = vsub.f32 %v994_v27, %v2929_v44  ;;  %v1031_v49 = vsub.f32 %v996_v7, %v2951_v8  ;;  %v1029_v45 = vadd.f32 %v1027_v9, %v1023_v46  ;;  %v1694_v9 = vpop.eup %1693 }
 0x206   : > { %v972_v48 = vmul.f32 0.0005249344, %v970_v1  ;;  %1695 = vpow2.f32 %v1089_v39  ;;  %v1091_v41 = vmul.f32 1.442695, %v1088_v24  ;;  %v1171_v5 = vand.u32 2147483647, %v1169_v0 }
 0x207   : > { %v1028_v31 = vand.u32 2147483647, %v1026_v35  ;;  %v1033_v16 = vand.u32 2147483647, %v1031_v49  ;;  %v1172_v27 = vand.u32 2147483647, %v1170_v60  ;;  %v1174_v7 = vsub.f32 %v2980_v51, %v2929_v44 }
 0x208   : > { %v974_v2 = vadd.f32 %v972_v48, %v901_v18  ;;  %v998_v47 = vpop.permute.xlu1 %997  ;;  %v1060_v56 = vpop.permute.xlu0 %1059  ;;  %v1165_v35 = vmul.f32 1.442695, %v1163_v53  ;;  %v1167_v48 = vmul.f32 1.442695, %v1164_v21  ;;  %1697 = vpow2.f32 %v1091_v41 }
 0x209   : > { %v1035_v58 = vadd.f32 %v1033_v16, %v1029_v45  ;;  %v1032_v29 = vsub.f32 %v998_v47, %v2957_v50  ;;  %v1030_v30 = vadd.f32 %v1028_v31, %v1024_v3  ;;  %v1093_v55 = vsub.f32 %v1060_v56, %v2905_v22 }
 0x20a   : > { %v1235_v45 = vmul.f32 -0.005, %v3071_v54  ;;  %v1176_v56 = vand.u32 2147483647, %v1174_v7  ;;  %v1179_v0 = vsub.f32 %v2984_v32, %v2951_v8  ;;  %v1180_v3 = vsub.f32 %v3004_v57, %v2957_v50 }
 0x20b   : > { %v1039_v13 = vmul.f32 %v1692_v37, %v1035_v58  ;;  %v1034_v18 = vand.u32 2147483647, %v1032_v29  ;;  %v1095_v11 = vand.u32 2147483647, %v1093_v55  ;;  %1699 = vpow2.f32 %v1165_v35 }
 0x20c   : > { %v1062_v52 = vpop.permute.xlu1 %1061  ;;  %v1064_v34 = vpop.permute.xlu0 %1063  ;;  %1701 = vpow2.f32 %v1167_v48  ;;  %v1237_v37 = vmul.f32 1.442695, %v1235_v45  ;;  %v1177_v55 = vadd.f32 %v1175_v25, %v1171_v5  ;;  %v1181_v21 = vand.u32 2147483647, %v1179_v0 }
 0x20d   : > { %v1041_v46 = vsel %vm744_vm3, %v1039_v13, 0.0  ;;  %v1036_v43 = vadd.f32 %v1034_v18, %v1030_v30  ;;  %v1097_v12 = vsub.f32 %v1064_v34, %v2925_v61  ;;  %v1094_v39 = vsub.f32 %v1062_v52, %v2911_v19 }
 0x20e   : > { %v1043_v1 = vmul.f32 0.00052910054, %v1041_v46  ;;  %v1236_v19 = vmul.f32 -0.005, %v3083_v14  ;;  %v1178_v46 = vadd.f32 %v1176_v56, %v1172_v27  ;;  %1703 = vpow2.f32 %v1237_v37 }
 0x20f   : > { %v1040_v49 = vmul.f32 %v1694_v9, %v1036_v43  ;;  %v1099_v59 = vand.u32 2147483647, %v1097_v12  ;;  %v1096_v30 = vand.u32 2147483647, %v1094_v39  ;;  %v1182_v43 = vand.u32 2147483647, %v1180_v3 }
 0x210   : > { %v1045_v31 = vadd.f32 %v1043_v1, %v973_v6  ;;  %v1066_v16 = vpop.permute.xlu1 %1065  ;;  %v1068_v51 = vpop.permute.xlu0 %1067  ;;  %v1239_v14 = vmul.f32 1.442695, %v1236_v19  ;;  %v1183_v27 = vadd.f32 %v1181_v21, %v1177_v55  ;;  %v3283_v55 = vld [vmem:[%s2008_s22] sm:$0xff] }
 0x211   : > { %v1042_v20 = vsel %vm3241_vm11, %v1040_v49, 0.0  ;;  %v1098_v24 = vsub.f32 %v1066_v16, %v2929_v44  ;;  %v1103_v47 = vsub.f32 %v1068_v51, %v2951_v8  ;;  %v1101_v6 = vadd.f32 %v1099_v59, %v1095_v11  ;;  %v1696_v32 = vpop.eup %1695 }
 0x212   : > { %v1044_v54 = vmul.f32 0.00052910054, %v1042_v20  ;;  %v1698_v25 = vpop.eup %1697  ;;  %v1184_v11 = vadd.f32 %v1182_v43, %v1178_v46  ;;  %1705 = vpow2.f32 %v1239_v14  ;;  %v1307_v59 = vmul.f32 -0.005, %v3122_v40  ;;  %v3274_v20 = vld [vmem:[%s2008_s22 + $0x8] sm:$0xff]  ;;  %v3291_v46 = vld [vmem:[%s2008_s22 + $0x10] sm:$0xff] }
 0x213   : > { %v1100_v58 = vand.u32 2147483647, %v1098_v24  ;;  %v1105_v29 = vand.u32 2147483647, %v1103_v47 }
 0x214   : > { %v1046_v53 = vadd.f32 %v1044_v54, %v974_v2  ;;  %v1070_v60 = vpop.permute.xlu1 %1069  ;;  %v1208_v63 = vpop.permute.xlu0 %1207 }
 0x215   : > { %v1107_v13 = vadd.f32 %v1105_v29, %v1101_v6  ;;  %v1104_v18 = vsub.f32 %v1070_v60, %v2957_v50  ;;  %v1102_v57 = vadd.f32 %v1100_v58, %v1096_v30  ;;  %v1241_v34 = vsub.f32 %v1208_v63, %v2905_v22  ;;  %v1700_v16 = vpop.eup %1699 }
 0x216   : > { %v1702_v56 = vpop.eup %1701  ;;  %v1308_v6 = vmul.f32 -0.005, %v3138_v26  ;;  %v1187_v29 = vmul.f32 %v1700_v16, %v1183_v27  ;;  %v1439_v22 = vsub.f32 %v3182_v33, %v2599_v10 }
 0x217   : > { %v1112_v41 = vmul.f32 %v1696_v32, %v1107_v13  ;;  %v1106_v52 = vand.u32 2147483647, %v1104_v18  ;;  %v1243_v35 = vand.u32 2147483647, %v1241_v34  ;;  %v1188_v30 = vmul.f32 %v1702_v56, %v1184_v11 }
 0x218   : > { %v1210_v2 = vpop.permute.xlu1 %1209  ;;  %v1212_v12 = vpop.permute.xlu0 %1211  ;;  %v1191_v21 = vmul.f32 0.00055803574, %v1187_v29  ;;  %v1447_v56 = vmul.f32 %v1439_v22, %v1439_v22  ;;  %v3320_v29 = vld [vmem:[%s2008_s22 + $0x28] sm:$0xff] }
 0x219   : > { %v1114_v9 = vsel %vm1109_vm14, %v1112_v41, 0.0  ;;  %v1108_v7 = vadd.f32 %v1106_v52, %v1102_v57  ;;  %v1245_v5 = vsub.f32 %v1212_v12, %v2925_v61  ;;  %v1242_v39 = vsub.f32 %v1210_v2, %v3274_v20 }
 0x21a   : > { %v1116_v1 = vmul.f32 0.00052910054, %v1114_v9 }
 0x21b   : > { %v1113_v38 = vmul.f32 %v1698_v25, %v1108_v7  ;;  %v1247_v49 = vand.u32 2147483647, %v1245_v5  ;;  %v1244_v60 = vand.u32 2147483647, %v1242_v39  ;;  %v1379_v7 = vmul.f32 -0.005, %v3155_v62 }
 0x21c   : > { %v1118_v61 = vadd.f32 %v1116_v1, %v1045_v31  ;;  %v1214_v48 = vpop.permute.xlu1 %1213  ;;  %v1216_v45 = vpop.permute.xlu0 %1215  ;;  %v1309_v31 = vmul.f32 1.442695, %v1307_v59 }
 0x21d   : > { %v1115_v51 = vsel %vm3266_vm15, %v1113_v38, 0.0  ;;  %v1246_v24 = vsub.f32 %v1214_v48, %v2929_v44  ;;  %v1251_v47 = vsub.f32 %v1216_v45, %v2951_v8  ;;  %v1249_v3 = vadd.f32 %v1247_v49, %v1243_v35  ;;  %v1704_v8 = vpop.eup %1703  ;;  %v3313_v48 = vld [vmem:[%s2008_s22 + $0x20] sm:$0xff] }
 0x21e   : > { %v1117_v0 = vmul.f32 0.00052910054, %v1115_v51  ;;  %1707 = vpow2.f32 %v1309_v31  ;;  %v1706_v14 = vpop.eup %1705  ;;  %v1193_v2 = vadd.f32 %v1191_v21, %v1118_v61  ;;  %v3309_v61 = vld [vmem:[%s2008_s22 + $0x18] sm:$0xff]  ;;  %v1381_v33 = vmul.f32 1.442695, %v1379_v7 }
 0x21f   : > { %v1248_v54 = vand.u32 2147483647, %v1246_v24  ;;  %v1253_v40 = vand.u32 2147483647, %v1251_v47  ;;  %v1380_v47 = vmul.f32 -0.005, %v3159_v4 }
 0x220   : > { %v1119_v58 = vadd.f32 %v1117_v0, %v1046_v53  ;;  %v1218_v37 = vpop.permute.xlu1 %1217  ;;  %v1280_v19 = vpop.permute.xlu0 %1279  ;;  %v1311_v53 = vmul.f32 1.442695, %v1308_v6  ;;  %v1440_v0 = vsub.f32 %v3187_v28, %v2595_v17 }
 0x221   : > { %v1255_v63 = vadd.f32 %v1253_v40, %v1249_v3  ;;  %v1252_v44 = vsub.f32 %v1218_v37, %v2957_v50  ;;  %v1250_v13 = vadd.f32 %v1248_v54, %v1244_v60  ;;  %v1313_v26 = vsub.f32 %v1280_v19, %v3283_v55 }
 0x222   : > { %v1190_v50 = vsel %vm1146_vm12, %v1188_v30, 0.0  ;;  %1709 = vpow2.f32 %v1311_v53  ;;  %v1383_v4 = vmul.f32 1.442695, %v1380_v47  ;;  %v1448_v17 = vmul.f32 %v1440_v0, %v1440_v0 }
 0x223   : > { %v1259_v18 = vmul.f32 %v1704_v8, %v1255_v63  ;;  %v1254_v32 = vand.u32 2147483647, %v1252_v44  ;;  %v1315_v25 = vand.u32 2147483647, %v1313_v26  ;;  %v1192_v38 = vmul.f32 0.00055803574, %v1190_v50 }
 0x224   : > { %v1282_v57 = vpop.permute.xlu1 %1281  ;;  %v1284_v41 = vpop.permute.xlu0 %1283  ;;  %1711 = vpow2.f32 %v1381_v33  ;;  %v1449_v44 = vadd.f32 %v1447_v56, %v3163_v36 }
 0x225   : > { %v1261_v52 = vsel %vm671_vm13, %v1259_v18, 0.0  ;;  %v1256_v34 = vadd.f32 %v1254_v32, %v1250_v13  ;;  %v1317_v43 = vsub.f32 %v1284_v41, %v3291_v46  ;;  %v1314_v59 = vsub.f32 %v1282_v57, %v3274_v20 }
 0x226   : > { %v1263_v12 = vmul.f32 0.0005624297, %v1261_v52  ;;  %v1194_v16 = vadd.f32 %v1192_v38, %v1119_v58  ;;  %1713 = vpow2.f32 %v1383_v4  ;;  %v1451_v36 = vmul.f32 -0.005, %v1449_v44 }
 0x227   : > { %v1260_v5 = vmul.f32 %v1706_v14, %v1256_v34  ;;  %v1319_v1 = vand.u32 2147483647, %v1317_v43  ;;  %v1316_v31 = vand.u32 2147483647, %v1314_v59  ;;  %v1450_v52 = vadd.f32 %v1448_v17, %v3168_v42 }
 0x228   : > { %v1265_v27 = vadd.f32 %v1263_v12, %v1193_v2  ;;  %v1286_v35 = vpop.permute.xlu1 %1285  ;;  %v1288_v49 = vpop.permute.xlu0 %1287  ;;  %v1453_v22 = vmul.f32 1.442695, %v1451_v36 }
 0x229   : > { %v1262_v11 = vsel %vm3298_vm9, %v1260_v5, 0.0  ;;  %v1318_v62 = vsub.f32 %v1286_v35, %v3309_v61  ;;  %v1323_v45 = vsub.f32 %v1288_v49, %v3313_v48  ;;  %v1321_v51 = vadd.f32 %v1319_v1, %v1315_v25  ;;  %v1708_v37 = vpop.eup %1707 }
 0x22a   : > { %v1264_v10 = vmul.f32 0.0005624297, %v1262_v11  ;;  %v1452_v38 = vmul.f32 -0.005, %v1450_v52  ;;  %1715 = vpow2.f32 %v1453_v22 }
 0x22b   : > { %v1320_v39 = vand.u32 2147483647, %v1318_v62  ;;  %v1325_v24 = vand.u32 2147483647, %v1323_v45 }
 0x22c   : > { %v1266_v3 = vadd.f32 %v1264_v10, %v1194_v16  ;;  %v1290_v54 = vpop.permute.xlu1 %1289  ;;  %v1352_v40 = vpop.permute.xlu0 %1351 }
 0x22d   : > { %v1327_v6 = vadd.f32 %v1325_v24, %v1321_v51  ;;  %v1324_v58 = vsub.f32 %v1290_v54, %v3320_v29  ;;  %v1322_v19 = vadd.f32 %v1320_v39, %v1316_v31  ;;  %v1385_v30 = vsub.f32 %v1352_v40, %v3283_v55  ;;  %v1710_v26 = vpop.eup %1709 }
 0x22e   : > { %v1712_v62 = vpop.eup %1711  ;;  %v1455_v51 = vmul.f32 1.442695, %v1452_v38 }
 0x22f   : > { %v1331_v60 = vmul.f32 %v1708_v37, %v1327_v6  ;;  %v1326_v63 = vand.u32 2147483647, %v1324_v58  ;;  %v1387_v57 = vand.u32 2147483647, %v1385_v30 }
 0x230   : > { %v1354_v28 = vpop.permute.xlu1 %1353  ;;  %v1356_v8 = vpop.permute.xlu0 %1355  ;;  %1717 = vpow2.f32 %v1455_v51 }
 0x231   : > { %v1333_v13 = vsel %vm964_vm8, %v1331_v60, 0.0  ;;  %v1328_v18 = vadd.f32 %v1326_v63, %v1322_v19  ;;  %v1389_v32 = vsub.f32 %v1356_v8, %v3291_v46  ;;  %v1386_v2 = vsub.f32 %v1354_v28, %v3274_v20 }
 0x232   : > { %v1335_v53 = vmul.f32 0.0005624297, %v1333_v13 }
 0x233   : > { %v1332_v21 = vmul.f32 %v1710_v26, %v1328_v18  ;;  %v1391_v41 = vand.u32 2147483647, %v1389_v32  ;;  %v1388_v42 = vand.u32 2147483647, %v1386_v2 }
 0x234   : > { %v1337_v50 = vadd.f32 %v1335_v53, %v1265_v27  ;;  %v1358_v34 = vpop.permute.xlu1 %1357  ;;  %v1360_v43 = vpop.permute.xlu0 %1359 }
 0x235   : > { %v1334_v14 = vsel %vm1330_vm0, %v1332_v21, 0.0  ;;  %v1390_v12 = vsub.f32 %v1358_v34, %v3309_v61  ;;  %v1395_v9 = vsub.f32 %v1360_v43, %v3313_v48  ;;  %v1393_v5 = vadd.f32 %v1391_v41, %v1387_v57 }
 0x236   : > { %v1336_v7 = vmul.f32 0.0005624297, %v1334_v14 }
 0x237   : > { %v1392_v25 = vand.u32 2147483647, %v1390_v12  ;;  %v1397_v1 = vand.u32 2147483647, %v1395_v9 }
 0x238   : > { %v1338_v35 = vadd.f32 %v1336_v7, %v1266_v3  ;;  %v1362_v49 = vpop.permute.xlu1 %1361  ;;  %v1424_v11 = vpop.permute.xlu0 %1423 }
 0x239   : > { %v1399_v27 = vadd.f32 %v1397_v1, %v1393_v5  ;;  %v1396_v59 = vsub.f32 %v1362_v49, %v3320_v29  ;;  %v1394_v45 = vadd.f32 %v1392_v25, %v1388_v42  ;;  %v1457_v33 = vsub.f32 %v1424_v11, %v3283_v55  ;;  %v1714_v3 = vpop.eup %1713 }
 0x23a   : > { %v1716_v26 = vpop.eup %1715 }
 0x23b   : > { %v1403_v16 = vmul.f32 %v1712_v62, %v1399_v27  ;;  %v1398_v10 = vand.u32 2147483647, %v1396_v59  ;;  %v1459_v31 = vand.u32 2147483647, %v1457_v33  ;;  %v1718_v41 = vpop.eup %1717 }
 0x23c   : > { %v1426_v39 = vpop.permute.xlu1 %1425  ;;  %v1428_v24 = vpop.permute.xlu0 %1427 }
 0x23d   : > { %v1405_v47 = vsel %vm744_vm3, %v1403_v16, 0.0  ;;  %v1400_v56 = vadd.f32 %v1398_v10, %v1394_v45  ;;  %v1461_v0 = vsub.f32 %v1428_v24, %v3291_v46  ;;  %v1458_v60 = vsub.f32 %v1426_v39, %v3274_v20 }
 0x23e   : > { %v1407_v54 = vmul.f32 0.00056689343, %v1405_v47 }
 0x23f   : > { %v1404_v40 = vmul.f32 %v1714_v3, %v1400_v56  ;;  %v1463_v55 = vand.u32 2147483647, %v1461_v0  ;;  %v1460_v13 = vand.u32 2147483647, %v1458_v60 }
 0x240   : > { %v1430_v6 = vpop.permute.xlu1 %1429  ;;  %v1432_v58 = vpop.permute.xlu0 %1431  ;;  %v1409_v37 = vadd.f32 %v1407_v54, %v1337_v50 }
 0x241   : > { %v1406_v19 = vsel %vm1402_vm10, %v1404_v40, 0.0  ;;  %v1462_v63 = vsub.f32 %v1430_v6, %v3309_v61  ;;  %v1467_v46 = vsub.f32 %v1432_v58, %v3313_v48  ;;  %v1465_v4 = vadd.f32 %v1463_v55, %v1459_v31 }
 0x242   : > { %v1408_v30 = vmul.f32 0.00056689343, %v1406_v19 }
 0x243   : > { %v1464_v44 = vand.u32 2147483647, %v1462_v63  ;;  %v1469_v17 = vand.u32 2147483647, %v1467_v46 }
 0x244   : > { %v1434_v28 = vpop.permute.xlu1 %1433  ;;  %v1410_v8 = vadd.f32 %v1408_v30, %v1338_v35 }
 0x245   : > { %v1471_v18 = vadd.f32 %v1469_v17, %v1465_v4  ;;  %v1468_v32 = vsub.f32 %v1434_v28, %v3320_v29  ;;  %v1466_v53 = vadd.f32 %v1464_v44, %v1460_v13 }
 0x247   : > { %v1475_v21 = vmul.f32 %v1716_v26, %v1471_v18  ;;  %v1470_v57 = vand.u32 2147483647, %v1468_v32 }
 0x249   : > { %v1477_v20 = vsel %vm1109_vm14, %v1475_v21, 0.0  ;;  %v1472_v61 = vadd.f32 %v1470_v57, %v1466_v53 }
 0x24a   : > { %v1479_v48 = vmul.f32 0.00056689343, %v1477_v20 }
 0x24b   : > { %v1476_v36 = vmul.f32 %v1718_v41, %v1472_v61 }
 0x24c   : > { %v1481_v52 = vadd.f32 %v1479_v48, %v1409_v37 }
 0x24d   : > { %v1478_v29 = vsel %vm1474_vm2, %v1476_v36, 0.0 }
 0x24e   : > { %v1480_v50 = vmul.f32 0.00056689343, %v1478_v29 }
 0x250   : > { %v1482_v34 = vadd.f32 %v1480_v50, %v1410_v8 }
 0x252   : > { %v1483_v43 = vadd.f32 %v1482_v34, %v1481_v52 }
 0x254   : > { %1484 = vadd.xlane.f32.xlu0 %v1483_v43 }
 0x2e1   : > { %v1485_v14 = vpop.xlane.xlu0 %1484 }
 0x2e2   : > { %v1486_v2 = vrot.slane %v1485_v14, 4 }
 0x2e4   : > { %v1487_v12 = vadd.f32 %v1486_v2, %v1485_v14 }
 0x2e6   : > { %v1488_v9 = vrot.slane %v1487_v12, 2 }
 0x2e8   : > { %v1489_v7 = vadd.f32 %v1488_v9, %v1487_v12 }
 0x2ea   : > { %v1490_v5 = vrot.slane %v1489_v7, 1 }
 0x2ec   : > { %v1491_v25 = vadd.f32 %v1490_v5, %v1489_v7 }
 0x2ee   : > { %1615 = vpush %v1491_v25 }
 0x31f   : > { %s1616_s12 = spop %1615 }
 0x320   : > { %v1493_v15 = vstv %s1616_s12 }
 0x321   : > { %1494 = vst [vmem:[%s201_s27] sm:$0xff] %v1493_v15 }
 0x322 PF: > { %p15_p11 = scmp.ge.s32.totalorder %s1882_s14, 4   ;;  %s3485_s9 = smov %s1823_s10 }
 0x323   : > { %s3486_s10 = smov %s1827_s11  ;;  %s3487_s11 = smov %s1892_s17 }
 0x324   : > { %s3488_s12 = smov %s1882_s14  ;;  %17 = sbr.rel (!%p15_p11) target bundleno = 5 (0x5), region = 81 }
 0x32b   :  { %1514 = vsyncpa [#allocation3], 1 }
 0x32c   :  { %1516 = vsyncpa [#allocation3 + $0x1], 1 }
 0x32d   :  { %1517 = vsyncpa [#allocation5], 1 }
 0x32e   :  { %1519 = vsyncpa [#allocation5 + $0x1], 1 }

</bundles_post_ra>
